<compile_context>
chip_gen: v7x
topology: tpu7x:2x2x1
jax: 0.10.0
libtpu: 0.0.40
codegen_flags: <defaults>
</compile_context>

<pallas_src>
import math

import jax
import jax.numpy as jnp
from jax import lax
from jax.experimental import pallas as pl
from jax.experimental.pallas import tpu as pltpu


def _round_up(v, m):
    return (v + m - 1) // m * m


def _num_tensorcores():
    """Best-effort TensorCore count per chip (1 on failure; clamped to 2)."""
    try:
        info = pltpu.get_tpu_info()
        for name in ("num_cores", "core_count", "tensor_cores", "num_tensor_cores"):
            v = getattr(info, name, None)
            if isinstance(v, int) and 1 <= v <= 8:
                return min(v, 2)
    except Exception:
        pass
    try:
        v = getattr(jax.devices()[0], "num_cores", None)
        if isinstance(v, int) and 1 <= v <= 8:
            return min(v, 2)
    except Exception:
        pass
    return 1


def _vmem_cap_bytes():
    """Per-core VMEM budget: ~3/4 of physical, conservative 48 MiB fallback."""
    try:
        cap = int(pltpu.get_tpu_info().vmem_capacity_bytes)
        if cap > 0:
            return int(min(max(cap * 3 // 4, cap - (16 << 20)), 112 << 20))
    except Exception:
        pass
    return 48 << 20  # safe on every generation (v7x physical is 64 MiB)


def make_rnn_fc_kernel(n_layers, seq_len, batch_tile, h_pad, chunk_steps, unroll):
    """Kernel for one batch tile: full RNN recurrence (time-major) + FC head."""

    def kernel(*args):
        # inputs : x_ref (S, TB, D_pad) time-major (compute dtype),
        #          (wih_ref, whh_ref, bias_ref) * n_layers
        #              wih (D_in_pad, H_pad), whh (H_pad, H_pad) compute dtype,
        #              bias = b_ih + b_hh, (1, H_pad) f32
        #          wfc_ref (H_pad, O_pad) compute dtype, bfc_ref (1, O_pad) f32
        # outputs: out_ref (S, TB, O_pad) compute/out dtype (time-major)
        #          hidden_ref (n_layers, TB, H_pad) f32
        # scratch: act_ref (S, TB, H_pad) compute dtype  (single slab, reused)
        x_ref = args[0]
        layer_refs = args[1:1 + 3 * n_layers]
        wfc_ref = args[1 + 3 * n_layers]
        bfc_ref = args[2 + 3 * n_layers]
        out_ref = args[3 + 3 * n_layers]
        hidden_ref = args[4 + 3 * n_layers]
        act_ref = args[5 + 3 * n_layers]

        cdt = act_ref.dtype  # compute dtype (bf16 perf path / f32 exact path)

        for l in range(n_layers):                 # static unroll over layers
            wih = layer_refs[3 * l][...]          # (D_in_pad, H_pad)
            whh = layer_refs[3 * l + 1][...]      # (H_pad, H_pad)
            b = layer_refs[3 * l + 2][...]        # (1, H_pad) f32

            # ---- hoisted input projection + fused bias, chunked over time so
            #      the live f32 intermediate stays bounded.  Written into the
            #      single activation slab (in place for l > 0; row-chunk-local
            #      matmul so read-before-write per chunk is safe). ----
            for c0 in range(0, seq_len, chunk_steps):
                c1 = min(c0 + chunk_steps, seq_len)
                rows = (c1 - c0) * batch_tile
                if l == 0:
                    d_in = x_ref.shape[-1]
                    src = x_ref[c0:c1].reshape(rows, d_in)
                else:
                    d_in = h_pad
                    src = act_ref[c0:c1].reshape(rows, d_in)
                xw = jnp.dot(src, wih, preferred_element_type=jnp.float32) + b
                act_ref[c0:c1] = xw.reshape(c1 - c0, batch_tile, h_pad).astype(cdt)

            # ---- serial recurrence: only h @ W_hh remains inside the loop ----
            def step(t, h):
                pre = act_ref[t].astype(jnp.float32) + jnp.dot(
                    h.astype(cdt), whh, preferred_element_type=jnp.float32)
                h_new = jnp.maximum(pre, 0.0)      # ReLU nonlinearity
                act_ref[t] = h_new.astype(cdt)     # overwrite slab in place
                return h_new

            h_last = lax.fori_loop(
                0, seq_len, step,
                jnp.zeros((batch_tile, h_pad), jnp.float32),
                unroll=unroll)
            hidden_ref[l] = h_last                 # final hidden of this layer

        # ---- FC head on the final activation slab, chunked over time ----
        o_pad = out_ref.shape[-1]
        for c0 in range(0, seq_len, chunk_steps):
            c1 = min(c0 + chunk_steps, seq_len)
            rows = (c1 - c0) * batch_tile
            a2d = act_ref[c0:c1].reshape(rows, h_pad)
            o = (jnp.dot(a2d, wfc_ref[...], preferred_element_type=jnp.float32)
                 + bfc_ref[...])
            out_ref[c0:c1] = o.reshape(c1 - c0, batch_tile, o_pad).astype(out_ref.dtype)

    return kernel


# Cached capability flag: does this JAX accept pipeline_mode=pl.Buffered(1)?
_WEIGHT_SINGLE_BUFFER_OK = [True]


def rnn_model_forward(x, params, *, n_layers, hidden_dim, output_size,
                      compute_dtype=jnp.bfloat16, max_batch_tile=256):
    """Forward matching RNNmodel: returns (out (B*S, O), hidden (L, B, H))."""
    B, S, D = x.shape
    cdt = jnp.dtype(compute_dtype)

    d_pad = _round_up(D, 128)
    h_pad = _round_up(hidden_dim, 128)
    o_pad = _round_up(output_size, 128)
    out_dtype = jnp.float32 if cdt.itemsize == 4 else compute_dtype

    # --- batch tiling: largest sublane-aligned tile that fits VMEM; split only
    #     when the chip has 2 TensorCores (grid axis is 'parallel'). ---
    sub = 8 * max(1, 4 // cdt.itemsize)          # 8 for f32, 16 for bf16
    b_pad0 = _round_up(B, sub)
    batch_tile = min(b_pad0, _round_up(max_batch_tile, sub))
    cores = _num_tensorcores()
    if cores > 1 and b_pad0 >= cores * sub:
        batch_tile = min(batch_tile, _round_up(-(-b_pad0 // cores), sub))

    in_isz = cdt.itemsize
    out_isz = jnp.dtype(out_dtype).itemsize
    w_bytes = 0
    for l in range(n_layers):
        in_dim_pad = d_pad if l == 0 else h_pad
        w_bytes += (in_dim_pad * h_pad + h_pad * h_pad) * in_isz + h_pad * 4
    w_bytes += h_pad * o_pad * in_isz + o_pad * 4

    def footprint(tb):
        cs = min(S, max(1, 512 // tb))
        return (2 * w_bytes                                 # weights (cons. x2)
                + 2 * S * tb * d_pad * in_isz               # x block (dbl-buf)
                + 2 * S * tb * o_pad * out_isz              # out block (dbl-buf)
                + 2 * n_layers * tb * h_pad * 4             # hidden block
                + S * tb * h_pad * in_isz                   # activation slab
                + 2 * cs * tb * max(h_pad, o_pad) * 4)      # live matmul temps

    cap = _vmem_cap_bytes()
    while footprint(batch_tile) + (8 << 20) > cap and batch_tile > sub:
        batch_tile = max(sub, _round_up(batch_tile // 2, sub))
    # TODO(synk): for sequences so long that the (S, TB, H) resident slab does
    # not fit VMEM even at the minimal batch tile, a time-chunked grid axis
    # (with carried hidden state) would be required.

    b_pad = _round_up(b_pad0, batch_tile)
    n_bt = b_pad // batch_tile
    chunk_steps = min(S, max(1, 512 // batch_tile))
    vmem_limit = int(min(cap, max(footprint(batch_tile) + (8 << 20), 32 << 20)))
    unroll = True if S <= 16 else 8

    def pad2(a, rows, cols):
        return jnp.pad(a, ((0, rows - a.shape[0]), (0, cols - a.shape[1])))

    # Zero-pad and go time-major (S, B_pad, D_pad) in XLA so every in-kernel
    # per-step access is a contiguous leading-axis (TB, feat) tile.
    x_p = jnp.pad(x, ((0, b_pad - B), (0, 0), (0, d_pad - D)))
    x_tm = jnp.transpose(x_p, (1, 0, 2)).astype(compute_dtype)

    inputs = [x_tm]
    weight_shapes = []
    for l in range(n_layers):
        w_ih, w_hh, b_ih, b_hh = params[f"layer{l}"]
        in_dim_pad = d_pad if l == 0 else h_pad
        inputs += [
            pad2(w_ih.T, in_dim_pad, h_pad).astype(compute_dtype),
            pad2(w_hh.T, h_pad, h_pad).astype(compute_dtype),
            pad2((b_ih + b_hh)[None, :], 1, h_pad).astype(jnp.float32),
        ]
        weight_shapes += [(in_dim_pad, h_pad), (h_pad, h_pad), (1, h_pad)]
    w_fc, b_fc = params["fc"]
    inputs += [
        pad2(w_fc.T, h_pad, o_pad).astype(compute_dtype),
        pad2(b_fc[None, :], 1, o_pad).astype(jnp.float32),
    ]
    weight_shapes += [(h_pad, o_pad), (1, o_pad)]

    def build_in_specs(single_buffer_weights):
        extra = {"pipeline_mode": pl.Buffered(1)} if single_buffer_weights else {}
        specs = [pl.BlockSpec((S, batch_tile, d_pad), lambda i: (0, i, 0))]
        for shp in weight_shapes:  # grid-invariant blocks -> single-buffer
            specs.append(pl.BlockSpec(shp, lambda i: (0, 0), **extra))
        return specs

    out_specs = (
        pl.BlockSpec((S, batch_tile, o_pad), lambda i: (0, i, 0)),
        pl.BlockSpec((n_layers, batch_tile, h_pad), lambda i: (0, i, 0)),
    )
    out_shape = (
        jax.ShapeDtypeStruct((S, b_pad, o_pad), out_dtype),
        jax.ShapeDtypeStruct((n_layers, b_pad, h_pad), jnp.float32),
    )
    scratch_shapes = [
        pltpu.VMEM((S, batch_tile, h_pad), compute_dtype),  # single act slab
    ]

    kernel = make_rnn_fc_kernel(n_layers, S, batch_tile, h_pad,
                                chunk_steps, unroll)

    def run(single_buffer_weights):
        return pl.pallas_call(
            kernel,
            grid=(n_bt,),
            out_shape=out_shape,
            in_specs=build_in_specs(single_buffer_weights),
            out_specs=out_specs,
            scratch_shapes=scratch_shapes,
            compiler_params=pltpu.CompilerParams(
                dimension_semantics=("parallel",),
                vmem_limit_bytes=vmem_limit,
            ),
        )(*inputs)

    if _WEIGHT_SINGLE_BUFFER_OK[0]:
        try:
            out_tm, hidden_p = run(True)
        except Exception:
            _WEIGHT_SINGLE_BUFFER_OK[0] = False
            out_tm, hidden_p = run(False)
    else:
        out_tm, hidden_p = run(False)

    # (S, B_pad, O_pad) time-major -> (B*S, O) batch-major; strip padding.
    out = (jnp.transpose(out_tm[:, :B, :output_size], (1, 0, 2))
           .reshape(B * S, output_size).astype(jnp.float32))
    hidden = hidden_p[:, :B, :hidden_dim]
    return out, hidden


def init_params(key, input_size, hidden_dim, output_size, n_layers):
    """Deterministic init matching PyTorch default U(-1/sqrt(H), 1/sqrt(H))."""
    params = {}
    k_rnn = 1.0 / math.sqrt(hidden_dim)
    for l in range(n_layers):
        in_dim = input_size if l == 0 else hidden_dim
        key, k1, k2, k3, k4 = jax.random.split(key, 5)
        params[f"layer{l}"] = (
            jax.random.uniform(k1, (hidden_dim, in_dim), jnp.float32, -k_rnn, k_rnn),
            jax.random.uniform(k2, (hidden_dim, hidden_dim), jnp.float32, -k_rnn, k_rnn),
            jax.random.uniform(k3, (hidden_dim,), jnp.float32, -k_rnn, k_rnn),
            jax.random.uniform(k4, (hidden_dim,), jnp.float32, -k_rnn, k_rnn),
        )
    k_fc = 1.0 / math.sqrt(hidden_dim)
    key, k1, k2 = jax.random.split(key, 3)
    params["fc"] = (
        jax.random.uniform(k1, (output_size, hidden_dim), jnp.float32, -k_fc, k_fc),
        jax.random.uniform(k2, (output_size,), jnp.float32, -k_fc, k_fc),
    )
    return params


def reference_forward(x, params, *, n_layers, hidden_dim, output_size):
    """Pure-JAX reference matching nn.RNN(relu, batch_first) + Linear."""
    B, S, _ = x.shape
    cur = x
    finals = []
    for l in range(n_layers):
        w_ih, w_hh, b_ih, b_hh = params[f"layer{l}"]
        h = jnp.zeros((B, hidden_dim), jnp.float32)
        outs = []
        for t in range(S):
            h = jax.nn.relu(cur[:, t, :] @ w_ih.T + b_ih + h @ w_hh.T + b_hh)
            outs.append(h)
        finals.append(h)
        cur = jnp.stack(outs, axis=1)
    w_fc, b_fc = params["fc"]
    out = cur.reshape(B * S, hidden_dim) @ w_fc.T + b_fc
    return out, jnp.stack(finals, axis=0)


if __name__ == "__main__":
    batch, seq, input_size = 2, 8, 16
    hidden_dim, output_size, n_layers = 32, 8, 2

    key = jax.random.PRNGKey(0)
    key, kx = jax.random.split(key)
    x = jax.random.normal(kx, (batch, seq, input_size), jnp.float32)
    params = init_params(key, input_size, hidden_dim, output_size, n_layers)

    out_gold, hid_gold = reference_forward(
        x, params, n_layers=n_layers, hidden_dim=hidden_dim,
        output_size=output_size)

    # Exact path (f32 operands & scratch): tight check.
    out32, hid32 = rnn_model_forward(
        x, params, n_layers=n_layers, hidden_dim=hidden_dim,
        output_size=output_size, compute_dtype=jnp.float32)
    jax.block_until_ready((out32, hid32))
    assert out32.shape == (batch * seq, output_size)
    assert hid32.shape == (n_layers, batch, hidden_dim)
    assert jnp.allclose(out32, out_gold, rtol=1e-3, atol=1e-4)
    assert jnp.allclose(hid32, hid_gold, rtol=1e-3, atol=1e-4)

    # Performance path (bf16 operands/scratch, f32 accumulate): loose check.
    outbf, hidbf = rnn_model_forward(
        x, params, n_layers=n_layers, hidden_dim=hidden_dim,
        output_size=output_size, compute_dtype=jnp.bfloat16)
    jax.block_until_ready((outbf, hidbf))
    assert outbf.shape == (batch * seq, output_size)
    assert hidbf.shape == (n_layers, batch, hidden_dim)
    assert jnp.allclose(outbf, out_gold, rtol=5e-2, atol=5e-2)
    assert jnp.allclose(hidbf, hid_gold, rtol=5e-2, atol=5e-2)

    print("KERNEL_OK")
</pallas_src>

<mosaic_0001>
module attributes {stable_mosaic.version = 11 : i64} {
  func.func @kernel(%arg0: i32, %arg1: memref<8x8x128xf32, #tpu.memory_space<vmem>>, %arg2: memref<128x128xf32, #tpu.memory_space<vmem>>, %arg3: memref<128x128xf32, #tpu.memory_space<vmem>>, %arg4: memref<1x128xf32, #tpu.memory_space<vmem>>, %arg5: memref<128x128xf32, #tpu.memory_space<vmem>>, %arg6: memref<128x128xf32, #tpu.memory_space<vmem>>, %arg7: memref<1x128xf32, #tpu.memory_space<vmem>>, %arg8: memref<128x128xf32, #tpu.memory_space<vmem>>, %arg9: memref<1x128xf32, #tpu.memory_space<vmem>>, %arg10: memref<8x8x128xf32, #tpu.memory_space<vmem>>, %arg11: memref<2x8x128xf32, #tpu.memory_space<vmem>>, %arg12: memref<8x8x128xf32, #tpu.memory_space<vmem>>) attributes {dimension_semantics = [#tpu.dimension_semantics<parallel>], iteration_bounds = array<i64: 1>, scalar_prefetch = 0 : i64, scratch_operands = 1 : i64, tpu.core_type = #tpu.core_type<tc>, window_params = [{transform_indices = @transform_0, window_bounds = array<i64: 8, 8, 128>}, {pipeline_mode = #tpu.pipeline_mode<synchronous>, transform_indices = @transform_1, window_bounds = array<i64: 128, 128>}, {pipeline_mode = #tpu.pipeline_mode<synchronous>, transform_indices = @transform_2, window_bounds = array<i64: 128, 128>}, {pipeline_mode = #tpu.pipeline_mode<synchronous>, transform_indices = @transform_3, window_bounds = array<i64: 1, 128>}, {pipeline_mode = #tpu.pipeline_mode<synchronous>, transform_indices = @transform_4, window_bounds = array<i64: 128, 128>}, {pipeline_mode = #tpu.pipeline_mode<synchronous>, transform_indices = @transform_5, window_bounds = array<i64: 128, 128>}, {pipeline_mode = #tpu.pipeline_mode<synchronous>, transform_indices = @transform_6, window_bounds = array<i64: 1, 128>}, {pipeline_mode = #tpu.pipeline_mode<synchronous>, transform_indices = @transform_7, window_bounds = array<i64: 128, 128>}, {pipeline_mode = #tpu.pipeline_mode<synchronous>, transform_indices = @transform_8, window_bounds = array<i64: 1, 128>}, {transform_indices = @transform_9, window_bounds = array<i64: 8, 8, 128>}, {transform_indices = @transform_10, window_bounds = array<i64: 2, 8, 128>}]} {
    %c0 = arith.constant 0 : index
    %c0_0 = arith.constant 0 : index
    %0 = vector.load %arg2[%c0, %c0_0] : memref<128x128xf32, #tpu.memory_space<vmem>>, vector<128x128xf32>
    %c0_1 = arith.constant 0 : index
    %c0_2 = arith.constant 0 : index
    %1 = vector.load %arg3[%c0_1, %c0_2] : memref<128x128xf32, #tpu.memory_space<vmem>>, vector<128x128xf32>
    %c0_3 = arith.constant 0 : index
    %c0_4 = arith.constant 0 : index
    %2 = vector.load %arg4[%c0_3, %c0_4] : memref<1x128xf32, #tpu.memory_space<vmem>>, vector<1x128xf32>
    %c0_5 = arith.constant 0 : index
    %c0_6 = arith.constant 0 : index
    %c0_7 = arith.constant 0 : index
    %3 = vector.load %arg1[%c0_5, %c0_6, %c0_7] : memref<8x8x128xf32, #tpu.memory_space<vmem>>, vector<8x8x128xf32>
    %4 = vector.shape_cast %3 : vector<8x8x128xf32> to vector<64x128xf32>
    %cst = arith.constant dense<0.000000e+00> : vector<64x128xf32>
    %5 = tpu.matmul %4, %0, %cst {dimension_numbers = #tpu.dot_dimension_numbers<[1], [0], [0], [1], [0, 0, 1, 1], [], []>} : vector<64x128xf32>, vector<128x128xf32>, vector<64x128xf32> -> vector<64x128xf32>
    %6 = vector.broadcast %2 : vector<1x128xf32> to vector<64x128xf32>
    %7 = arith.addf %5, %6 : vector<64x128xf32>
    %8 = vector.shape_cast %7 : vector<64x128xf32> to vector<8x8x128xf32>
    %c0_8 = arith.constant 0 : index
    %c0_9 = arith.constant 0 : index
    %c0_10 = arith.constant 0 : index
    %9 = vector.load %arg12[%c0_8, %c0_9, %c0_10] : memref<8x8x128xf32, #tpu.memory_space<vmem>>, vector<8x8x128xf32>
    tpu.vector_store %arg12[%c0_8, %c0_9, %c0_10], %8 {strides = array<i32>} : memref<8x8x128xf32, #tpu.memory_space<vmem>>, vector<8x8x128xf32>,
    %cst_11 = arith.constant 0.000000e+00 : f32
    %10 = vector.broadcast %cst_11 : f32 to vector<8x128xf32>
    %c0_i32 = arith.constant 0 : i32
    %11 = arith.index_cast %c0_i32 : i32 to index
    %c0_12 = arith.constant 0 : index
    %c0_13 = arith.constant 0 : index
    %12 = vector.load %arg12[%11, %c0_12, %c0_13] : memref<8x8x128xf32, #tpu.memory_space<vmem>>, vector<1x8x128xf32>
    %13 = vector.shape_cast %12 : vector<1x8x128xf32> to vector<8x128xf32>
    %cst_14 = arith.constant dense<0.000000e+00> : vector<8x128xf32>
    %14 = tpu.matmul %10, %1, %cst_14 {dimension_numbers = #tpu.dot_dimension_numbers<[1], [0], [0], [1], [0, 0, 1, 1], [], []>} : vector<8x128xf32>, vector<128x128xf32>, vector<8x128xf32> -> vector<8x128xf32>
    %15 = arith.addf %13, %14 : vector<8x128xf32>
    %cst_15 = arith.constant 0.000000e+00 : f32
    %16 = vector.broadcast %cst_15 : f32 to vector<8x128xf32>
    %17 = arith.maximumf %15, %16 : vector<8x128xf32>
    %18 = arith.index_cast %c0_i32 : i32 to index
    %c0_16 = arith.constant 0 : index
    %c0_17 = arith.constant 0 : index
    %19 = vector.load %arg12[%18, %c0_16, %c0_17] : memref<8x8x128xf32, #tpu.memory_space<vmem>>, vector<1x8x128xf32>
    %20 = vector.shape_cast %19 : vector<1x8x128xf32> to vector<8x128xf32>
    %21 = vector.shape_cast %17 : vector<8x128xf32> to vector<1x8x128xf32>
    tpu.vector_store %arg12[%18, %c0_16, %c0_17], %21 {strides = array<i32>} : memref<8x8x128xf32, #tpu.memory_space<vmem>>, vector<1x8x128xf32>,
    %c1_i32 = arith.constant 1 : i32
    %22 = arith.index_cast %c1_i32 : i32 to index
    %c0_18 = arith.constant 0 : index
    %c0_19 = arith.constant 0 : index
    %23 = vector.load %arg12[%22, %c0_18, %c0_19] : memref<8x8x128xf32, #tpu.memory_space<vmem>>, vector<1x8x128xf32>
    %24 = vector.shape_cast %23 : vector<1x8x128xf32> to vector<8x128xf32>
    %cst_20 = arith.constant dense<0.000000e+00> : vector<8x128xf32>
    %25 = tpu.matmul %17, %1, %cst_20 {dimension_numbers = #tpu.dot_dimension_numbers<[1], [0], [0], [1], [0, 0, 1, 1], [], []>} : vector<8x128xf32>, vector<128x128xf32>, vector<8x128xf32> -> vector<8x128xf32>
    %26 = arith.addf %24, %25 : vector<8x128xf32>
    %cst_21 = arith.constant 0.000000e+00 : f32
    %27 = vector.broadcast %cst_21 : f32 to vector<8x128xf32>
    %28 = arith.maximumf %26, %27 : vector<8x128xf32>
    %29 = arith.index_cast %c1_i32 : i32 to index
    %c0_22 = arith.constant 0 : index
    %c0_23 = arith.constant 0 : index
    %30 = vector.load %arg12[%29, %c0_22, %c0_23] : memref<8x8x128xf32, #tpu.memory_space<vmem>>, vector<1x8x128xf32>
    %31 = vector.shape_cast %30 : vector<1x8x128xf32> to vector<8x128xf32>
    %32 = vector.shape_cast %28 : vector<8x128xf32> to vector<1x8x128xf32>
    tpu.vector_store %arg12[%29, %c0_22, %c0_23], %32 {strides = array<i32>} : memref<8x8x128xf32, #tpu.memory_space<vmem>>, vector<1x8x128xf32>,
    %c2_i32 = arith.constant 2 : i32
    %33 = arith.index_cast %c2_i32 : i32 to index
    %c0_24 = arith.constant 0 : index
    %c0_25 = arith.constant 0 : index
    %34 = vector.load %arg12[%33, %c0_24, %c0_25] : memref<8x8x128xf32, #tpu.memory_space<vmem>>, vector<1x8x128xf32>
    %35 = vector.shape_cast %34 : vector<1x8x128xf32> to vector<8x128xf32>
    %cst_26 = arith.constant dense<0.000000e+00> : vector<8x128xf32>
    %36 = tpu.matmul %28, %1, %cst_26 {dimension_numbers = #tpu.dot_dimension_numbers<[1], [0], [0], [1], [0, 0, 1, 1], [], []>} : vector<8x128xf32>, vector<128x128xf32>, vector<8x128xf32> -> vector<8x128xf32>
    %37 = arith.addf %35, %36 : vector<8x128xf32>
    %cst_27 = arith.constant 0.000000e+00 : f32
    %38 = vector.broadcast %cst_27 : f32 to vector<8x128xf32>
    %39 = arith.maximumf %37, %38 : vector<8x128xf32>
    %40 = arith.index_cast %c2_i32 : i32 to index
    %c0_28 = arith.constant 0 : index
    %c0_29 = arith.constant 0 : index
    %41 = vector.load %arg12[%40, %c0_28, %c0_29] : memref<8x8x128xf32, #tpu.memory_space<vmem>>, vector<1x8x128xf32>
    %42 = vector.shape_cast %41 : vector<1x8x128xf32> to vector<8x128xf32>
    %43 = vector.shape_cast %39 : vector<8x128xf32> to vector<1x8x128xf32>
    tpu.vector_store %arg12[%40, %c0_28, %c0_29], %43 {strides = array<i32>} : memref<8x8x128xf32, #tpu.memory_space<vmem>>, vector<1x8x128xf32>,
    %c3_i32 = arith.constant 3 : i32
    %44 = arith.index_cast %c3_i32 : i32 to index
    %c0_30 = arith.constant 0 : index
    %c0_31 = arith.constant 0 : index
    %45 = vector.load %arg12[%44, %c0_30, %c0_31] : memref<8x8x128xf32, #tpu.memory_space<vmem>>, vector<1x8x128xf32>
    %46 = vector.shape_cast %45 : vector<1x8x128xf32> to vector<8x128xf32>
    %cst_32 = arith.constant dense<0.000000e+00> : vector<8x128xf32>
    %47 = tpu.matmul %39, %1, %cst_32 {dimension_numbers = #tpu.dot_dimension_numbers<[1], [0], [0], [1], [0, 0, 1, 1], [], []>} : vector<8x128xf32>, vector<128x128xf32>, vector<8x128xf32> -> vector<8x128xf32>
    %48 = arith.addf %46, %47 : vector<8x128xf32>
    %cst_33 = arith.constant 0.000000e+00 : f32
    %49 = vector.broadcast %cst_33 : f32 to vector<8x128xf32>
    %50 = arith.maximumf %48, %49 : vector<8x128xf32>
    %51 = arith.index_cast %c3_i32 : i32 to index
    %c0_34 = arith.constant 0 : index
    %c0_35 = arith.constant 0 : index
    %52 = vector.load %arg12[%51, %c0_34, %c0_35] : memref<8x8x128xf32, #tpu.memory_space<vmem>>, vector<1x8x128xf32>
    %53 = vector.shape_cast %52 : vector<1x8x128xf32> to vector<8x128xf32>
    %54 = vector.shape_cast %50 : vector<8x128xf32> to vector<1x8x128xf32>
    tpu.vector_store %arg12[%51, %c0_34, %c0_35], %54 {strides = array<i32>} : memref<8x8x128xf32, #tpu.memory_space<vmem>>, vector<1x8x128xf32>,
    %c4_i32 = arith.constant 4 : i32
    %55 = arith.index_cast %c4_i32 : i32 to index
    %c0_36 = arith.constant 0 : index
    %c0_37 = arith.constant 0 : index
    %56 = vector.load %arg12[%55, %c0_36, %c0_37] : memref<8x8x128xf32, #tpu.memory_space<vmem>>, vector<1x8x128xf32>
    %57 = vector.shape_cast %56 : vector<1x8x128xf32> to vector<8x128xf32>
    %cst_38 = arith.constant dense<0.000000e+00> : vector<8x128xf32>
    %58 = tpu.matmul %50, %1, %cst_38 {dimension_numbers = #tpu.dot_dimension_numbers<[1], [0], [0], [1], [0, 0, 1, 1], [], []>} : vector<8x128xf32>, vector<128x128xf32>, vector<8x128xf32> -> vector<8x128xf32>
    %59 = arith.addf %57, %58 : vector<8x128xf32>
    %cst_39 = arith.constant 0.000000e+00 : f32
    %60 = vector.broadcast %cst_39 : f32 to vector<8x128xf32>
    %61 = arith.maximumf %59, %60 : vector<8x128xf32>
    %62 = arith.index_cast %c4_i32 : i32 to index
    %c0_40 = arith.constant 0 : index
    %c0_41 = arith.constant 0 : index
    %63 = vector.load %arg12[%62, %c0_40, %c0_41] : memref<8x8x128xf32, #tpu.memory_space<vmem>>, vector<1x8x128xf32>
    %64 = vector.shape_cast %63 : vector<1x8x128xf32> to vector<8x128xf32>
    %65 = vector.shape_cast %61 : vector<8x128xf32> to vector<1x8x128xf32>
    tpu.vector_store %arg12[%62, %c0_40, %c0_41], %65 {strides = array<i32>} : memref<8x8x128xf32, #tpu.memory_space<vmem>>, vector<1x8x128xf32>,
    %c5_i32 = arith.constant 5 : i32
    %66 = arith.index_cast %c5_i32 : i32 to index
    %c0_42 = arith.constant 0 : index
    %c0_43 = arith.constant 0 : index
    %67 = vector.load %arg12[%66, %c0_42, %c0_43] : memref<8x8x128xf32, #tpu.memory_space<vmem>>, vector<1x8x128xf32>
    %68 = vector.shape_cast %67 : vector<1x8x128xf32> to vector<8x128xf32>
    %cst_44 = arith.constant dense<0.000000e+00> : vector<8x128xf32>
    %69 = tpu.matmul %61, %1, %cst_44 {dimension_numbers = #tpu.dot_dimension_numbers<[1], [0], [0], [1], [0, 0, 1, 1], [], []>} : vector<8x128xf32>, vector<128x128xf32>, vector<8x128xf32> -> vector<8x128xf32>
    %70 = arith.addf %68, %69 : vector<8x128xf32>
    %cst_45 = arith.constant 0.000000e+00 : f32
    %71 = vector.broadcast %cst_45 : f32 to vector<8x128xf32>
    %72 = arith.maximumf %70, %71 : vector<8x128xf32>
    %73 = arith.index_cast %c5_i32 : i32 to index
    %c0_46 = arith.constant 0 : index
    %c0_47 = arith.constant 0 : index
    %74 = vector.load %arg12[%73, %c0_46, %c0_47] : memref<8x8x128xf32, #tpu.memory_space<vmem>>, vector<1x8x128xf32>
    %75 = vector.shape_cast %74 : vector<1x8x128xf32> to vector<8x128xf32>
    %76 = vector.shape_cast %72 : vector<8x128xf32> to vector<1x8x128xf32>
    tpu.vector_store %arg12[%73, %c0_46, %c0_47], %76 {strides = array<i32>} : memref<8x8x128xf32, #tpu.memory_space<vmem>>, vector<1x8x128xf32>,
    %c6_i32 = arith.constant 6 : i32
    %77 = arith.index_cast %c6_i32 : i32 to index
    %c0_48 = arith.constant 0 : index
    %c0_49 = arith.constant 0 : index
    %78 = vector.load %arg12[%77, %c0_48, %c0_49] : memref<8x8x128xf32, #tpu.memory_space<vmem>>, vector<1x8x128xf32>
    %79 = vector.shape_cast %78 : vector<1x8x128xf32> to vector<8x128xf32>
    %cst_50 = arith.constant dense<0.000000e+00> : vector<8x128xf32>
    %80 = tpu.matmul %72, %1, %cst_50 {dimension_numbers = #tpu.dot_dimension_numbers<[1], [0], [0], [1], [0, 0, 1, 1], [], []>} : vector<8x128xf32>, vector<128x128xf32>, vector<8x128xf32> -> vector<8x128xf32>
    %81 = arith.addf %79, %80 : vector<8x128xf32>
    %cst_51 = arith.constant 0.000000e+00 : f32
    %82 = vector.broadcast %cst_51 : f32 to vector<8x128xf32>
    %83 = arith.maximumf %81, %82 : vector<8x128xf32>
    %84 = arith.index_cast %c6_i32 : i32 to index
    %c0_52 = arith.constant 0 : index
    %c0_53 = arith.constant 0 : index
    %85 = vector.load %arg12[%84, %c0_52, %c0_53] : memref<8x8x128xf32, #tpu.memory_space<vmem>>, vector<1x8x128xf32>
    %86 = vector.shape_cast %85 : vector<1x8x128xf32> to vector<8x128xf32>
    %87 = vector.shape_cast %83 : vector<8x128xf32> to vector<1x8x128xf32>
    tpu.vector_store %arg12[%84, %c0_52, %c0_53], %87 {strides = array<i32>} : memref<8x8x128xf32, #tpu.memory_space<vmem>>, vector<1x8x128xf32>,
    %c7_i32 = arith.constant 7 : i32
    %88 = arith.index_cast %c7_i32 : i32 to index
    %c0_54 = arith.constant 0 : index
    %c0_55 = arith.constant 0 : index
    %89 = vector.load %arg12[%88, %c0_54, %c0_55] : memref<8x8x128xf32, #tpu.memory_space<vmem>>, vector<1x8x128xf32>
    %90 = vector.shape_cast %89 : vector<1x8x128xf32> to vector<8x128xf32>
    %cst_56 = arith.constant dense<0.000000e+00> : vector<8x128xf32>
    %91 = tpu.matmul %83, %1, %cst_56 {dimension_numbers = #tpu.dot_dimension_numbers<[1], [0], [0], [1], [0, 0, 1, 1], [], []>} : vector<8x128xf32>, vector<128x128xf32>, vector<8x128xf32> -> vector<8x128xf32>
    %92 = arith.addf %90, %91 : vector<8x128xf32>
    %cst_57 = arith.constant 0.000000e+00 : f32
    %93 = vector.broadcast %cst_57 : f32 to vector<8x128xf32>
    %94 = arith.maximumf %92, %93 : vector<8x128xf32>
    %95 = arith.index_cast %c7_i32 : i32 to index
    %c0_58 = arith.constant 0 : index
    %c0_59 = arith.constant 0 : index
    %96 = vector.load %arg12[%95, %c0_58, %c0_59] : memref<8x8x128xf32, #tpu.memory_space<vmem>>, vector<1x8x128xf32>
    %97 = vector.shape_cast %96 : vector<1x8x128xf32> to vector<8x128xf32>
    %98 = vector.shape_cast %94 : vector<8x128xf32> to vector<1x8x128xf32>
    tpu.vector_store %arg12[%95, %c0_58, %c0_59], %98 {strides = array<i32>} : memref<8x8x128xf32, #tpu.memory_space<vmem>>, vector<1x8x128xf32>,
    %c8_i32 = arith.constant 8 : i32
    %c0_60 = arith.constant 0 : index
    %c0_61 = arith.constant 0 : index
    %c0_62 = arith.constant 0 : index
    %99 = vector.load %arg11[%c0_60, %c0_61, %c0_62] : memref<2x8x128xf32, #tpu.memory_space<vmem>>, vector<1x8x128xf32>
    %100 = vector.shape_cast %99 : vector<1x8x128xf32> to vector<8x128xf32>
    %101 = vector.shape_cast %94 : vector<8x128xf32> to vector<1x8x128xf32>
    tpu.vector_store %arg11[%c0_60, %c0_61, %c0_62], %101 {strides = array<i32>} : memref<2x8x128xf32, #tpu.memory_space<vmem>>, vector<1x8x128xf32>,
    %c0_63 = arith.constant 0 : index
    %c0_64 = arith.constant 0 : index
    %102 = vector.load %arg5[%c0_63, %c0_64] : memref<128x128xf32, #tpu.memory_space<vmem>>, vector<128x128xf32>
    %c0_65 = arith.constant 0 : index
    %c0_66 = arith.constant 0 : index
    %103 = vector.load %arg6[%c0_65, %c0_66] : memref<128x128xf32, #tpu.memory_space<vmem>>, vector<128x128xf32>
    %c0_67 = arith.constant 0 : index
    %c0_68 = arith.constant 0 : index
    %104 = vector.load %arg7[%c0_67, %c0_68] : memref<1x128xf32, #tpu.memory_space<vmem>>, vector<1x128xf32>
    %c0_69 = arith.constant 0 : index
    %c0_70 = arith.constant 0 : index
    %c0_71 = arith.constant 0 : index
    %105 = vector.load %arg12[%c0_69, %c0_70, %c0_71] : memref<8x8x128xf32, #tpu.memory_space<vmem>>, vector<8x8x128xf32>
    %106 = vector.shape_cast %105 : vector<8x8x128xf32> to vector<64x128xf32>
    %cst_72 = arith.constant dense<0.000000e+00> : vector<64x128xf32>
    %107 = tpu.matmul %106, %102, %cst_72 {dimension_numbers = #tpu.dot_dimension_numbers<[1], [0], [0], [1], [0, 0, 1, 1], [], []>} : vector<64x128xf32>, vector<128x128xf32>, vector<64x128xf32> -> vector<64x128xf32>
    %108 = vector.broadcast %104 : vector<1x128xf32> to vector<64x128xf32>
    %109 = arith.addf %107, %108 : vector<64x128xf32>
    %110 = vector.shape_cast %109 : vector<64x128xf32> to vector<8x8x128xf32>
    %c0_73 = arith.constant 0 : index
    %c0_74 = arith.constant 0 : index
    %c0_75 = arith.constant 0 : index
    %111 = vector.load %arg12[%c0_73, %c0_74, %c0_75] : memref<8x8x128xf32, #tpu.memory_space<vmem>>, vector<8x8x128xf32>
    tpu.vector_store %arg12[%c0_73, %c0_74, %c0_75], %110 {strides = array<i32>} : memref<8x8x128xf32, #tpu.memory_space<vmem>>, vector<8x8x128xf32>,
    %cst_76 = arith.constant 0.000000e+00 : f32
    %112 = vector.broadcast %cst_76 : f32 to vector<8x128xf32>
    %c0_i32_77 = arith.constant 0 : i32
    %113 = arith.index_cast %c0_i32_77 : i32 to index
    %c0_78 = arith.constant 0 : index
    %c0_79 = arith.constant 0 : index
    %114 = vector.load %arg12[%113, %c0_78, %c0_79] : memref<8x8x128xf32, #tpu.memory_space<vmem>>, vector<1x8x128xf32>
    %115 = vector.shape_cast %114 : vector<1x8x128xf32> to vector<8x128xf32>
    %cst_80 = arith.constant dense<0.000000e+00> : vector<8x128xf32>
    %116 = tpu.matmul %112, %103, %cst_80 {dimension_numbers = #tpu.dot_dimension_numbers<[1], [0], [0], [1], [0, 0, 1, 1], [], []>} : vector<8x128xf32>, vector<128x128xf32>, vector<8x128xf32> -> vector<8x128xf32>
    %117 = arith.addf %115, %116 : vector<8x128xf32>
    %cst_81 = arith.constant 0.000000e+00 : f32
    %118 = vector.broadcast %cst_81 : f32 to vector<8x128xf32>
    %119 = arith.maximumf %117, %118 : vector<8x128xf32>
    %120 = arith.index_cast %c0_i32_77 : i32 to index
    %c0_82 = arith.constant 0 : index
    %c0_83 = arith.constant 0 : index
    %121 = vector.load %arg12[%120, %c0_82, %c0_83] : memref<8x8x128xf32, #tpu.memory_space<vmem>>, vector<1x8x128xf32>
    %122 = vector.shape_cast %121 : vector<1x8x128xf32> to vector<8x128xf32>
    %123 = vector.shape_cast %119 : vector<8x128xf32> to vector<1x8x128xf32>
    tpu.vector_store %arg12[%120, %c0_82, %c0_83], %123 {strides = array<i32>} : memref<8x8x128xf32, #tpu.memory_space<vmem>>, vector<1x8x128xf32>,
    %c1_i32_84 = arith.constant 1 : i32
    %124 = arith.index_cast %c1_i32_84 : i32 to index
    %c0_85 = arith.constant 0 : index
    %c0_86 = arith.constant 0 : index
    %125 = vector.load %arg12[%124, %c0_85, %c0_86] : memref<8x8x128xf32, #tpu.memory_space<vmem>>, vector<1x8x128xf32>
    %126 = vector.shape_cast %125 : vector<1x8x128xf32> to vector<8x128xf32>
    %cst_87 = arith.constant dense<0.000000e+00> : vector<8x128xf32>
    %127 = tpu.matmul %119, %103, %cst_87 {dimension_numbers = #tpu.dot_dimension_numbers<[1], [0], [0], [1], [0, 0, 1, 1], [], []>} : vector<8x128xf32>, vector<128x128xf32>, vector<8x128xf32> -> vector<8x128xf32>
    %128 = arith.addf %126, %127 : vector<8x128xf32>
    %cst_88 = arith.constant 0.000000e+00 : f32
    %129 = vector.broadcast %cst_88 : f32 to vector<8x128xf32>
    %130 = arith.maximumf %128, %129 : vector<8x128xf32>
    %131 = arith.index_cast %c1_i32_84 : i32 to index
    %c0_89 = arith.constant 0 : index
    %c0_90 = arith.constant 0 : index
    %132 = vector.load %arg12[%131, %c0_89, %c0_90] : memref<8x8x128xf32, #tpu.memory_space<vmem>>, vector<1x8x128xf32>
    %133 = vector.shape_cast %132 : vector<1x8x128xf32> to vector<8x128xf32>
    %134 = vector.shape_cast %130 : vector<8x128xf32> to vector<1x8x128xf32>
    tpu.vector_store %arg12[%131, %c0_89, %c0_90], %134 {strides = array<i32>} : memref<8x8x128xf32, #tpu.memory_space<vmem>>, vector<1x8x128xf32>,
    %c2_i32_91 = arith.constant 2 : i32
    %135 = arith.index_cast %c2_i32_91 : i32 to index
    %c0_92 = arith.constant 0 : index
    %c0_93 = arith.constant 0 : index
    %136 = vector.load %arg12[%135, %c0_92, %c0_93] : memref<8x8x128xf32, #tpu.memory_space<vmem>>, vector<1x8x128xf32>
    %137 = vector.shape_cast %136 : vector<1x8x128xf32> to vector<8x128xf32>
    %cst_94 = arith.constant dense<0.000000e+00> : vector<8x128xf32>
    %138 = tpu.matmul %130, %103, %cst_94 {dimension_numbers = #tpu.dot_dimension_numbers<[1], [0], [0], [1], [0, 0, 1, 1], [], []>} : vector<8x128xf32>, vector<128x128xf32>, vector<8x128xf32> -> vector<8x128xf32>
    %139 = arith.addf %137, %138 : vector<8x128xf32>
    %cst_95 = arith.constant 0.000000e+00 : f32
    %140 = vector.broadcast %cst_95 : f32 to vector<8x128xf32>
    %141 = arith.maximumf %139, %140 : vector<8x128xf32>
    %142 = arith.index_cast %c2_i32_91 : i32 to index
    %c0_96 = arith.constant 0 : index
    %c0_97 = arith.constant 0 : index
    %143 = vector.load %arg12[%142, %c0_96, %c0_97] : memref<8x8x128xf32, #tpu.memory_space<vmem>>, vector<1x8x128xf32>
    %144 = vector.shape_cast %143 : vector<1x8x128xf32> to vector<8x128xf32>
    %145 = vector.shape_cast %141 : vector<8x128xf32> to vector<1x8x128xf32>
    tpu.vector_store %arg12[%142, %c0_96, %c0_97], %145 {strides = array<i32>} : memref<8x8x128xf32, #tpu.memory_space<vmem>>, vector<1x8x128xf32>,
    %c3_i32_98 = arith.constant 3 : i32
    %146 = arith.index_cast %c3_i32_98 : i32 to index
    %c0_99 = arith.constant 0 : index
    %c0_100 = arith.constant 0 : index
    %147 = vector.load %arg12[%146, %c0_99, %c0_100] : memref<8x8x128xf32, #tpu.memory_space<vmem>>, vector<1x8x128xf32>
    %148 = vector.shape_cast %147 : vector<1x8x128xf32> to vector<8x128xf32>
    %cst_101 = arith.constant dense<0.000000e+00> : vector<8x128xf32>
    %149 = tpu.matmul %141, %103, %cst_101 {dimension_numbers = #tpu.dot_dimension_numbers<[1], [0], [0], [1], [0, 0, 1, 1], [], []>} : vector<8x128xf32>, vector<128x128xf32>, vector<8x128xf32> -> vector<8x128xf32>
    %150 = arith.addf %148, %149 : vector<8x128xf32>
    %cst_102 = arith.constant 0.000000e+00 : f32
    %151 = vector.broadcast %cst_102 : f32 to vector<8x128xf32>
    %152 = arith.maximumf %150, %151 : vector<8x128xf32>
    %153 = arith.index_cast %c3_i32_98 : i32 to index
    %c0_103 = arith.constant 0 : index
    %c0_104 = arith.constant 0 : index
    %154 = vector.load %arg12[%153, %c0_103, %c0_104] : memref<8x8x128xf32, #tpu.memory_space<vmem>>, vector<1x8x128xf32>
    %155 = vector.shape_cast %154 : vector<1x8x128xf32> to vector<8x128xf32>
    %156 = vector.shape_cast %152 : vector<8x128xf32> to vector<1x8x128xf32>
    tpu.vector_store %arg12[%153, %c0_103, %c0_104], %156 {strides = array<i32>} : memref<8x8x128xf32, #tpu.memory_space<vmem>>, vector<1x8x128xf32>,
    %c4_i32_105 = arith.constant 4 : i32
    %157 = arith.index_cast %c4_i32_105 : i32 to index
    %c0_106 = arith.constant 0 : index
    %c0_107 = arith.constant 0 : index
    %158 = vector.load %arg12[%157, %c0_106, %c0_107] : memref<8x8x128xf32, #tpu.memory_space<vmem>>, vector<1x8x128xf32>
    %159 = vector.shape_cast %158 : vector<1x8x128xf32> to vector<8x128xf32>
    %cst_108 = arith.constant dense<0.000000e+00> : vector<8x128xf32>
    %160 = tpu.matmul %152, %103, %cst_108 {dimension_numbers = #tpu.dot_dimension_numbers<[1], [0], [0], [1], [0, 0, 1, 1], [], []>} : vector<8x128xf32>, vector<128x128xf32>, vector<8x128xf32> -> vector<8x128xf32>
    %161 = arith.addf %159, %160 : vector<8x128xf32>
    %cst_109 = arith.constant 0.000000e+00 : f32
    %162 = vector.broadcast %cst_109 : f32 to vector<8x128xf32>
    %163 = arith.maximumf %161, %162 : vector<8x128xf32>
    %164 = arith.index_cast %c4_i32_105 : i32 to index
    %c0_110 = arith.constant 0 : index
    %c0_111 = arith.constant 0 : index
    %165 = vector.load %arg12[%164, %c0_110, %c0_111] : memref<8x8x128xf32, #tpu.memory_space<vmem>>, vector<1x8x128xf32>
    %166 = vector.shape_cast %165 : vector<1x8x128xf32> to vector<8x128xf32>
    %167 = vector.shape_cast %163 : vector<8x128xf32> to vector<1x8x128xf32>
    tpu.vector_store %arg12[%164, %c0_110, %c0_111], %167 {strides = array<i32>} : memref<8x8x128xf32, #tpu.memory_space<vmem>>, vector<1x8x128xf32>,
    %c5_i32_112 = arith.constant 5 : i32
    %168 = arith.index_cast %c5_i32_112 : i32 to index
    %c0_113 = arith.constant 0 : index
    %c0_114 = arith.constant 0 : index
    %169 = vector.load %arg12[%168, %c0_113, %c0_114] : memref<8x8x128xf32, #tpu.memory_space<vmem>>, vector<1x8x128xf32>
    %170 = vector.shape_cast %169 : vector<1x8x128xf32> to vector<8x128xf32>
    %cst_115 = arith.constant dense<0.000000e+00> : vector<8x128xf32>
    %171 = tpu.matmul %163, %103, %cst_115 {dimension_numbers = #tpu.dot_dimension_numbers<[1], [0], [0], [1], [0, 0, 1, 1], [], []>} : vector<8x128xf32>, vector<128x128xf32>, vector<8x128xf32> -> vector<8x128xf32>
    %172 = arith.addf %170, %171 : vector<8x128xf32>
    %cst_116 = arith.constant 0.000000e+00 : f32
    %173 = vector.broadcast %cst_116 : f32 to vector<8x128xf32>
    %174 = arith.maximumf %172, %173 : vector<8x128xf32>
    %175 = arith.index_cast %c5_i32_112 : i32 to index
    %c0_117 = arith.constant 0 : index
    %c0_118 = arith.constant 0 : index
    %176 = vector.load %arg12[%175, %c0_117, %c0_118] : memref<8x8x128xf32, #tpu.memory_space<vmem>>, vector<1x8x128xf32>
    %177 = vector.shape_cast %176 : vector<1x8x128xf32> to vector<8x128xf32>
    %178 = vector.shape_cast %174 : vector<8x128xf32> to vector<1x8x128xf32>
    tpu.vector_store %arg12[%175, %c0_117, %c0_118], %178 {strides = array<i32>} : memref<8x8x128xf32, #tpu.memory_space<vmem>>, vector<1x8x128xf32>,
    %c6_i32_119 = arith.constant 6 : i32
    %179 = arith.index_cast %c6_i32_119 : i32 to index
    %c0_120 = arith.constant 0 : index
    %c0_121 = arith.constant 0 : index
    %180 = vector.load %arg12[%179, %c0_120, %c0_121] : memref<8x8x128xf32, #tpu.memory_space<vmem>>, vector<1x8x128xf32>
    %181 = vector.shape_cast %180 : vector<1x8x128xf32> to vector<8x128xf32>
    %cst_122 = arith.constant dense<0.000000e+00> : vector<8x128xf32>
    %182 = tpu.matmul %174, %103, %cst_122 {dimension_numbers = #tpu.dot_dimension_numbers<[1], [0], [0], [1], [0, 0, 1, 1], [], []>} : vector<8x128xf32>, vector<128x128xf32>, vector<8x128xf32> -> vector<8x128xf32>
    %183 = arith.addf %181, %182 : vector<8x128xf32>
    %cst_123 = arith.constant 0.000000e+00 : f32
    %184 = vector.broadcast %cst_123 : f32 to vector<8x128xf32>
    %185 = arith.maximumf %183, %184 : vector<8x128xf32>
    %186 = arith.index_cast %c6_i32_119 : i32 to index
    %c0_124 = arith.constant 0 : index
    %c0_125 = arith.constant 0 : index
    %187 = vector.load %arg12[%186, %c0_124, %c0_125] : memref<8x8x128xf32, #tpu.memory_space<vmem>>, vector<1x8x128xf32>
    %188 = vector.shape_cast %187 : vector<1x8x128xf32> to vector<8x128xf32>
    %189 = vector.shape_cast %185 : vector<8x128xf32> to vector<1x8x128xf32>
    tpu.vector_store %arg12[%186, %c0_124, %c0_125], %189 {strides = array<i32>} : memref<8x8x128xf32, #tpu.memory_space<vmem>>, vector<1x8x128xf32>,
    %c7_i32_126 = arith.constant 7 : i32
    %190 = arith.index_cast %c7_i32_126 : i32 to index
    %c0_127 = arith.constant 0 : index
    %c0_128 = arith.constant 0 : index
    %191 = vector.load %arg12[%190, %c0_127, %c0_128] : memref<8x8x128xf32, #tpu.memory_space<vmem>>, vector<1x8x128xf32>
    %192 = vector.shape_cast %191 : vector<1x8x128xf32> to vector<8x128xf32>
    %cst_129 = arith.constant dense<0.000000e+00> : vector<8x128xf32>
    %193 = tpu.matmul %185, %103, %cst_129 {dimension_numbers = #tpu.dot_dimension_numbers<[1], [0], [0], [1], [0, 0, 1, 1], [], []>} : vector<8x128xf32>, vector<128x128xf32>, vector<8x128xf32> -> vector<8x128xf32>
    %194 = arith.addf %192, %193 : vector<8x128xf32>
    %cst_130 = arith.constant 0.000000e+00 : f32
    %195 = vector.broadcast %cst_130 : f32 to vector<8x128xf32>
    %196 = arith.maximumf %194, %195 : vector<8x128xf32>
    %197 = arith.index_cast %c7_i32_126 : i32 to index
    %c0_131 = arith.constant 0 : index
    %c0_132 = arith.constant 0 : index
    %198 = vector.load %arg12[%197, %c0_131, %c0_132] : memref<8x8x128xf32, #tpu.memory_space<vmem>>, vector<1x8x128xf32>
    %199 = vector.shape_cast %198 : vector<1x8x128xf32> to vector<8x128xf32>
    %200 = vector.shape_cast %196 : vector<8x128xf32> to vector<1x8x128xf32>
    tpu.vector_store %arg12[%197, %c0_131, %c0_132], %200 {strides = array<i32>} : memref<8x8x128xf32, #tpu.memory_space<vmem>>, vector<1x8x128xf32>,
    %c8_i32_133 = arith.constant 8 : i32
    %c1 = arith.constant 1 : index
    %c0_134 = arith.constant 0 : index
    %c0_135 = arith.constant 0 : index
    %201 = vector.load %arg11[%c1, %c0_134, %c0_135] : memref<2x8x128xf32, #tpu.memory_space<vmem>>, vector<1x8x128xf32>
    %202 = vector.shape_cast %201 : vector<1x8x128xf32> to vector<8x128xf32>
    %203 = vector.shape_cast %196 : vector<8x128xf32> to vector<1x8x128xf32>
    tpu.vector_store %arg11[%c1, %c0_134, %c0_135], %203 {strides = array<i32>} : memref<2x8x128xf32, #tpu.memory_space<vmem>>, vector<1x8x128xf32>,
    %c0_136 = arith.constant 0 : index
    %c0_137 = arith.constant 0 : index
    %c0_138 = arith.constant 0 : index
    %204 = vector.load %arg12[%c0_136, %c0_137, %c0_138] : memref<8x8x128xf32, #tpu.memory_space<vmem>>, vector<8x8x128xf32>
    %205 = vector.shape_cast %204 : vector<8x8x128xf32> to vector<64x128xf32>
    %c0_139 = arith.constant 0 : index
    %c0_140 = arith.constant 0 : index
    %206 = vector.load %arg8[%c0_139, %c0_140] : memref<128x128xf32, #tpu.memory_space<vmem>>, vector<128x128xf32>
    %cst_141 = arith.constant dense<0.000000e+00> : vector<64x128xf32>
    %207 = tpu.matmul %205, %206, %cst_141 {dimension_numbers = #tpu.dot_dimension_numbers<[1], [0], [0], [1], [0, 0, 1, 1], [], []>} : vector<64x128xf32>, vector<128x128xf32>, vector<64x128xf32> -> vector<64x128xf32>
    %c0_142 = arith.constant 0 : index
    %c0_143 = arith.constant 0 : index
    %208 = vector.load %arg9[%c0_142, %c0_143] : memref<1x128xf32, #tpu.memory_space<vmem>>, vector<1x128xf32>
    %209 = vector.broadcast %208 : vector<1x128xf32> to vector<64x128xf32>
    %210 = arith.addf %207, %209 : vector<64x128xf32>
    %211 = vector.shape_cast %210 : vector<64x128xf32> to vector<8x8x128xf32>
    %c0_144 = arith.constant 0 : index
    %c0_145 = arith.constant 0 : index
    %c0_146 = arith.constant 0 : index
    %212 = vector.load %arg10[%c0_144, %c0_145, %c0_146] : memref<8x8x128xf32, #tpu.memory_space<vmem>>, vector<8x8x128xf32>
    tpu.vector_store %arg10[%c0_144, %c0_145, %c0_146], %211 {strides = array<i32>} : memref<8x8x128xf32, #tpu.memory_space<vmem>>, vector<8x8x128xf32>,
    return
  }
  func.func @transform_0(%arg0: i32) -> (i32, i32, i32) {
    %c0_i32 = arith.constant 0 : i32
    %c0_i32_0 = arith.constant 0 : i32
    %c0_i32_1 = arith.constant 0 : i32
    return %c0_i32, %arg0, %c0_i32_0 : i32, i32, i32
  }
  func.func @transform_1(%arg0: i32) -> (i32, i32) {
    %c0_i32 = arith.constant 0 : i32
    %c0_i32_0 = arith.constant 0 : i32
    %c0_i32_1 = arith.constant 0 : i32
    return %c0_i32, %c0_i32_0 : i32, i32
  }
  func.func @transform_2(%arg0: i32) -> (i32, i32) {
    %c0_i32 = arith.constant 0 : i32
    %c0_i32_0 = arith.constant 0 : i32
    %c0_i32_1 = arith.constant 0 : i32
    return %c0_i32, %c0_i32_0 : i32, i32
  }
  func.func @transform_3(%arg0: i32) -> (i32, i32) {
    %c0_i32 = arith.constant 0 : i32
    %c0_i32_0 = arith.constant 0 : i32
    %c0_i32_1 = arith.constant 0 : i32
    return %c0_i32, %c0_i32_0 : i32, i32
  }
  func.func @transform_4(%arg0: i32) -> (i32, i32) {
    %c0_i32 = arith.constant 0 : i32
    %c0_i32_0 = arith.constant 0 : i32
    %c0_i32_1 = arith.constant 0 : i32
    return %c0_i32, %c0_i32_0 : i32, i32
  }
  func.func @transform_5(%arg0: i32) -> (i32, i32) {
    %c0_i32 = arith.constant 0 : i32
    %c0_i32_0 = arith.constant 0 : i32
    %c0_i32_1 = arith.constant 0 : i32
    return %c0_i32, %c0_i32_0 : i32, i32
  }
  func.func @transform_6(%arg0: i32) -> (i32, i32) {
    %c0_i32 = arith.constant 0 : i32
    %c0_i32_0 = arith.constant 0 : i32
    %c0_i32_1 = arith.constant 0 : i32
    return %c0_i32, %c0_i32_0 : i32, i32
  }
  func.func @transform_7(%arg0: i32) -> (i32, i32) {
    %c0_i32 = arith.constant 0 : i32
    %c0_i32_0 = arith.constant 0 : i32
    %c0_i32_1 = arith.constant 0 : i32
    return %c0_i32, %c0_i32_0 : i32, i32
  }
  func.func @transform_8(%arg0: i32) -> (i32, i32) {
    %c0_i32 = arith.constant 0 : i32
    %c0_i32_0 = arith.constant 0 : i32
    %c0_i32_1 = arith.constant 0 : i32
    return %c0_i32, %c0_i32_0 : i32, i32
  }
  func.func @transform_9(%arg0: i32) -> (i32, i32, i32) {
    %c0_i32 = arith.constant 0 : i32
    %c0_i32_0 = arith.constant 0 : i32
    %c0_i32_1 = arith.constant 0 : i32
    return %c0_i32, %arg0, %c0_i32_0 : i32, i32, i32
  }
  func.func @transform_10(%arg0: i32) -> (i32, i32, i32) {
    %c0_i32 = arith.constant 0 : i32
    %c0_i32_0 = arith.constant 0 : i32
    %c0_i32_1 = arith.constant 0 : i32
    return %c0_i32, %arg0, %c0_i32_0 : i32, i32, i32
  }
}

module attributes {stable_mosaic.version = 11 : i64} {
  func.func @kernel(%arg0: i32, %arg1: memref<8x8x128xf32, #tpu.memory_space<vmem>>, %arg2: memref<128x128xf32, #tpu.memory_space<vmem>>, %arg3: memref<128x128xf32, #tpu.memory_space<vmem>>, %arg4: memref<1x128xf32, #tpu.memory_space<vmem>>, %arg5: memref<128x128xf32, #tpu.memory_space<vmem>>, %arg6: memref<128x128xf32, #tpu.memory_space<vmem>>, %arg7: memref<1x128xf32, #tpu.memory_space<vmem>>, %arg8: memref<128x128xf32, #tpu.memory_space<vmem>>, %arg9: memref<1x128xf32, #tpu.memory_space<vmem>>, %arg10: memref<8x8x128xf32, #tpu.memory_space<vmem>>, %arg11: memref<2x8x128xf32, #tpu.memory_space<vmem>>, %arg12: memref<8x8x128xf32, #tpu.memory_space<vmem>>) attributes {dimension_semantics = [#tpu.dimension_semantics<parallel>], iteration_bounds = array<i64: 1>, scalar_prefetch = 0 : i64, scratch_operands = 1 : i64, tpu.core_type = #tpu.core_type<tc>, window_params = [{transform_indices = @transform_0, window_bounds = array<i64: 8, 8, 128>}, {pipeline_mode = #tpu.pipeline_mode<synchronous>, transform_indices = @transform_1, window_bounds = array<i64: 128, 128>}, {pipeline_mode = #tpu.pipeline_mode<synchronous>, transform_indices = @transform_2, window_bounds = array<i64: 128, 128>}, {pipeline_mode = #tpu.pipeline_mode<synchronous>, transform_indices = @transform_3, window_bounds = array<i64: 1, 128>}, {pipeline_mode = #tpu.pipeline_mode<synchronous>, transform_indices = @transform_4, window_bounds = array<i64: 128, 128>}, {pipeline_mode = #tpu.pipeline_mode<synchronous>, transform_indices = @transform_5, window_bounds = array<i64: 128, 128>}, {pipeline_mode = #tpu.pipeline_mode<synchronous>, transform_indices = @transform_6, window_bounds = array<i64: 1, 128>}, {pipeline_mode = #tpu.pipeline_mode<synchronous>, transform_indices = @transform_7, window_bounds = array<i64: 128, 128>}, {pipeline_mode = #tpu.pipeline_mode<synchronous>, transform_indices = @transform_8, window_bounds = array<i64: 1, 128>}, {transform_indices = @transform_9, window_bounds = array<i64: 8, 8, 128>}, {transform_indices = @transform_10, window_bounds = array<i64: 2, 8, 128>}]} {
    %c0 = arith.constant 0 : index
    %c0_0 = arith.constant 0 : index
    %0 = vector.load %arg2[%c0, %c0_0] : memref<128x128xf32, #tpu.memory_space<vmem>>, vector<128x128xf32>
    %c0_1 = arith.constant 0 : index
    %c0_2 = arith.constant 0 : index
    %1 = vector.load %arg3[%c0_1, %c0_2] : memref<128x128xf32, #tpu.memory_space<vmem>>, vector<128x128xf32>
    %c0_3 = arith.constant 0 : index
    %c0_4 = arith.constant 0 : index
    %2 = vector.load %arg4[%c0_3, %c0_4] : memref<1x128xf32, #tpu.memory_space<vmem>>, vector<1x128xf32>
    %c0_5 = arith.constant 0 : index
    %c0_6 = arith.constant 0 : index
    %c0_7 = arith.constant 0 : index
    %3 = vector.load %arg1[%c0_5, %c0_6, %c0_7] : memref<8x8x128xf32, #tpu.memory_space<vmem>>, vector<8x8x128xf32>
    %4 = vector.shape_cast %3 : vector<8x8x128xf32> to vector<64x128xf32>
    %cst = arith.constant dense<0.000000e+00> : vector<64x128xf32>
    %5 = tpu.matmul %4, %0, %cst {dimension_numbers = #tpu.dot_dimension_numbers<[1], [0], [0], [1], [0, 0, 1, 1], [], []>} : vector<64x128xf32>, vector<128x128xf32>, vector<64x128xf32> -> vector<64x128xf32>
    %6 = vector.broadcast %2 : vector<1x128xf32> to vector<64x128xf32>
    %7 = arith.addf %5, %6 : vector<64x128xf32>
    %8 = vector.shape_cast %7 : vector<64x128xf32> to vector<8x8x128xf32>
    %c0_8 = arith.constant 0 : index
    %c0_9 = arith.constant 0 : index
    %c0_10 = arith.constant 0 : index
    %9 = vector.load %arg12[%c0_8, %c0_9, %c0_10] : memref<8x8x128xf32, #tpu.memory_space<vmem>>, vector<8x8x128xf32>
    tpu.vector_store %arg12[%c0_8, %c0_9, %c0_10], %8 {strides = array<i32>} : memref<8x8x128xf32, #tpu.memory_space<vmem>>, vector<8x8x128xf32>,
    %cst_11 = arith.constant 0.000000e+00 : f32
    %10 = vector.broadcast %cst_11 : f32 to vector<8x128xf32>
    %c0_i32 = arith.constant 0 : i32
    %11 = arith.index_cast %c0_i32 : i32 to index
    %c0_12 = arith.constant 0 : index
    %c0_13 = arith.constant 0 : index
    %12 = vector.load %arg12[%11, %c0_12, %c0_13] : memref<8x8x128xf32, #tpu.memory_space<vmem>>, vector<1x8x128xf32>
    %13 = vector.shape_cast %12 : vector<1x8x128xf32> to vector<8x128xf32>
    %cst_14 = arith.constant dense<0.000000e+00> : vector<8x128xf32>
    %14 = tpu.matmul %10, %1, %cst_14 {dimension_numbers = #tpu.dot_dimension_numbers<[1], [0], [0], [1], [0, 0, 1, 1], [], []>} : vector<8x128xf32>, vector<128x128xf32>, vector<8x128xf32> -> vector<8x128xf32>
    %15 = arith.addf %13, %14 : vector<8x128xf32>
    %cst_15 = arith.constant 0.000000e+00 : f32
    %16 = vector.broadcast %cst_15 : f32 to vector<8x128xf32>
    %17 = arith.maximumf %15, %16 : vector<8x128xf32>
    %18 = arith.index_cast %c0_i32 : i32 to index
    %c0_16 = arith.constant 0 : index
    %c0_17 = arith.constant 0 : index
    %19 = vector.load %arg12[%18, %c0_16, %c0_17] : memref<8x8x128xf32, #tpu.memory_space<vmem>>, vector<1x8x128xf32>
    %20 = vector.shape_cast %19 : vector<1x8x128xf32> to vector<8x128xf32>
    %21 = vector.shape_cast %17 : vector<8x128xf32> to vector<1x8x128xf32>
    tpu.vector_store %arg12[%18, %c0_16, %c0_17], %21 {strides = array<i32>} : memref<8x8x128xf32, #tpu.memory_space<vmem>>, vector<1x8x128xf32>,
    %c1_i32 = arith.constant 1 : i32
    %22 = arith.index_cast %c1_i32 : i32 to index
    %c0_18 = arith.constant 0 : index
    %c0_19 = arith.constant 0 : index
    %23 = vector.load %arg12[%22, %c0_18, %c0_19] : memref<8x8x128xf32, #tpu.memory_space<vmem>>, vector<1x8x128xf32>
    %24 = vector.shape_cast %23 : vector<1x8x128xf32> to vector<8x128xf32>
    %cst_20 = arith.constant dense<0.000000e+00> : vector<8x128xf32>
    %25 = tpu.matmul %17, %1, %cst_20 {dimension_numbers = #tpu.dot_dimension_numbers<[1], [0], [0], [1], [0, 0, 1, 1], [], []>} : vector<8x128xf32>, vector<128x128xf32>, vector<8x128xf32> -> vector<8x128xf32>
    %26 = arith.addf %24, %25 : vector<8x128xf32>
    %cst_21 = arith.constant 0.000000e+00 : f32
    %27 = vector.broadcast %cst_21 : f32 to vector<8x128xf32>
    %28 = arith.maximumf %26, %27 : vector<8x128xf32>
    %29 = arith.index_cast %c1_i32 : i32 to index
    %c0_22 = arith.constant 0 : index
    %c0_23 = arith.constant 0 : index
    %30 = vector.load %arg12[%29, %c0_22, %c0_23] : memref<8x8x128xf32, #tpu.memory_space<vmem>>, vector<1x8x128xf32>
    %31 = vector.shape_cast %30 : vector<1x8x128xf32> to vector<8x128xf32>
    %32 = vector.shape_cast %28 : vector<8x128xf32> to vector<1x8x128xf32>
    tpu.vector_store %arg12[%29, %c0_22, %c0_23], %32 {strides = array<i32>} : memref<8x8x128xf32, #tpu.memory_space<vmem>>, vector<1x8x128xf32>,
    %c2_i32 = arith.constant 2 : i32
    %33 = arith.index_cast %c2_i32 : i32 to index
    %c0_24 = arith.constant 0 : index
    %c0_25 = arith.constant 0 : index
    %34 = vector.load %arg12[%33, %c0_24, %c0_25] : memref<8x8x128xf32, #tpu.memory_space<vmem>>, vector<1x8x128xf32>
    %35 = vector.shape_cast %34 : vector<1x8x128xf32> to vector<8x128xf32>
    %cst_26 = arith.constant dense<0.000000e+00> : vector<8x128xf32>
    %36 = tpu.matmul %28, %1, %cst_26 {dimension_numbers = #tpu.dot_dimension_numbers<[1], [0], [0], [1], [0, 0, 1, 1], [], []>} : vector<8x128xf32>, vector<128x128xf32>, vector<8x128xf32> -> vector<8x128xf32>
    %37 = arith.addf %35, %36 : vector<8x128xf32>
    %cst_27 = arith.constant 0.000000e+00 : f32
    %38 = vector.broadcast %cst_27 : f32 to vector<8x128xf32>
    %39 = arith.maximumf %37, %38 : vector<8x128xf32>
    %40 = arith.index_cast %c2_i32 : i32 to index
    %c0_28 = arith.constant 0 : index
    %c0_29 = arith.constant 0 : index
    %41 = vector.load %arg12[%40, %c0_28, %c0_29] : memref<8x8x128xf32, #tpu.memory_space<vmem>>, vector<1x8x128xf32>
    %42 = vector.shape_cast %41 : vector<1x8x128xf32> to vector<8x128xf32>
    %43 = vector.shape_cast %39 : vector<8x128xf32> to vector<1x8x128xf32>
    tpu.vector_store %arg12[%40, %c0_28, %c0_29], %43 {strides = array<i32>} : memref<8x8x128xf32, #tpu.memory_space<vmem>>, vector<1x8x128xf32>,
    %c3_i32 = arith.constant 3 : i32
    %44 = arith.index_cast %c3_i32 : i32 to index
    %c0_30 = arith.constant 0 : index
    %c0_31 = arith.constant 0 : index
    %45 = vector.load %arg12[%44, %c0_30, %c0_31] : memref<8x8x128xf32, #tpu.memory_space<vmem>>, vector<1x8x128xf32>
    %46 = vector.shape_cast %45 : vector<1x8x128xf32> to vector<8x128xf32>
    %cst_32 = arith.constant dense<0.000000e+00> : vector<8x128xf32>
    %47 = tpu.matmul %39, %1, %cst_32 {dimension_numbers = #tpu.dot_dimension_numbers<[1], [0], [0], [1], [0, 0, 1, 1], [], []>} : vector<8x128xf32>, vector<128x128xf32>, vector<8x128xf32> -> vector<8x128xf32>
    %48 = arith.addf %46, %47 : vector<8x128xf32>
    %cst_33 = arith.constant 0.000000e+00 : f32
    %49 = vector.broadcast %cst_33 : f32 to vector<8x128xf32>
    %50 = arith.maximumf %48, %49 : vector<8x128xf32>
    %51 = arith.index_cast %c3_i32 : i32 to index
    %c0_34 = arith.constant 0 : index
    %c0_35 = arith.constant 0 : index
    %52 = vector.load %arg12[%51, %c0_34, %c0_35] : memref<8x8x128xf32, #tpu.memory_space<vmem>>, vector<1x8x128xf32>
    %53 = vector.shape_cast %52 : vector<1x8x128xf32> to vector<8x128xf32>
    %54 = vector.shape_cast %50 : vector<8x128xf32> to vector<1x8x128xf32>
    tpu.vector_store %arg12[%51, %c0_34, %c0_35], %54 {strides = array<i32>} : memref<8x8x128xf32, #tpu.memory_space<vmem>>, vector<1x8x128xf32>,
    %c4_i32 = arith.constant 4 : i32
    %55 = arith.index_cast %c4_i32 : i32 to index
    %c0_36 = arith.constant 0 : index
    %c0_37 = arith.constant 0 : index
    %56 = vector.load %arg12[%55, %c0_36, %c0_37] : memref<8x8x128xf32, #tpu.memory_space<vmem>>, vector<1x8x128xf32>
    %57 = vector.shape_cast %56 : vector<1x8x128xf32> to vector<8x128xf32>
    %cst_38 = arith.constant dense<0.000000e+00> : vector<8x128xf32>
    %58 = tpu.matmul %50, %1, %cst_38 {dimension_numbers = #tpu.dot_dimension_numbers<[1], [0], [0], [1], [0, 0, 1, 1], [], []>} : vector<8x128xf32>, vector<128x128xf32>, vector<8x128xf32> -> vector<8x128xf32>
    %59 = arith.addf %57, %58 : vector<8x128xf32>
    %cst_39 = arith.constant 0.000000e+00 : f32
    %60 = vector.broadcast %cst_39 : f32 to vector<8x128xf32>
    %61 = arith.maximumf %59, %60 : vector<8x128xf32>
    %62 = arith.index_cast %c4_i32 : i32 to index
    %c0_40 = arith.constant 0 : index
    %c0_41 = arith.constant 0 : index
    %63 = vector.load %arg12[%62, %c0_40, %c0_41] : memref<8x8x128xf32, #tpu.memory_space<vmem>>, vector<1x8x128xf32>
    %64 = vector.shape_cast %63 : vector<1x8x128xf32> to vector<8x128xf32>
    %65 = vector.shape_cast %61 : vector<8x128xf32> to vector<1x8x128xf32>
    tpu.vector_store %arg12[%62, %c0_40, %c0_41], %65 {strides = array<i32>} : memref<8x8x128xf32, #tpu.memory_space<vmem>>, vector<1x8x128xf32>,
    %c5_i32 = arith.constant 5 : i32
    %66 = arith.index_cast %c5_i32 : i32 to index
    %c0_42 = arith.constant 0 : index
    %c0_43 = arith.constant 0 : index
    %67 = vector.load %arg12[%66, %c0_42, %c0_43] : memref<8x8x128xf32, #tpu.memory_space<vmem>>, vector<1x8x128xf32>
    %68 = vector.shape_cast %67 : vector<1x8x128xf32> to vector<8x128xf32>
    %cst_44 = arith.constant dense<0.000000e+00> : vector<8x128xf32>
    %69 = tpu.matmul %61, %1, %cst_44 {dimension_numbers = #tpu.dot_dimension_numbers<[1], [0], [0], [1], [0, 0, 1, 1], [], []>} : vector<8x128xf32>, vector<128x128xf32>, vector<8x128xf32> -> vector<8x128xf32>
    %70 = arith.addf %68, %69 : vector<8x128xf32>
    %cst_45 = arith.constant 0.000000e+00 : f32
    %71 = vector.broadcast %cst_45 : f32 to vector<8x128xf32>
    %72 = arith.maximumf %70, %71 : vector<8x128xf32>
    %73 = arith.index_cast %c5_i32 : i32 to index
    %c0_46 = arith.constant 0 : index
    %c0_47 = arith.constant 0 : index
    %74 = vector.load %arg12[%73, %c0_46, %c0_47] : memref<8x8x128xf32, #tpu.memory_space<vmem>>, vector<1x8x128xf32>
    %75 = vector.shape_cast %74 : vector<1x8x128xf32> to vector<8x128xf32>
    %76 = vector.shape_cast %72 : vector<8x128xf32> to vector<1x8x128xf32>
    tpu.vector_store %arg12[%73, %c0_46, %c0_47], %76 {strides = array<i32>} : memref<8x8x128xf32, #tpu.memory_space<vmem>>, vector<1x8x128xf32>,
    %c6_i32 = arith.constant 6 : i32
    %77 = arith.index_cast %c6_i32 : i32 to index
    %c0_48 = arith.constant 0 : index
    %c0_49 = arith.constant 0 : index
    %78 = vector.load %arg12[%77, %c0_48, %c0_49] : memref<8x8x128xf32, #tpu.memory_space<vmem>>, vector<1x8x128xf32>
    %79 = vector.shape_cast %78 : vector<1x8x128xf32> to vector<8x128xf32>
    %cst_50 = arith.constant dense<0.000000e+00> : vector<8x128xf32>
    %80 = tpu.matmul %72, %1, %cst_50 {dimension_numbers = #tpu.dot_dimension_numbers<[1], [0], [0], [1], [0, 0, 1, 1], [], []>} : vector<8x128xf32>, vector<128x128xf32>, vector<8x128xf32> -> vector<8x128xf32>
    %81 = arith.addf %79, %80 : vector<8x128xf32>
    %cst_51 = arith.constant 0.000000e+00 : f32
    %82 = vector.broadcast %cst_51 : f32 to vector<8x128xf32>
    %83 = arith.maximumf %81, %82 : vector<8x128xf32>
    %84 = arith.index_cast %c6_i32 : i32 to index
    %c0_52 = arith.constant 0 : index
    %c0_53 = arith.constant 0 : index
    %85 = vector.load %arg12[%84, %c0_52, %c0_53] : memref<8x8x128xf32, #tpu.memory_space<vmem>>, vector<1x8x128xf32>
    %86 = vector.shape_cast %85 : vector<1x8x128xf32> to vector<8x128xf32>
    %87 = vector.shape_cast %83 : vector<8x128xf32> to vector<1x8x128xf32>
    tpu.vector_store %arg12[%84, %c0_52, %c0_53], %87 {strides = array<i32>} : memref<8x8x128xf32, #tpu.memory_space<vmem>>, vector<1x8x128xf32>,
    %c7_i32 = arith.constant 7 : i32
    %88 = arith.index_cast %c7_i32 : i32 to index
    %c0_54 = arith.constant 0 : index
    %c0_55 = arith.constant 0 : index
    %89 = vector.load %arg12[%88, %c0_54, %c0_55] : memref<8x8x128xf32, #tpu.memory_space<vmem>>, vector<1x8x128xf32>
    %90 = vector.shape_cast %89 : vector<1x8x128xf32> to vector<8x128xf32>
    %cst_56 = arith.constant dense<0.000000e+00> : vector<8x128xf32>
    %91 = tpu.matmul %83, %1, %cst_56 {dimension_numbers = #tpu.dot_dimension_numbers<[1], [0], [0], [1], [0, 0, 1, 1], [], []>} : vector<8x128xf32>, vector<128x128xf32>, vector<8x128xf32> -> vector<8x128xf32>
    %92 = arith.addf %90, %91 : vector<8x128xf32>
    %cst_57 = arith.constant 0.000000e+00 : f32
    %93 = vector.broadcast %cst_57 : f32 to vector<8x128xf32>
    %94 = arith.maximumf %92, %93 : vector<8x128xf32>
    %95 = arith.index_cast %c7_i32 : i32 to index
    %c0_58 = arith.constant 0 : index
    %c0_59 = arith.constant 0 : index
    %96 = vector.load %arg12[%95, %c0_58, %c0_59] : memref<8x8x128xf32, #tpu.memory_space<vmem>>, vector<1x8x128xf32>
    %97 = vector.shape_cast %96 : vector<1x8x128xf32> to vector<8x128xf32>
    %98 = vector.shape_cast %94 : vector<8x128xf32> to vector<1x8x128xf32>
    tpu.vector_store %arg12[%95, %c0_58, %c0_59], %98 {strides = array<i32>} : memref<8x8x128xf32, #tpu.memory_space<vmem>>, vector<1x8x128xf32>,
    %c8_i32 = arith.constant 8 : i32
    %c0_60 = arith.constant 0 : index
    %c0_61 = arith.constant 0 : index
    %c0_62 = arith.constant 0 : index
    %99 = vector.load %arg11[%c0_60, %c0_61, %c0_62] : memref<2x8x128xf32, #tpu.memory_space<vmem>>, vector<1x8x128xf32>
    %100 = vector.shape_cast %99 : vector<1x8x128xf32> to vector<8x128xf32>
    %101 = vector.shape_cast %94 : vector<8x128xf32> to vector<1x8x128xf32>
    tpu.vector_store %arg11[%c0_60, %c0_61, %c0_62], %101 {strides = array<i32>} : memref<2x8x128xf32, #tpu.memory_space<vmem>>, vector<1x8x128xf32>,
    %c0_63 = arith.constant 0 : index
    %c0_64 = arith.constant 0 : index
    %102 = vector.load %arg5[%c0_63, %c0_64] : memref<128x128xf32, #tpu.memory_space<vmem>>, vector<128x128xf32>
    %c0_65 = arith.constant 0 : index
    %c0_66 = arith.constant 0 : index
    %103 = vector.load %arg6[%c0_65, %c0_66] : memref<128x128xf32, #tpu.memory_space<vmem>>, vector<128x128xf32>
    %c0_67 = arith.constant 0 : index
    %c0_68 = arith.constant 0 : index
    %104 = vector.load %arg7[%c0_67, %c0_68] : memref<1x128xf32, #tpu.memory_space<vmem>>, vector<1x128xf32>
    %c0_69 = arith.constant 0 : index
    %c0_70 = arith.constant 0 : index
    %c0_71 = arith.constant 0 : index
    %105 = vector.load %arg12[%c0_69, %c0_70, %c0_71] : memref<8x8x128xf32, #tpu.memory_space<vmem>>, vector<8x8x128xf32>
    %106 = vector.shape_cast %105 : vector<8x8x128xf32> to vector<64x128xf32>
    %cst_72 = arith.constant dense<0.000000e+00> : vector<64x128xf32>
    %107 = tpu.matmul %106, %102, %cst_72 {dimension_numbers = #tpu.dot_dimension_numbers<[1], [0], [0], [1], [0, 0, 1, 1], [], []>} : vector<64x128xf32>, vector<128x128xf32>, vector<64x128xf32> -> vector<64x128xf32>
    %108 = vector.broadcast %104 : vector<1x128xf32> to vector<64x128xf32>
    %109 = arith.addf %107, %108 : vector<64x128xf32>
    %110 = vector.shape_cast %109 : vector<64x128xf32> to vector<8x8x128xf32>
    %c0_73 = arith.constant 0 : index
    %c0_74 = arith.constant 0 : index
    %c0_75 = arith.constant 0 : index
    %111 = vector.load %arg12[%c0_73, %c0_74, %c0_75] : memref<8x8x128xf32, #tpu.memory_space<vmem>>, vector<8x8x128xf32>
    tpu.vector_store %arg12[%c0_73, %c0_74, %c0_75], %110 {strides = array<i32>} : memref<8x8x128xf32, #tpu.memory_space<vmem>>, vector<8x8x128xf32>,
    %cst_76 = arith.constant 0.000000e+00 : f32
    %112 = vector.broadcast %cst_76 : f32 to vector<8x128xf32>
    %c0_i32_77 = arith.constant 0 : i32
    %113 = arith.index_cast %c0_i32_77 : i32 to index
    %c0_78 = arith.constant 0 : index
    %c0_79 = arith.constant 0 : index
    %114 = vector.load %arg12[%113, %c0_78, %c0_79] : memref<8x8x128xf32, #tpu.memory_space<vmem>>, vector<1x8x128xf32>
    %115 = vector.shape_cast %114 : vector<1x8x128xf32> to vector<8x128xf32>
    %cst_80 = arith.constant dense<0.000000e+00> : vector<8x128xf32>
    %116 = tpu.matmul %112, %103, %cst_80 {dimension_numbers = #tpu.dot_dimension_numbers<[1], [0], [0], [1], [0, 0, 1, 1], [], []>} : vector<8x128xf32>, vector<128x128xf32>, vector<8x128xf32> -> vector<8x128xf32>
    %117 = arith.addf %115, %116 : vector<8x128xf32>
    %cst_81 = arith.constant 0.000000e+00 : f32
    %118 = vector.broadcast %cst_81 : f32 to vector<8x128xf32>
    %119 = arith.maximumf %117, %118 : vector<8x128xf32>
    %120 = arith.index_cast %c0_i32_77 : i32 to index
    %c0_82 = arith.constant 0 : index
    %c0_83 = arith.constant 0 : index
    %121 = vector.load %arg12[%120, %c0_82, %c0_83] : memref<8x8x128xf32, #tpu.memory_space<vmem>>, vector<1x8x128xf32>
    %122 = vector.shape_cast %121 : vector<1x8x128xf32> to vector<8x128xf32>
    %123 = vector.shape_cast %119 : vector<8x128xf32> to vector<1x8x128xf32>
    tpu.vector_store %arg12[%120, %c0_82, %c0_83], %123 {strides = array<i32>} : memref<8x8x128xf32, #tpu.memory_space<vmem>>, vector<1x8x128xf32>,
    %c1_i32_84 = arith.constant 1 : i32
    %124 = arith.index_cast %c1_i32_84 : i32 to index
    %c0_85 = arith.constant 0 : index
    %c0_86 = arith.constant 0 : index
    %125 = vector.load %arg12[%124, %c0_85, %c0_86] : memref<8x8x128xf32, #tpu.memory_space<vmem>>, vector<1x8x128xf32>
    %126 = vector.shape_cast %125 : vector<1x8x128xf32> to vector<8x128xf32>
    %cst_87 = arith.constant dense<0.000000e+00> : vector<8x128xf32>
    %127 = tpu.matmul %119, %103, %cst_87 {dimension_numbers = #tpu.dot_dimension_numbers<[1], [0], [0], [1], [0, 0, 1, 1], [], []>} : vector<8x128xf32>, vector<128x128xf32>, vector<8x128xf32> -> vector<8x128xf32>
    %128 = arith.addf %126, %127 : vector<8x128xf32>
    %cst_88 = arith.constant 0.000000e+00 : f32
    %129 = vector.broadcast %cst_88 : f32 to vector<8x128xf32>
    %130 = arith.maximumf %128, %129 : vector<8x128xf32>
    %131 = arith.index_cast %c1_i32_84 : i32 to index
    %c0_89 = arith.constant 0 : index
    %c0_90 = arith.constant 0 : index
    %132 = vector.load %arg12[%131, %c0_89, %c0_90] : memref<8x8x128xf32, #tpu.memory_space<vmem>>, vector<1x8x128xf32>
    %133 = vector.shape_cast %132 : vector<1x8x128xf32> to vector<8x128xf32>
    %134 = vector.shape_cast %130 : vector<8x128xf32> to vector<1x8x128xf32>
    tpu.vector_store %arg12[%131, %c0_89, %c0_90], %134 {strides = array<i32>} : memref<8x8x128xf32, #tpu.memory_space<vmem>>, vector<1x8x128xf32>,
    %c2_i32_91 = arith.constant 2 : i32
    %135 = arith.index_cast %c2_i32_91 : i32 to index
    %c0_92 = arith.constant 0 : index
    %c0_93 = arith.constant 0 : index
    %136 = vector.load %arg12[%135, %c0_92, %c0_93] : memref<8x8x128xf32, #tpu.memory_space<vmem>>, vector<1x8x128xf32>
    %137 = vector.shape_cast %136 : vector<1x8x128xf32> to vector<8x128xf32>
    %cst_94 = arith.constant dense<0.000000e+00> : vector<8x128xf32>
    %138 = tpu.matmul %130, %103, %cst_94 {dimension_numbers = #tpu.dot_dimension_numbers<[1], [0], [0], [1], [0, 0, 1, 1], [], []>} : vector<8x128xf32>, vector<128x128xf32>, vector<8x128xf32> -> vector<8x128xf32>
    %139 = arith.addf %137, %138 : vector<8x128xf32>
    %cst_95 = arith.constant 0.000000e+00 : f32
    %140 = vector.broadcast %cst_95 : f32 to vector<8x128xf32>
    %141 = arith.maximumf %139, %140 : vector<8x128xf32>
    %142 = arith.index_cast %c2_i32_91 : i32 to index
    %c0_96 = arith.constant 0 : index
    %c0_97 = arith.constant 0 : index
    %143 = vector.load %arg12[%142, %c0_96, %c0_97] : memref<8x8x128xf32, #tpu.memory_space<vmem>>, vector<1x8x128xf32>
    %144 = vector.shape_cast %143 : vector<1x8x128xf32> to vector<8x128xf32>
    %145 = vector.shape_cast %141 : vector<8x128xf32> to vector<1x8x128xf32>
    tpu.vector_store %arg12[%142, %c0_96, %c0_97], %145 {strides = array<i32>} : memref<8x8x128xf32, #tpu.memory_space<vmem>>, vector<1x8x128xf32>,
    %c3_i32_98 = arith.constant 3 : i32
    %146 = arith.index_cast %c3_i32_98 : i32 to index
    %c0_99 = arith.constant 0 : index
    %c0_100 = arith.constant 0 : index
    %147 = vector.load %arg12[%146, %c0_99, %c0_100] : memref<8x8x128xf32, #tpu.memory_space<vmem>>, vector<1x8x128xf32>
    %148 = vector.shape_cast %147 : vector<1x8x128xf32> to vector<8x128xf32>
    %cst_101 = arith.constant dense<0.000000e+00> : vector<8x128xf32>
    %149 = tpu.matmul %141, %103, %cst_101 {dimension_numbers = #tpu.dot_dimension_numbers<[1], [0], [0], [1], [0, 0, 1, 1], [], []>} : vector<8x128xf32>, vector<128x128xf32>, vector<8x128xf32> -> vector<8x128xf32>
    %150 = arith.addf %148, %149 : vector<8x128xf32>
    %cst_102 = arith.constant 0.000000e+00 : f32
    %151 = vector.broadcast %cst_102 : f32 to vector<8x128xf32>
    %152 = arith.maximumf %150, %151 : vector<8x128xf32>
    %153 = arith.index_cast %c3_i32_98 : i32 to index
    %c0_103 = arith.constant 0 : index
    %c0_104 = arith.constant 0 : index
    %154 = vector.load %arg12[%153, %c0_103, %c0_104] : memref<8x8x128xf32, #tpu.memory_space<vmem>>, vector<1x8x128xf32>
    %155 = vector.shape_cast %154 : vector<1x8x128xf32> to vector<8x128xf32>
    %156 = vector.shape_cast %152 : vector<8x128xf32> to vector<1x8x128xf32>
    tpu.vector_store %arg12[%153, %c0_103, %c0_104], %156 {strides = array<i32>} : memref<8x8x128xf32, #tpu.memory_space<vmem>>, vector<1x8x128xf32>,
    %c4_i32_105 = arith.constant 4 : i32
    %157 = arith.index_cast %c4_i32_105 : i32 to index
    %c0_106 = arith.constant 0 : index
    %c0_107 = arith.constant 0 : index
    %158 = vector.load %arg12[%157, %c0_106, %c0_107] : memref<8x8x128xf32, #tpu.memory_space<vmem>>, vector<1x8x128xf32>
    %159 = vector.shape_cast %158 : vector<1x8x128xf32> to vector<8x128xf32>
    %cst_108 = arith.constant dense<0.000000e+00> : vector<8x128xf32>
    %160 = tpu.matmul %152, %103, %cst_108 {dimension_numbers = #tpu.dot_dimension_numbers<[1], [0], [0], [1], [0, 0, 1, 1], [], []>} : vector<8x128xf32>, vector<128x128xf32>, vector<8x128xf32> -> vector<8x128xf32>
    %161 = arith.addf %159, %160 : vector<8x128xf32>
    %cst_109 = arith.constant 0.000000e+00 : f32
    %162 = vector.broadcast %cst_109 : f32 to vector<8x128xf32>
    %163 = arith.maximumf %161, %162 : vector<8x128xf32>
    %164 = arith.index_cast %c4_i32_105 : i32 to index
    %c0_110 = arith.constant 0 : index
    %c0_111 = arith.constant 0 : index
    %165 = vector.load %arg12[%164, %c0_110, %c0_111] : memref<8x8x128xf32, #tpu.memory_space<vmem>>, vector<1x8x128xf32>
    %166 = vector.shape_cast %165 : vector<1x8x128xf32> to vector<8x128xf32>
    %167 = vector.shape_cast %163 : vector<8x128xf32> to vector<1x8x128xf32>
    tpu.vector_store %arg12[%164, %c0_110, %c0_111], %167 {strides = array<i32>} : memref<8x8x128xf32, #tpu.memory_space<vmem>>, vector<1x8x128xf32>,
    %c5_i32_112 = arith.constant 5 : i32
    %168 = arith.index_cast %c5_i32_112 : i32 to index
    %c0_113 = arith.constant 0 : index
    %c0_114 = arith.constant 0 : index
    %169 = vector.load %arg12[%168, %c0_113, %c0_114] : memref<8x8x128xf32, #tpu.memory_space<vmem>>, vector<1x8x128xf32>
    %170 = vector.shape_cast %169 : vector<1x8x128xf32> to vector<8x128xf32>
    %cst_115 = arith.constant dense<0.000000e+00> : vector<8x128xf32>
    %171 = tpu.matmul %163, %103, %cst_115 {dimension_numbers = #tpu.dot_dimension_numbers<[1], [0], [0], [1], [0, 0, 1, 1], [], []>} : vector<8x128xf32>, vector<128x128xf32>, vector<8x128xf32> -> vector<8x128xf32>
    %172 = arith.addf %170, %171 : vector<8x128xf32>
    %cst_116 = arith.constant 0.000000e+00 : f32
    %173 = vector.broadcast %cst_116 : f32 to vector<8x128xf32>
    %174 = arith.maximumf %172, %173 : vector<8x128xf32>
    %175 = arith.index_cast %c5_i32_112 : i32 to index
    %c0_117 = arith.constant 0 : index
    %c0_118 = arith.constant 0 : index
    %176 = vector.load %arg12[%175, %c0_117, %c0_118] : memref<8x8x128xf32, #tpu.memory_space<vmem>>, vector<1x8x128xf32>
    %177 = vector.shape_cast %176 : vector<1x8x128xf32> to vector<8x128xf32>
    %178 = vector.shape_cast %174 : vector<8x128xf32> to vector<1x8x128xf32>
    tpu.vector_store %arg12[%175, %c0_117, %c0_118], %178 {strides = array<i32>} : memref<8x8x128xf32, #tpu.memory_space<vmem>>, vector<1x8x128xf32>,
    %c6_i32_119 = arith.constant 6 : i32
    %179 = arith.index_cast %c6_i32_119 : i32 to index
    %c0_120 = arith.constant 0 : index
    %c0_121 = arith.constant 0 : index
    %180 = vector.load %arg12[%179, %c0_120, %c0_121] : memref<8x8x128xf32, #tpu.memory_space<vmem>>, vector<1x8x128xf32>
    %181 = vector.shape_cast %180 : vector<1x8x128xf32> to vector<8x128xf32>
    %cst_122 = arith.constant dense<0.000000e+00> : vector<8x128xf32>
    %182 = tpu.matmul %174, %103, %cst_122 {dimension_numbers = #tpu.dot_dimension_numbers<[1], [0], [0], [1], [0, 0, 1, 1], [], []>} : vector<8x128xf32>, vector<128x128xf32>, vector<8x128xf32> -> vector<8x128xf32>
    %183 = arith.addf %181, %182 : vector<8x128xf32>
    %cst_123 = arith.constant 0.000000e+00 : f32
    %184 = vector.broadcast %cst_123 : f32 to vector<8x128xf32>
    %185 = arith.maximumf %183, %184 : vector<8x128xf32>
    %186 = arith.index_cast %c6_i32_119 : i32 to index
    %c0_124 = arith.constant 0 : index
    %c0_125 = arith.constant 0 : index
    %187 = vector.load %arg12[%186, %c0_124, %c0_125] : memref<8x8x128xf32, #tpu.memory_space<vmem>>, vector<1x8x128xf32>
    %188 = vector.shape_cast %187 : vector<1x8x128xf32> to vector<8x128xf32>
    %189 = vector.shape_cast %185 : vector<8x128xf32> to vector<1x8x128xf32>
    tpu.vector_store %arg12[%186, %c0_124, %c0_125], %189 {strides = array<i32>} : memref<8x8x128xf32, #tpu.memory_space<vmem>>, vector<1x8x128xf32>,
    %c7_i32_126 = arith.constant 7 : i32
    %190 = arith.index_cast %c7_i32_126 : i32 to index
    %c0_127 = arith.constant 0 : index
    %c0_128 = arith.constant 0 : index
    %191 = vector.load %arg12[%190, %c0_127, %c0_128] : memref<8x8x128xf32, #tpu.memory_space<vmem>>, vector<1x8x128xf32>
    %192 = vector.shape_cast %191 : vector<1x8x128xf32> to vector<8x128xf32>
    %cst_129 = arith.constant dense<0.000000e+00> : vector<8x128xf32>
    %193 = tpu.matmul %185, %103, %cst_129 {dimension_numbers = #tpu.dot_dimension_numbers<[1], [0], [0], [1], [0, 0, 1, 1], [], []>} : vector<8x128xf32>, vector<128x128xf32>, vector<8x128xf32> -> vector<8x128xf32>
    %194 = arith.addf %192, %193 : vector<8x128xf32>
    %cst_130 = arith.constant 0.000000e+00 : f32
    %195 = vector.broadcast %cst_130 : f32 to vector<8x128xf32>
    %196 = arith.maximumf %194, %195 : vector<8x128xf32>
    %197 = arith.index_cast %c7_i32_126 : i32 to index
    %c0_131 = arith.constant 0 : index
    %c0_132 = arith.constant 0 : index
    %198 = vector.load %arg12[%197, %c0_131, %c0_132] : memref<8x8x128xf32, #tpu.memory_space<vmem>>, vector<1x8x128xf32>
    %199 = vector.shape_cast %198 : vector<1x8x128xf32> to vector<8x128xf32>
    %200 = vector.shape_cast %196 : vector<8x128xf32> to vector<1x8x128xf32>
    tpu.vector_store %arg12[%197, %c0_131, %c0_132], %200 {strides = array<i32>} : memref<8x8x128xf32, #tpu.memory_space<vmem>>, vector<1x8x128xf32>,
    %c8_i32_133 = arith.constant 8 : i32
    %c1 = arith.constant 1 : index
    %c0_134 = arith.constant 0 : index
    %c0_135 = arith.constant 0 : index
    %201 = vector.load %arg11[%c1, %c0_134, %c0_135] : memref<2x8x128xf32, #tpu.memory_space<vmem>>, vector<1x8x128xf32>
    %202 = vector.shape_cast %201 : vector<1x8x128xf32> to vector<8x128xf32>
    %203 = vector.shape_cast %196 : vector<8x128xf32> to vector<1x8x128xf32>
    tpu.vector_store %arg11[%c1, %c0_134, %c0_135], %203 {strides = array<i32>} : memref<2x8x128xf32, #tpu.memory_space<vmem>>, vector<1x8x128xf32>,
    %c0_136 = arith.constant 0 : index
    %c0_137 = arith.constant 0 : index
    %c0_138 = arith.constant 0 : index
    %204 = vector.load %arg12[%c0_136, %c0_137, %c0_138] : memref<8x8x128xf32, #tpu.memory_space<vmem>>, vector<8x8x128xf32>
    %205 = vector.shape_cast %204 : vector<8x8x128xf32> to vector<64x128xf32>
    %c0_139 = arith.constant 0 : index
    %c0_140 = arith.constant 0 : index
    %206 = vector.load %arg8[%c0_139, %c0_140] : memref<128x128xf32, #tpu.memory_space<vmem>>, vector<128x128xf32>
    %cst_141 = arith.constant dense<0.000000e+00> : vector<64x128xf32>
    %207 = tpu.matmul %205, %206, %cst_141 {dimension_numbers = #tpu.dot_dimension_numbers<[1], [0], [0], [1], [0, 0, 1, 1], [], []>} : vector<64x128xf32>, vector<128x128xf32>, vector<64x128xf32> -> vector<64x128xf32>
    %c0_142 = arith.constant 0 : index
    %c0_143 = arith.constant 0 : index
    %208 = vector.load %arg9[%c0_142, %c0_143] : memref<1x128xf32, #tpu.memory_space<vmem>>, vector<1x128xf32>
    %209 = vector.broadcast %208 : vector<1x128xf32> to vector<64x128xf32>
    %210 = arith.addf %207, %209 : vector<64x128xf32>
    %211 = vector.shape_cast %210 : vector<64x128xf32> to vector<8x8x128xf32>
    %c0_144 = arith.constant 0 : index
    %c0_145 = arith.constant 0 : index
    %c0_146 = arith.constant 0 : index
    %212 = vector.load %arg10[%c0_144, %c0_145, %c0_146] : memref<8x8x128xf32, #tpu.memory_space<vmem>>, vector<8x8x128xf32>
    tpu.vector_store %arg10[%c0_144, %c0_145, %c0_146], %211 {strides = array<i32>} : memref<8x8x128xf32, #tpu.memory_space<vmem>>, vector<8x8x128xf32>,
    return
  }
  func.func @transform_0(%arg0: i32) -> (i32, i32, i32) {
    %c0_i32 = arith.constant 0 : i32
    %c0_i32_0 = arith.constant 0 : i32
    %c0_i32_1 = arith.constant 0 : i32
    return %c0_i32, %arg0, %c0_i32_0 : i32, i32, i32
  }
  func.func @transform_1(%arg0: i32) -> (i32, i32) {
    %c0_i32 = arith.constant 0 : i32
    %c0_i32_0 = arith.constant 0 : i32
    %c0_i32_1 = arith.constant 0 : i32
    return %c0_i32, %c0_i32_0 : i32, i32
  }
  func.func @transform_2(%arg0: i32) -> (i32, i32) {
    %c0_i32 = arith.constant 0 : i32
    %c0_i32_0 = arith.constant 0 : i32
    %c0_i32_1 = arith.constant 0 : i32
    return %c0_i32, %c0_i32_0 : i32, i32
  }
  func.func @transform_3(%arg0: i32) -> (i32, i32) {
    %c0_i32 = arith.constant 0 : i32
    %c0_i32_0 = arith.constant 0 : i32
    %c0_i32_1 = arith.constant 0 : i32
    return %c0_i32, %c0_i32_0 : i32, i32
  }
  func.func @transform_4(%arg0: i32) -> (i32, i32) {
    %c0_i32 = arith.constant 0 : i32
    %c0_i32_0 = arith.constant 0 : i32
    %c0_i32_1 = arith.constant 0 : i32
    return %c0_i32, %c0_i32_0 : i32, i32
  }
  func.func @transform_5(%arg0: i32) -> (i32, i32) {
    %c0_i32 = arith.constant 0 : i32
    %c0_i32_0 = arith.constant 0 : i32
    %c0_i32_1 = arith.constant 0 : i32
    return %c0_i32, %c0_i32_0 : i32, i32
  }
  func.func @transform_6(%arg0: i32) -> (i32, i32) {
    %c0_i32 = arith.constant 0 : i32
    %c0_i32_0 = arith.constant 0 : i32
    %c0_i32_1 = arith.constant 0 : i32
    return %c0_i32, %c0_i32_0 : i32, i32
  }
  func.func @transform_7(%arg0: i32) -> (i32, i32) {
    %c0_i32 = arith.constant 0 : i32
    %c0_i32_0 = arith.constant 0 : i32
    %c0_i32_1 = arith.constant 0 : i32
    return %c0_i32, %c0_i32_0 : i32, i32
  }
  func.func @transform_8(%arg0: i32) -> (i32, i32) {
    %c0_i32 = arith.constant 0 : i32
    %c0_i32_0 = arith.constant 0 : i32
    %c0_i32_1 = arith.constant 0 : i32
    return %c0_i32, %c0_i32_0 : i32, i32
  }
  func.func @transform_9(%arg0: i32) -> (i32, i32, i32) {
    %c0_i32 = arith.constant 0 : i32
    %c0_i32_0 = arith.constant 0 : i32
    %c0_i32_1 = arith.constant 0 : i32
    return %c0_i32, %arg0, %c0_i32_0 : i32, i32, i32
  }
  func.func @transform_10(%arg0: i32) -> (i32, i32, i32) {
    %c0_i32 = arith.constant 0 : i32
    %c0_i32_0 = arith.constant 0 : i32
    %c0_i32_1 = arith.constant 0 : i32
    return %c0_i32, %arg0, %c0_i32_0 : i32, i32, i32
  }
}

</mosaic_0001>

<bundles_post_ra>
// kernel: tpu_custom_call.1
= control target key start
LH: loop header
LB: loop body
LE: loop exit
PB: predicated region body
PF: predicated region fallthrough
CT: control target
= control target key end

     0   :  { %16 = vsyncpa [#allocation4], 0  ;;  %s4185_s0 = inlined_call_operand.hbm [shape: f32[8,8,128], index: 0, kind: input, shape index: {}]   ;;  %s4186_s1 = inlined_call_operand.hbm [shape: f32[128,128], index: 1, kind: input, shape index: {}]   ;;  %s4187_s2 = inlined_call_operand.hbm [shape: f32[128,128], index: 2, kind: input, shape index: {}]   ;;  %s4188_s3 = inlined_call_operand.vmem [shape: f32[1,128], index: 3, kind: input, shape index: {}]   ;;  %s4189_s4 = inlined_call_operand.hbm [shape: f32[128,128], index: 4, kind: input, shape index: {}]   ;;  %s4190_s5 = inlined_call_operand.hbm [shape: f32[128,128], index: 5, kind: input, shape index: {}]   ;;  %s4191_s6 = inlined_call_operand.vmem [shape: f32[1,128], index: 6, kind: input, shape index: {}]   ;;  %s4192_s7 = inlined_call_operand.hbm [shape: f32[128,128], index: 7, kind: input, shape index: {}]   ;;  %s4193_s8 = inlined_call_operand.vmem [shape: f32[1,128], index: 8, kind: input, shape index: {}]   ;;  %s4194_s9 = inlined_call_operand.hbm [shape: f32[8,8,128], index: 9, kind: output, shape index: {0}]   ;;  %s4195_s10 = inlined_call_operand.hbm [shape: f32[2,8,128], index: 10, kind: output, shape index: {1}]  }
   0x1   :  { %17 = vsyncpa [#allocation7], 0 }
   0x2   :  { %18 = vsyncpa [#allocation10], 0 }
   0x3   :  { %19 = vsyncpa [#allocation13], 0 }
   0x4   :  { %20 = vsyncpa [#allocation5], 0 }
   0x5   :  { %21 = vsyncpa [#allocation16], 0  ;;  %s3532_s13 = smov [#allocation6]   ;;  %s3533_s15 = smov [#allocation9]  }
   0x6   :  { %s39_s14 = sshll.u32 %s3532_s13, 4  ;;  %s65_s16 = sshll.u32 %s3533_s15, 4  ;;  %s40_s14 = int_to_ptr.vmem [resolvable:$true] %s39_s14  ;;  %s3600_s16 = int_to_ptr.vmem [resolvable:$true] %s65_s16 }
   0x7   :  { %s3344_s19 = scalar_lea.hbm %s4186_s1, 2048 }
   0x8   :  { %p3345_p0 = scmp.ne.s32.totalorder %s4186_s1, %s3344_s19  ;;  %p3348_p1 = scmp.lt.u32.totalorder %s3344_s19, %s4186_s1 }
   0xa   :  { %p3350_p2 = pnand %p3348_p1, %p3345_p0 }
   0xc   :  { %3353 = shalt.err (!%p3350_p2)
}
   0xd   :  { %s3354_s24 = scalar_lea.vmem %s40_s14, 2048  ;;  %p3359_p4 = scmp.lt.s32.totalorder %s40_s14, %s40_s14 }
   0xe   :  { %p3355_p3 = scmp.ne.s32.totalorder %s40_s14, %s3354_s24  ;;  %p3360_p5 = scmp.lt.s32.totalorder %s3354_s24, %s3354_s24 }
  0x10   :  { %p3361_p6 = por %p3360_p5, %p3359_p4 }
  0x12   :  { %p3362_p7 = pnand %p3361_p6, %p3355_p3 }
  0x14   :  { %3365 = shalt.err (!%p3362_p7)
}
  0x15   :  { %s3534_s25 = smov 128   ;;  %s3535_s26 = smov 8  }
  0x16   :  { %45 = dma.hbm_to_vmem [thread:$0]  %s4186_s1, 2048, %s40_s14, [#allocation7], %s3534_s25, %s3534_s25, %s3535_s26  }
  0x17   :  { %s3366_s11 = scalar_lea.hbm %s4189_s4, 2048 }
  0x18   :  { %p3367_p8 = scmp.ne.s32.totalorder %s4189_s4, %s3366_s11  ;;  %p3370_p9 = scmp.lt.u32.totalorder %s3366_s11, %s4189_s4 }
  0x1a   :  { %p3372_p10 = pnand %p3370_p9, %p3367_p8 }
  0x1c   :  { %3375 = shalt.err (!%p3372_p10)
}
  0x1d   :  { %s3376_s18 = scalar_lea.vmem %s3600_s16, 2048  ;;  %p3381_p12 = scmp.lt.s32.totalorder %s3600_s16, %s3600_s16 }
  0x1e   :  { %p3377_p11 = scmp.ne.s32.totalorder %s3600_s16, %s3376_s18  ;;  %p3382_p13 = scmp.lt.s32.totalorder %s3376_s18, %s3376_s18 }
  0x20   :  { %p3383_p0 = por %p3382_p13, %p3381_p12 }
  0x22   :  { %p3384_p1 = pnand %p3383_p0, %p3377_p11 }
  0x24   :  { %3387 = shalt.err (!%p3384_p1)
}
  0x25   :  { %71 = dma.hbm_to_vmem [thread:$0]  %s4189_s4, 2048, %s3600_s16, [#allocation10], %s3534_s25, %s3534_s25, %s3535_s26  }
  0x26   :  { %s3536_s19 = smov [#allocation3]   ;;  %s3537_s21 = smov [#allocation8]  }
  0x27   :  { %s27_s20 = sshll.u32 %s3536_s19, 4  ;;  %s51_s22 = sshll.u32 %s3537_s21, 4  ;;  %s28_s20 = int_to_ptr.vmem [resolvable:$true] %s27_s20  ;;  %s3637_s22 = int_to_ptr.vmem [resolvable:$true] %s51_s22 }
  0x28   :  { %s3388_s27 = scalar_lea.hbm %s4185_s0, 1024 }
  0x29   :  { %p3389_p2 = scmp.ne.s32.totalorder %s4185_s0, %s3388_s27  ;;  %p3392_p3 = scmp.lt.u32.totalorder %s3388_s27, %s4185_s0 }
  0x2b   :  { %p3394_p4 = pnand %p3392_p3, %p3389_p2 }
  0x2d   :  { %3397 = shalt.err (!%p3394_p4)
}
  0x2e   :  { %s3398_s4 = scalar_lea.vmem %s28_s20, 1024  ;;  %p3403_p6 = scmp.lt.s32.totalorder %s28_s20, %s28_s20 }
  0x2f   :  { %p3399_p5 = scmp.ne.s32.totalorder %s28_s20, %s3398_s4  ;;  %p3404_p7 = scmp.lt.s32.totalorder %s3398_s4, %s3398_s4 }
  0x31   :  { %p3405_p8 = por %p3404_p7, %p3403_p6 }
  0x33   :  { %p3406_p9 = pnand %p3405_p8, %p3399_p5 }
  0x35   :  { %3409 = shalt.err (!%p3406_p9)
}
  0x36   :  { %33 = dma.hbm_to_vmem [thread:$0]  %s4185_s0, 1024, %s28_s20, [#allocation4], %s3534_s25, %s3534_s25, %s3535_s26  }
  0x37   :  { %s3410_s17 = scalar_lea.hbm %s4187_s2, 2048 }
  0x38   :  { %p3411_p10 = scmp.ne.s32.totalorder %s4187_s2, %s3410_s17  ;;  %p3414_p11 = scmp.lt.u32.totalorder %s3410_s17, %s4187_s2 }
  0x3a   :  { %p3416_p12 = pnand %p3414_p11, %p3411_p10 }
  0x3c   :  { %3419 = shalt.err (!%p3416_p12)
}
  0x3d   :  { %s3420_s21 = scalar_lea.vmem %s3637_s22, 2048  ;;  %p3425_p0 = scmp.lt.s32.totalorder %s3637_s22, %s3637_s22 }
  0x3e   :  { %p3421_p13 = scmp.ne.s32.totalorder %s3637_s22, %s3420_s21  ;;  %p3426_p1 = scmp.lt.s32.totalorder %s3420_s21, %s3420_s21 }
  0x40   :  { %p3427_p2 = por %p3426_p1, %p3425_p0 }
  0x42   :  { %p3428_p3 = pnand %p3427_p2, %p3421_p13 }
  0x44   :  { %3431 = shalt.err (!%p3428_p3)
}
  0x45   :  { %57 = dma.hbm_to_vmem [thread:$0]  %s4187_s2, 2048, %s3637_s22, [#allocation7], %s3534_s25, %s3534_s25, %s3535_s26  }
  0x46   :  { %s3538_s23 = smov [#allocation11]   ;;  %s3539_s27 = smov [#allocation12]  }
  0x47   :  { %s77_s24 = sshll.u32 %s3538_s23, 4  ;;  %s91_s28 = sshll.u32 %s3539_s27, 4  ;;  %s78_s24 = int_to_ptr.vmem [resolvable:$true] %s77_s24  ;;  %s3674_s28 = int_to_ptr.vmem [resolvable:$true] %s91_s28 }
  0x48   :  { %s3432_s11 = scalar_lea.hbm %s4190_s5, 2048 }
  0x49   :  { %p3433_p4 = scmp.ne.s32.totalorder %s4190_s5, %s3432_s11  ;;  %p3436_p5 = scmp.lt.u32.totalorder %s3432_s11, %s4190_s5 }
  0x4b   :  { %p3438_p6 = pnand %p3436_p5, %p3433_p4 }
  0x4d   :  { %3441 = shalt.err (!%p3438_p6)
}
  0x4e   :  { %s3442_s2 = scalar_lea.vmem %s78_s24, 2048  ;;  %p3447_p8 = scmp.lt.s32.totalorder %s78_s24, %s78_s24 }
  0x4f   :  { %p3443_p7 = scmp.ne.s32.totalorder %s78_s24, %s3442_s2  ;;  %p3448_p9 = scmp.lt.s32.totalorder %s3442_s2, %s3442_s2 }
  0x51   :  { %p3449_p10 = por %p3448_p9, %p3447_p8 }
  0x53   :  { %p3450_p11 = pnand %p3449_p10, %p3443_p7 }
  0x55   :  { %3453 = shalt.err (!%p3450_p11)
}
  0x56   :  { %83 = dma.hbm_to_vmem [thread:$0]  %s4190_s5, 2048, %s78_s24, [#allocation10], %s3534_s25, %s3534_s25, %s3535_s26  }
  0x57   :  { %s3454_s1 = scalar_lea.hbm %s4192_s7, 2048 }
  0x58   :  { %p3455_p12 = scmp.ne.s32.totalorder %s4192_s7, %s3454_s1  ;;  %p3458_p13 = scmp.lt.u32.totalorder %s3454_s1, %s4192_s7 }
  0x5a   :  { %p3460_p0 = pnand %p3458_p13, %p3455_p12 }
  0x5c   :  { %3463 = shalt.err (!%p3460_p0)
}
  0x5d   :  { %s3464_s20 = scalar_lea.vmem %s3674_s28, 2048  ;;  %p3469_p2 = scmp.lt.s32.totalorder %s3674_s28, %s3674_s28 }
  0x5e   :  { %p3465_p1 = scmp.ne.s32.totalorder %s3674_s28, %s3464_s20  ;;  %p3470_p3 = scmp.lt.s32.totalorder %s3464_s20, %s3464_s20 }
  0x60   :  { %p3471_p4 = por %p3470_p3, %p3469_p2 }
  0x62   :  { %p3472_p5 = pnand %p3471_p4, %p3465_p1 }
  0x64   :  { %3475 = shalt.err (!%p3472_p5)
}
  0x65   :  { %97 = dma.hbm_to_vmem [thread:$0]  %s4192_s7, 2048, %s3674_s28, [#allocation13], %s3534_s25, %s3534_s25, %s3535_s26  }
  0x66   :  { %3520 = dma.done.wait [#allocation4], 1024  }
  0x67   :  { %3521 = vsyncadd [#allocation4], 4294966272 }
  0x68   :  { %3522 = dma.done.wait [#allocation7], 4096  }
  0x69   :  { %3523 = vsyncadd [#allocation7], 4294963200 }
  0x6a   :  { %3524 = dma.done.wait [#allocation10], 4096  }
  0x6b   :  { %3525 = vsyncadd [#allocation10], 4294963200 }
  0x6c   :  { %3526 = dma.done.wait [#allocation13], 2048  }
  0x6d   :  { %3527 = vsyncadd [#allocation13], 4294965248  ;;  %v3540_v0 = vmov 0.0|0.0   ;;  %vm3541_vm0 = vmmov 0   ;;  %v3542_v1 = vmov 0.0   ;;  %v118_v2 = vld [vmem:[#allocation6] sm:$0xff] }
  0x6e   :  { %2907 = vmatprep.subr.bf16.mxu0 %v3540_v0  ;;  %2270 = vmatprep.mubr.msk.f32.mxu0 %vm3541_vm0, %v3542_v1  ;;  %v119_v3 = vld [vmem:[#allocation6 + $0x8] sm:$0xff]  ;;  %v120_v4 = vld [vmem:[#allocation6 + $0x10] sm:$0xff]  ;;  %v121_v6 = vld [vmem:[#allocation6 + $0x18] sm:$0xff] }
  0x6f   :  { %v2851_v5 = vpack.c.bf16 %v119_v3, %v118_v2  ;;  %v2855_v7 = vpack.c.bf16 %v121_v6, %v120_v4  ;;  %v122_v8 = vld [vmem:[#allocation6 + $0x20] sm:$0xff]  ;;  %v123_v9 = vld [vmem:[#allocation6 + $0x28] sm:$0xff]  ;;  %v124_v11 = vld [vmem:[#allocation6 + $0x30] sm:$0xff] }
  0x70   :  { %v2859_v10 = vpack.c.bf16 %v123_v9, %v122_v8  ;;  %v151_v12 = vld [vmem:[#allocation3] sm:$0xff]  ;;  %v125_v13 = vld [vmem:[#allocation6 + $0x38] sm:$0xff]  ;;  %v135_v15 = vld [vmem:[#allocation8 + $0x8] sm:$0xff] }
  0x71   :  { %2852 = vmatprep.subr.bf16.mxu1 %v2851_v5  ;;  %2191 = vmatprep.mubr.f32.mxu1 %v151_v12  ;;  %v134_v14 = vld [vmem:[#allocation8] sm:$0xff]  ;;  %v136_v17 = vld [vmem:[#allocation8 + $0x10] sm:$0xff]  ;;  %v137_v18 = vld [vmem:[#allocation8 + $0x18] sm:$0xff]  ;;  %v2863_v19 = vpack.c.bf16 %v125_v13, %v124_v11 }
  0x72   :  { %2854 = vmatpush3.bf16.msra.mxu1 %v2851_v5  ;;  %v3714_v16 = vpack.c.bf16 %v135_v15, %v134_v14  ;;  %v126_v20 = vld [vmem:[#allocation6 + $0x40] sm:$0xff]  ;;  %v127_v21 = vld [vmem:[#allocation6 + $0x48] sm:$0xff]  ;;  %v3718_v22 = vpack.c.bf16 %v137_v18, %v136_v17  ;;  %v128_v26 = vld [vmem:[#allocation6 + $0x50] sm:$0xff] }
  0x73   :  { %2856 = vmatprep.subr.bf16.mxu1 %v2855_v7  ;;  %v138_v23 = vld [vmem:[#allocation8 + $0x20] sm:$0xff]  ;;  %v139_v24 = vld [vmem:[#allocation8 + $0x28] sm:$0xff]  ;;  %v2867_v25 = vpack.c.bf16 %v127_v21, %v126_v20  ;;  %v129_v27 = vld [vmem:[#allocation6 + $0x58] sm:$0xff] }
  0x74   :  { %2909 = vmatpush3.bf16.msra.mxu0 %v3714_v16  ;;  %v3722_v28 = vpack.c.bf16 %v139_v24, %v138_v23  ;;  %v140_v29 = vld [vmem:[#allocation8 + $0x30] sm:$0xff]  ;;  %v141_v30 = vld [vmem:[#allocation8 + $0x38] sm:$0xff]  ;;  %v2871_v31 = vpack.c.bf16 %v129_v27, %v128_v26  ;;  %v130_v32 = vld [vmem:[#allocation6 + $0x60] sm:$0xff] }
  0x75   :  { %2910 = vmatprep.subr.bf16.mxu0 %v3540_v0  ;;  %v131_v33 = vld [vmem:[#allocation6 + $0x68] sm:$0xff]  ;;  %v3726_v34 = vpack.c.bf16 %v141_v30, %v140_v29  ;;  %v142_v35 = vld [vmem:[#allocation8 + $0x40] sm:$0xff]  ;;  %v132_v38 = vld [vmem:[#allocation6 + $0x70] sm:$0xff] }
  0x76   :  { %2858 = vmatpush3.bf16.msra.mxu1 %v2855_v7  ;;  %v143_v36 = vld [vmem:[#allocation8 + $0x48] sm:$0xff]  ;;  %v2875_v37 = vpack.c.bf16 %v131_v33, %v130_v32  ;;  %v133_v39 = vld [vmem:[#allocation6 + $0x78] sm:$0xff]  ;;  %v144_v41 = vld [vmem:[#allocation8 + $0x50] sm:$0xff] }
  0x77   :  { %2860 = vmatprep.subr.bf16.mxu1 %v2859_v10  ;;  %v3730_v40 = vpack.c.bf16 %v143_v36, %v142_v35  ;;  %v145_v42 = vld [vmem:[#allocation8 + $0x58] sm:$0xff]  ;;  %v2879_v43 = vpack.c.bf16 %v133_v39, %v132_v38  ;;  %v146_v45 = vld [vmem:[#allocation8 + $0x60] sm:$0xff]  ;;  %v147_v46 = vld [vmem:[#allocation8 + $0x68] sm:$0xff] }
  0x78   :  { %2912 = vmatpush3.bf16.msra.mxu0 %v3718_v22  ;;  %v3734_v44 = vpack.c.bf16 %v145_v42, %v144_v41  ;;  %v3738_v47 = vpack.c.bf16 %v147_v46, %v146_v45  ;;  %v152_v48 = vld [vmem:[#allocation3 + $0x8] sm:$0xff]  ;;  %v148_v49 = vld [vmem:[#allocation8 + $0x70] sm:$0xff]  ;;  %v149_v50 = vld [vmem:[#allocation8 + $0x78] sm:$0xff] }
  0x79   :  { %2913 = vmatprep.subr.bf16.mxu0 %v3540_v0  ;;  %v153_v51 = vld [vmem:[#allocation3 + $0x10] sm:$0xff]  ;;  %v3743_v52 = vpack.c.bf16 %v149_v50, %v148_v49  ;;  %v154_v53 = vld [vmem:[#allocation3 + $0x18] sm:$0xff]  ;;  %v155_v54 = vld [vmem:[#allocation3 + $0x20] sm:$0xff] }
  0x7a   :  { %2862 = vmatpush3.bf16.msra.mxu1 %v2859_v10  ;;  %v156_v55 = vld [vmem:[#allocation3 + $0x28] sm:$0xff]  ;;  %v157_v56 = vld [vmem:[#allocation3 + $0x30] sm:$0xff]  ;;  %v158_v57 = vld [vmem:[#allocation3 + $0x38] sm:$0xff] }
  0x7b   :  { %2864 = vmatprep.subr.bf16.mxu1 %v2863_v19  ;;  %v1812_v58 = vld [vmem:[%s4188_s3] ss:$0 sm:$0xff]  ;;  %v881_v38 = vld [vmem:[#allocation9 + $0x18] sm:$0xff]  ;;  %v884_v46 = vld [vmem:[#allocation9 + $0x30] sm:$0xff] }
  0x7c   :  { %2915 = vmatpush3.bf16.msra.mxu0 %v3722_v28  ;;  %v886_v49 = vld [vmem:[#allocation9 + $0x40] sm:$0xff]  ;;  %v887_v50 = vld [vmem:[#allocation9 + $0x48] sm:$0xff] }
  0x7d   :  { %2916 = vmatprep.subr.bf16.mxu0 %v3540_v0 }
  0x7e   :  { %2866 = vmatpush3.bf16.msra.mxu1 %v2863_v19 }
  0x7f   :  { %2868 = vmatprep.subr.bf16.mxu1 %v2867_v25 }
  0x80   :  { %2918 = vmatpush3.bf16.msra.mxu0 %v3726_v34 }
  0x81   :  { %2919 = vmatprep.subr.bf16.mxu0 %v3540_v0 }
  0x82   :  { %2870 = vmatpush3.bf16.msra.mxu1 %v2867_v25 }
  0x83   :  { %2872 = vmatprep.subr.bf16.mxu1 %v2871_v31 }
  0x84   :  { %2921 = vmatpush3.bf16.msra.mxu0 %v3730_v40 }
  0x85   :  { %2922 = vmatprep.subr.bf16.mxu0 %v3540_v0 }
  0x86   :  { %2874 = vmatpush3.bf16.msra.mxu1 %v2871_v31 }
  0x87   :  { %2876 = vmatprep.subr.bf16.mxu1 %v2875_v37 }
  0x88   :  { %2924 = vmatpush3.bf16.msra.mxu0 %v3734_v44 }
  0x89   :  { %2925 = vmatprep.subr.bf16.mxu0 %v3540_v0 }
  0x8a   :  { %2878 = vmatpush3.bf16.msra.mxu1 %v2875_v37  ;;  %v880_v37 = vld [vmem:[#allocation9 + $0x10] sm:$0xff] }
  0x8b   :  { %2880 = vmatprep.subr.bf16.mxu1 %v2879_v43  ;;  %v3079_v42 = vpack.c.bf16 %v881_v38, %v880_v37  ;;  %v4009_v38 = vld [vmem:[%s4191_s6] ss:$0 sm:$0xff] }
  0x8c   :  { %2927 = vmatpush3.bf16.msra.mxu0 %v3738_v47 }
  0x8d   :  { %2928 = vmatprep.subr.bf16.mxu0 %v3540_v0 }
  0x8e   :  { %2882 = vmatpush3.bf16.msra.mxu1 %v2879_v43  ;;  %v882_v43 = vld [vmem:[#allocation9 + $0x20] sm:$0xff] }
  0x8f   :  { %2883 = vmatprep.subr.bf16.mxu1 %v3540_v0 }
  0x90   :  { %2930 = vmatpush3.bf16.msra.mxu0 %v3743_v52 }
  0x91   :  { %2192 = vmatmul.mubr.f32.vlgmr.msra.gmra.mrb[0].mxu1 %v152_v48  ;;  %2955 = vmatprep.subr.bf16.mxu0 %v3540_v0 }
  0x92   :  { %2885 = vmatpush3.bf16.msra.mxu1 %v3714_v16  ;;  %2194 = vmatprep.mubr.f32.mxu1 %v153_v51  ;;  %v3091_v51 = vpack.c.bf16 %v887_v50, %v886_v49 }
  0x93   :  { %2886 = vmatprep.subr.bf16.mxu1 %v3540_v0 }
  0x95   :  { %2195 = vmatmul.mubr.f32.gmra.mrb[2].mxu1 %v154_v53  ;;  %v889_v53 = vld [vmem:[#allocation9 + $0x58] sm:$0xff] }
  0x96   :  { %2888 = vmatpush3.bf16.msra.mxu1 %v3718_v22  ;;  %2197 = vmatprep.mubr.f32.mxu1 %v155_v54 }
  0x97   :  { %2889 = vmatprep.subr.bf16.mxu1 %v3540_v0 }
  0x99   :  { %2198 = vmatmul.mubr.f32.gmra.mrb[4].mxu1 %v156_v55  ;;  %v890_v55 = vld [vmem:[#allocation9 + $0x60] sm:$0xff] }
  0x9a   :  { %2891 = vmatpush3.bf16.msra.mxu1 %v3722_v28  ;;  %2200 = vmatprep.mubr.f32.mxu1 %v157_v56  ;;  %v891_v56 = vld [vmem:[#allocation9 + $0x68] sm:$0xff] }
  0x9b   :  { %2892 = vmatprep.subr.bf16.mxu1 %v3540_v0 }
  0x9d   :  { %2201 = vmatmul.mubr.f32.gmra.mrb[6].mxu1 %v158_v57  ;;  %v3099_v57 = vpack.c.bf16 %v891_v56, %v890_v55 }
  0x9e   :  { %2894 = vmatpush3.bf16.msra.mxu1 %v3726_v34  ;;  %2235 = vmatprep.mubr.msk.f32.mxu1 %vm3541_vm0, %v3542_v1 }
  0x9f   :  { %2895 = vmatprep.subr.bf16.mxu1 %v3540_v0 }
  0xa2   :  { %2897 = vmatpush3.bf16.msra.mxu1 %v3730_v40 }
  0xa3   :  { %2898 = vmatprep.subr.bf16.mxu1 %v3540_v0 }
  0xa6   :  { %2900 = vmatpush3.bf16.msra.mxu1 %v3734_v44 }
  0xa7   :  { %2901 = vmatprep.subr.bf16.mxu1 %v3540_v0 }
  0xaa   :  { %2903 = vmatpush3.bf16.msra.mxu1 %v3738_v47 }
  0xab   :  { %2904 = vmatprep.subr.bf16.mxu1 %v3540_v0 }
  0xae   :  { %2906 = vmatpush3.bf16.msra.mxu1 %v3743_v52 }
  0xaf   :  { %2931 = vmatprep.subr.bf16.mxu1 %v3540_v0 }
  0xb1   :  { %2236 = vmatmul.mubr.f32.vlgmr.msra.gmra.mrb[8].mxu1 %v3542_v1 }
  0xb2   :  { %2933 = vmatpush3.bf16.msra.mxu1 %v3714_v16  ;;  %2305 = vmatprep.mubr.msk.f32.mxu1 %vm3541_vm0, %v3542_v1 }
  0xb3   :  { %2934 = vmatprep.subr.bf16.mxu1 %v3540_v0 }
  0xb6   :  { %2936 = vmatpush3.bf16.msra.mxu1 %v3718_v22 }
  0xb7   :  { %2937 = vmatprep.subr.bf16.mxu1 %v3540_v0 }
  0xba   :  { %2939 = vmatpush3.bf16.msra.mxu1 %v3722_v28 }
  0xbb   :  { %2940 = vmatprep.subr.bf16.mxu1 %v3540_v0 }
  0xbe   :  { %2942 = vmatpush3.bf16.msra.mxu1 %v3726_v34 }
  0xbf   :  { %2943 = vmatprep.subr.bf16.mxu1 %v3540_v0 }
  0xc2   :  { %2945 = vmatpush3.bf16.msra.mxu1 %v3730_v40 }
  0xc3   :  { %2946 = vmatprep.subr.bf16.mxu1 %v3540_v0 }
  0xc6   :  { %2948 = vmatpush3.bf16.msra.mxu1 %v3734_v44 }
  0xc7   :  { %2949 = vmatprep.subr.bf16.mxu1 %v3540_v0 }
  0xca   :  { %2951 = vmatpush3.bf16.msra.mxu1 %v3738_v47 }
  0xcb   :  { %2952 = vmatprep.subr.bf16.mxu1 %v3540_v0 }
  0xce   :  { %2954 = vmatpush3.bf16.msra.mxu1 %v3743_v52 }
  0xcf   :  { %2979 = vmatprep.subr.bf16.mxu1 %v3540_v0 }
 0x164   :  { %v2193_v59 = vpop.f32.mrb[0].mxu1 }
 0x165   :  { %v237_v60 = vadd.f32 %v2193_v59, %v1812_v58  ;;  %v231_v61 = vpop.f32.mrb[1].mxu1  ;;  %v893_v59 = vld [vmem:[#allocation9 + $0x78] sm:$0xff] }
 0x166   :  { %v232_v12 = vadd.f32 %v1812_v58, %v231_v61  ;;  %v894_v61 = vld [vmem:[#allocation11] sm:$0xff] }
 0x168   :  { %v2196_v62 = vpop.f32.mrb[2].mxu1 }
 0x169   :  { %v3787_v63 = vadd.f32 %v2196_v62, %v1812_v58  ;;  %v241_v2 = vpop.f32.mrb[3].mxu1  ;;  %v895_v62 = vld [vmem:[#allocation11 + $0x8] sm:$0xff] }
 0x16a   :  { %v242_v3 = vadd.f32 %v1812_v58, %v241_v2  ;;  %v896_v2 = vld [vmem:[#allocation11 + $0x10] sm:$0xff] }
 0x16c   :  { %v2199_v4 = vpop.f32.mrb[4].mxu1 }
 0x16d   :  { %v3789_v5 = vadd.f32 %v2199_v4, %v1812_v58  ;;  %v251_v6 = vpop.f32.mrb[5].mxu1 }
 0x16e   :  { %v3791_v7 = vadd.f32 %v1812_v58, %v251_v6  ;;  %v899_v6 = vld [vmem:[#allocation11 + $0x28] sm:$0xff] }
 0x170   :  { %v2202_v8 = vpop.f32.mrb[6].mxu1 }
 0x171   :  { %v3793_v9 = vadd.f32 %v2202_v8, %v1812_v58  ;;  %v261_v10 = vpop.f32.mrb[7].mxu1  ;;  %v900_v8 = vld [vmem:[#allocation11 + $0x30] sm:$0xff] }
 0x172   :  { %v3795_v11 = vadd.f32 %v1812_v58, %v261_v10  ;;  %v892_v58 = vld [vmem:[#allocation9 + $0x70] sm:$0xff]  ;;  %v901_v10 = vld [vmem:[#allocation11 + $0x38] sm:$0xff] }
 0x184   :  { %v345_v13 = vpop.f32.mrb[8].mxu1 }
 0x185   :  { %v3797_v14 = vadd.f32 %v345_v13, %v232_v12  ;;  %v2237_v15 = vpop.f32.mrb[9].mxu1  ;;  %v3937_v12 = vpack.c.bf16 %v901_v10, %v900_v8  ;;  %v902_v13 = vld [vmem:[#allocation11 + $0x40] sm:$0xff]  ;;  %v1643_v8 = vld [vmem:[#allocation12 + $0x18] sm:$0xff] }
 0x187   :  { %v350_v17 = vmax.f32 %v3797_v14, 0.0  ;;  %v903_v14 = vld [vmem:[#allocation11 + $0x48] sm:$0xff] }
 0x188   :  { %v3941_v15 = vpack.c.bf16 %v903_v14, %v902_v13 }
 0x189   :  { %2271 = vmatmul.mubr.f32.vlgmr.msra.gmra.mrb[0].mxu0 %v350_v17 }
 0x18a   :  { %2957 = vmatpush3.bf16.msra.mxu0 %v3714_v16  ;;  %2340 = vmatprep.mubr.msk.f32.mxu0 %vm3541_vm0, %v3542_v1 }
 0x18b   :  { %2958 = vmatprep.subr.bf16.mxu0 %v3540_v0 }
 0x18e   :  { %2960 = vmatpush3.bf16.msra.mxu0 %v3718_v22 }
 0x18f   :  { %2961 = vmatprep.subr.bf16.mxu0 %v3540_v0 }
 0x192   :  { %2963 = vmatpush3.bf16.msra.mxu0 %v3722_v28 }
 0x193   :  { %2964 = vmatprep.subr.bf16.mxu0 %v3540_v0 }
 0x196   :  { %2966 = vmatpush3.bf16.msra.mxu0 %v3726_v34 }
 0x197   :  { %2967 = vmatprep.subr.bf16.mxu0 %v3540_v0 }
 0x19a   :  { %2969 = vmatpush3.bf16.msra.mxu0 %v3730_v40 }
 0x19b   :  { %2970 = vmatprep.subr.bf16.mxu0 %v3540_v0 }
 0x19e   :  { %2972 = vmatpush3.bf16.msra.mxu0 %v3734_v44 }
 0x19f   :  { %2973 = vmatprep.subr.bf16.mxu0 %v3540_v0 }
 0x1a2   :  { %2975 = vmatpush3.bf16.msra.mxu0 %v3738_v47 }
 0x1a3   :  { %2976 = vmatprep.subr.bf16.mxu0 %v3540_v0 }
 0x1a6   :  { %2978 = vmatpush3.bf16.msra.mxu0 %v3743_v52 }
 0x1a7   :  { %3003 = vmatprep.subr.bf16.mxu0 %v3540_v0 }
 0x25c   :  { %v420_v18 = vpop.f32.mrb[0].mxu0 }
 0x25d   :  { %v3820_v19 = vadd.f32 %v420_v18, %v237_v60  ;;  %v2272_v20 = vpop.f32.mrb[1].mxu0  ;;  %v3103_v60 = vpack.c.bf16 %v893_v59, %v892_v58  ;;  %v905_v18 = vld [vmem:[#allocation11 + $0x58] sm:$0xff] }
 0x25e   :  { %v906_v20 = vld [vmem:[#allocation11 + $0x60] sm:$0xff] }
 0x25f   :  { %v425_v21 = vmax.f32 %v3820_v19, 0.0 }
 0x261   :  { %2306 = vmatmul.mubr.f32.vlgmr.msra.gmra.mrb[10].mxu1 %v425_v21 }
 0x262   :  { %2981 = vmatpush3.bf16.msra.mxu1 %v3714_v16  ;;  %2375 = vmatprep.mubr.msk.f32.mxu1 %vm3541_vm0, %v3542_v1 }
 0x263   :  { %2982 = vmatprep.subr.bf16.mxu1 %v3540_v0 }
 0x266   :  { %2984 = vmatpush3.bf16.msra.mxu1 %v3718_v22 }
 0x267   :  { %2985 = vmatprep.subr.bf16.mxu1 %v3540_v0 }
 0x26a   :  { %2987 = vmatpush3.bf16.msra.mxu1 %v3722_v28 }
 0x26b   :  { %2988 = vmatprep.subr.bf16.mxu1 %v3540_v0 }
 0x26e   :  { %2990 = vmatpush3.bf16.msra.mxu1 %v3726_v34 }
 0x26f   :  { %2991 = vmatprep.subr.bf16.mxu1 %v3540_v0 }
 0x272   :  { %2993 = vmatpush3.bf16.msra.mxu1 %v3730_v40 }
 0x273   :  { %2994 = vmatprep.subr.bf16.mxu1 %v3540_v0 }
 0x276   :  { %2996 = vmatpush3.bf16.msra.mxu1 %v3734_v44 }
 0x277   :  { %2997 = vmatprep.subr.bf16.mxu1 %v3540_v0 }
 0x27a   :  { %2999 = vmatpush3.bf16.msra.mxu1 %v3738_v47 }
 0x27b   :  { %3000 = vmatprep.subr.bf16.mxu1 %v3540_v0 }
 0x27e   :  { %3002 = vmatpush3.bf16.msra.mxu1 %v3743_v52 }
 0x27f   :  { %3027 = vmatprep.subr.bf16.mxu1 %v3540_v0 }
 0x334   :  { %v495_v23 = vpop.f32.mrb[10].mxu1 }
 0x335   :  { %v3843_v24 = vadd.f32 %v495_v23, %v242_v3  ;;  %v2307_v25 = vpop.f32.mrb[11].mxu1  ;;  %v897_v3 = vld [vmem:[#allocation11 + $0x18] sm:$0xff] }
 0x336   :  { %v3929_v4 = vpack.c.bf16 %v897_v3, %v896_v2  ;;  %v909_v25 = vld [vmem:[#allocation11 + $0x78] sm:$0xff] }
 0x337   :  { %v500_v26 = vmax.f32 %v3843_v24, 0.0  ;;  %v908_v24 = vld [vmem:[#allocation11 + $0x70] sm:$0xff] }
 0x339   :  { %2341 = vmatmul.mubr.f32.vlgmr.msra.gmra.mrb[2].mxu0 %v500_v26 }
 0x33a   :  { %3005 = vmatpush3.bf16.msra.mxu0 %v3714_v16  ;;  %2410 = vmatprep.mubr.msk.f32.mxu0 %vm3541_vm0, %v3542_v1 }
 0x33b   :  { %3006 = vmatprep.subr.bf16.mxu0 %v3540_v0 }
 0x33e   :  { %3008 = vmatpush3.bf16.msra.mxu0 %v3718_v22 }
 0x33f   :  { %3009 = vmatprep.subr.bf16.mxu0 %v3540_v0 }
 0x342   :  { %3011 = vmatpush3.bf16.msra.mxu0 %v3722_v28 }
 0x343   :  { %3012 = vmatprep.subr.bf16.mxu0 %v3540_v0 }
 0x346   :  { %3014 = vmatpush3.bf16.msra.mxu0 %v3726_v34 }
 0x347   :  { %3015 = vmatprep.subr.bf16.mxu0 %v3540_v0 }
 0x34a   :  { %3017 = vmatpush3.bf16.msra.mxu0 %v3730_v40 }
 0x34b   :  { %3018 = vmatprep.subr.bf16.mxu0 %v3540_v0 }
 0x34e   :  { %3020 = vmatpush3.bf16.msra.mxu0 %v3734_v44 }
 0x34f   :  { %3021 = vmatprep.subr.bf16.mxu0 %v3540_v0 }
 0x352   :  { %3023 = vmatpush3.bf16.msra.mxu0 %v3738_v47 }
 0x353   :  { %3024 = vmatprep.subr.bf16.mxu0 %v3540_v0 }
 0x356   :  { %3026 = vmatpush3.bf16.msra.mxu0 %v3743_v52 }
 0x357   :  { %3051 = vmatprep.subr.bf16.mxu0 %v3540_v0 }
 0x40c   :  { %v570_v27 = vpop.f32.mrb[2].mxu0 }
 0x40d   :  { %v3867_v29 = vadd.f32 %v570_v27, %v3787_v63  ;;  %v2342_v30 = vpop.f32.mrb[3].mxu0  ;;  %v3925_v63 = vpack.c.bf16 %v895_v62, %v894_v61 }
 0x40f   :  { %v575_v31 = vmax.f32 %v3867_v29, 0.0 }
 0x411   :  { %2376 = vmatmul.mubr.f32.vlgmr.msra.gmra.mrb[12].mxu1 %v575_v31 }
 0x412   :  { %3029 = vmatpush3.bf16.msra.mxu1 %v3714_v16  ;;  %2445 = vmatprep.mubr.msk.f32.mxu1 %vm3541_vm0, %v3542_v1 }
 0x413   :  { %3030 = vmatprep.subr.bf16.mxu1 %v3540_v0 }
 0x416   :  { %3032 = vmatpush3.bf16.msra.mxu1 %v3718_v22 }
 0x417   :  { %3033 = vmatprep.subr.bf16.mxu1 %v3540_v0 }
 0x41a   :  { %3035 = vmatpush3.bf16.msra.mxu1 %v3722_v28 }
 0x41b   :  { %3036 = vmatprep.subr.bf16.mxu1 %v3540_v0 }
 0x41e   :  { %3038 = vmatpush3.bf16.msra.mxu1 %v3726_v34 }
 0x41f   :  { %3039 = vmatprep.subr.bf16.mxu1 %v3540_v0 }
 0x422   :  { %3041 = vmatpush3.bf16.msra.mxu1 %v3730_v40 }
 0x423   :  { %3042 = vmatprep.subr.bf16.mxu1 %v3540_v0 }
 0x426   :  { %3044 = vmatpush3.bf16.msra.mxu1 %v3734_v44 }
 0x427   :  { %3045 = vmatprep.subr.bf16.mxu1 %v3540_v0 }
 0x42a   :  { %3047 = vmatpush3.bf16.msra.mxu1 %v3738_v47 }
 0x42b   :  { %3048 = vmatprep.subr.bf16.mxu1 %v3540_v0 }
 0x42e   :  { %3050 = vmatpush3.bf16.msra.mxu1 %v3743_v52 }
 0x4e4   :  { %v645_v32 = vpop.f32.mrb[12].mxu1 }
 0x4e5   :  { %v3890_v33 = vadd.f32 %v645_v32, %v3791_v7  ;;  %v2377_v35 = vpop.f32.mrb[13].mxu1 }
 0x4e7   :  { %v650_v36 = vmax.f32 %v3890_v33, 0.0 }
 0x4e9   :  { %2411 = vmatmul.mubr.f32.vlgmr.msra.gmra.mrb[4].mxu0 %v650_v36 }
 0x4ea   :  { %3053 = vmatpush3.bf16.msra.mxu0 %v3714_v16  ;;  %2480 = vmatprep.mubr.msk.f32.mxu0 %vm3541_vm0, %v3542_v1  ;;  %v878_v16 = vld [vmem:[#allocation9] sm:$0xff] }
 0x4eb   :  { %3054 = vmatprep.subr.bf16.mxu0 %v3540_v0 }
 0x4ee   :  { %3056 = vmatpush3.bf16.msra.mxu0 %v3718_v22  ;;  %v879_v22 = vld [vmem:[#allocation9 + $0x8] sm:$0xff] }
 0x4ef   :  { %3057 = vmatprep.subr.bf16.mxu0 %v3540_v0 }
 0x4f2   :  { %3059 = vmatpush3.bf16.msra.mxu0 %v3722_v28  ;;  %v3075_v28 = vpack.c.bf16 %v879_v22, %v878_v16 }
 0x4f3   :  { %3060 = vmatprep.subr.bf16.mxu0 %v3540_v0 }
 0x4f4   :  { %3076 = vmatprep.subr.bf16.mxu1 %v3075_v28 }
 0x4f6   :  { %3062 = vmatpush3.bf16.msra.mxu0 %v3726_v34 }
 0x4f7   :  { %3063 = vmatprep.subr.bf16.mxu0 %v3540_v0 }
 0x4fa   :  { %3065 = vmatpush3.bf16.msra.mxu0 %v3730_v40 }
 0x4fb   :  { %3066 = vmatprep.subr.bf16.mxu0 %v3540_v0 }
 0x4fe   :  { %3068 = vmatpush3.bf16.msra.mxu0 %v3734_v44  ;;  %v883_v44 = vld [vmem:[#allocation9 + $0x28] sm:$0xff] }
 0x4ff   :  { %3069 = vmatprep.subr.bf16.mxu0 %v3540_v0  ;;  %v3083_v45 = vpack.c.bf16 %v883_v44, %v882_v43 }
 0x502   :  { %3071 = vmatpush3.bf16.msra.mxu0 %v3738_v47  ;;  %v885_v47 = vld [vmem:[#allocation9 + $0x38] sm:$0xff] }
 0x503   :  { %3072 = vmatprep.subr.bf16.mxu0 %v3540_v0  ;;  %v3087_v48 = vpack.c.bf16 %v885_v47, %v884_v46 }
 0x506   :  { %3074 = vmatpush3.bf16.msra.mxu0 %v3743_v52  ;;  %v888_v52 = vld [vmem:[#allocation9 + $0x50] sm:$0xff] }
 0x507   :  { %3107 = vmatprep.subr.bf16.mxu0 %v3540_v0  ;;  %v3095_v54 = vpack.c.bf16 %v889_v53, %v888_v52 }
 0x5bc   :  { %v720_v34 = vpop.f32.mrb[4].mxu0 }
 0x5bd   :  { %v724_v39 = vadd.f32 %v720_v34, %v3789_v5  ;;  %v2412_v40 = vpop.f32.mrb[5].mxu0  ;;  %v898_v5 = vld [vmem:[#allocation11 + $0x20] sm:$0xff] }
 0x5be   :  { %v3933_v7 = vpack.c.bf16 %v899_v6, %v898_v5 }
 0x5bf   :  { %v725_v41 = vmax.f32 %v724_v39, 0.0 }
 0x5c1   :  { %2446 = vmatmul.mubr.f32.vlgmr.msra.gmra.mrb[14].mxu1 %v725_v41 }
 0x5c2   :  { %3078 = vmatpush3.bf16.msra.mxu1 %v3075_v28  ;;  %2515 = vmatprep.mubr.f32.mxu1 %v350_v17  ;;  %v904_v17 = vld [vmem:[#allocation11 + $0x50] sm:$0xff] }
 0x5c3   :  { %3080 = vmatprep.subr.bf16.mxu1 %v3079_v42  ;;  %v3945_v19 = vpack.c.bf16 %v905_v18, %v904_v17  ;;  %v1645_v17 = vld [vmem:[#allocation12 + $0x28] sm:$0xff]  ;;  %v1646_v18 = vld [vmem:[#allocation12 + $0x30] sm:$0xff] }
 0x5c6   :  { %3082 = vmatpush3.bf16.msra.mxu1 %v3079_v42 }
 0x5c7   :  { %3084 = vmatprep.subr.bf16.mxu1 %v3083_v45 }
 0x5ca   :  { %3086 = vmatpush3.bf16.msra.mxu1 %v3083_v45 }
 0x5cb   :  { %3088 = vmatprep.subr.bf16.mxu1 %v3087_v48 }
 0x5ce   :  { %3090 = vmatpush3.bf16.msra.mxu1 %v3087_v48 }
 0x5cf   :  { %3092 = vmatprep.subr.bf16.mxu1 %v3091_v51 }
 0x5d2   :  { %3094 = vmatpush3.bf16.msra.mxu1 %v3091_v51 }
 0x5d3   :  { %3096 = vmatprep.subr.bf16.mxu1 %v3095_v54 }
 0x5d6   :  { %3098 = vmatpush3.bf16.msra.mxu1 %v3095_v54 }
 0x5d7   :  { %3100 = vmatprep.subr.bf16.mxu1 %v3099_v57 }
 0x5da   :  { %3102 = vmatpush3.bf16.msra.mxu1 %v3099_v57 }
 0x5db   :  { %3104 = vmatprep.subr.bf16.mxu1 %v3103_v60 }
 0x5de   :  { %3106 = vmatpush3.bf16.msra.mxu1 %v3103_v60 }
 0x5df   :  { %3131 = vmatprep.subr.bf16.mxu1 %v3540_v0 }
 0x5e1   :  { %2516 = vmatmul.mubr.f32.vlgmr.msra.gmra.mrb[16].mxu1 %v425_v21  ;;  %v907_v21 = vld [vmem:[#allocation11 + $0x68] sm:$0xff] }
 0x5e2   :  { %2518 = vmatprep.mubr.f32.mxu1 %v500_v26  ;;  %3133 = vmatpush3.bf16.msra.mxu1 %v3925_v63  ;;  %v3949_v23 = vpack.c.bf16 %v907_v21, %v906_v20  ;;  %v3953_v26 = vpack.c.bf16 %v909_v25, %v908_v24  ;;  %v1648_v21 = vld [vmem:[#allocation12 + $0x40] sm:$0xff]  ;;  %v1650_v25 = vld [vmem:[#allocation12 + $0x50] sm:$0xff] }
 0x5e3   :  { %3134 = vmatprep.subr.bf16.mxu1 %v3540_v0 }
 0x5e5   :  { %2519 = vmatmul.mubr.f32.gmra.mrb[18].mxu1 %v575_v31 }
 0x5e6   :  { %2521 = vmatprep.mubr.f32.mxu1 %v650_v36  ;;  %3136 = vmatpush3.bf16.msra.mxu1 %v3929_v4 }
 0x5e7   :  { %3137 = vmatprep.subr.bf16.mxu1 %v3540_v0 }
 0x5e9   :  { %2522 = vmatmul.mubr.f32.gmra.mrb[20].mxu1 %v725_v41 }
 0x5ea   :  { %3139 = vmatpush3.bf16.msra.mxu1 %v3933_v7 }
 0x5eb   :  { %3140 = vmatprep.subr.bf16.mxu1 %v3540_v0 }
 0x5ee   :  { %3142 = vmatpush3.bf16.msra.mxu1 %v3937_v12 }
 0x5ef   :  { %3143 = vmatprep.subr.bf16.mxu1 %v3540_v0 }
 0x5f2   :  { %3145 = vmatpush3.bf16.msra.mxu1 %v3941_v15 }
 0x5f3   :  { %3146 = vmatprep.subr.bf16.mxu1 %v3540_v0 }
 0x5f6   :  { %3148 = vmatpush3.bf16.msra.mxu1 %v3945_v19 }
 0x5f7   :  { %3149 = vmatprep.subr.bf16.mxu1 %v3540_v0 }
 0x5fa   :  { %3151 = vmatpush3.bf16.msra.mxu1 %v3949_v23 }
 0x5fb   :  { %3152 = vmatprep.subr.bf16.mxu1 %v3540_v0 }
 0x5fe   :  { %3154 = vmatpush3.bf16.msra.mxu1 %v3953_v26 }
 0x5ff   :  { %3179 = vmatprep.subr.bf16.mxu1 %v3540_v0 }
 0x694   :  { %v795_v27 = vpop.f32.mrb[14].mxu1 }
 0x695   :  { %v799_v29 = vadd.f32 %v795_v27, %v3795_v11  ;;  %v2447_v30 = vpop.f32.mrb[15].mxu1 }
 0x696   :  { %v1653_v30 = vld [vmem:[#allocation12 + $0x68] sm:$0xff] }
 0x697   :  { %v800_v31 = vmax.f32 %v799_v29, 0.0  ;;  %v1652_v29 = vld [vmem:[#allocation12 + $0x60] sm:$0xff] }
 0x699   :  { %2481 = vmatmul.mubr.f32.vlgmr.msra.gmra.mrb[6].mxu0 %v800_v31  ;;  %2524 = vmatprep.mubr.f32.mxu1 %v800_v31  ;;  %v3323_v31 = vpack.c.bf16 %v1653_v30, %v1652_v29 }
 0x69a   :  { %3109 = vmatpush3.bf16.msra.mxu0 %v3925_v63  ;;  %2559 = vmatprep.mubr.msk.f32.mxu0 %vm3541_vm0, %v3542_v1 }
 0x69b   :  { %3110 = vmatprep.subr.bf16.mxu0 %v3540_v0 }
 0x69e   :  { %3112 = vmatpush3.bf16.msra.mxu0 %v3929_v4 }
 0x69f   :  { %3113 = vmatprep.subr.bf16.mxu0 %v3540_v0 }
 0x6a2   :  { %3115 = vmatpush3.bf16.msra.mxu0 %v3933_v7 }
 0x6a3   :  { %3116 = vmatprep.subr.bf16.mxu0 %v3540_v0 }
 0x6a6   :  { %3118 = vmatpush3.bf16.msra.mxu0 %v3937_v12 }
 0x6a7   :  { %3119 = vmatprep.subr.bf16.mxu0 %v3540_v0 }
 0x6aa   :  { %3121 = vmatpush3.bf16.msra.mxu0 %v3941_v15 }
 0x6ab   :  { %3122 = vmatprep.subr.bf16.mxu0 %v3540_v0 }
 0x6ae   :  { %3124 = vmatpush3.bf16.msra.mxu0 %v3945_v19 }
 0x6af   :  { %3125 = vmatprep.subr.bf16.mxu0 %v3540_v0 }
 0x6b2   :  { %3127 = vmatpush3.bf16.msra.mxu0 %v3949_v23 }
 0x6b3   :  { %3128 = vmatprep.subr.bf16.mxu0 %v3540_v0 }
 0x6b4   :  { %v2517_v11 = vpop.f32.mrb[16].mxu1 }
 0x6b5   :  { %v991_v32 = vpop.f32.mrb[17].mxu1  ;;  %v997_v45 = vadd.f32 %v2517_v11, %v4009_v38  ;;  %v1654_v11 = vld [vmem:[#allocation12 + $0x70] sm:$0xff] }
 0x6b6   :  { %3130 = vmatpush3.bf16.msra.mxu0 %v3953_v26  ;;  %v992_v39 = vadd.f32 %v4009_v38, %v991_v32  ;;  %v1655_v32 = vld [vmem:[#allocation12 + $0x78] sm:$0xff] }
 0x6b7   :  { %3155 = vmatprep.subr.bf16.mxu0 %v3540_v0 }
 0x6b8   :  { %v3976_v33 = vpop.f32.mrb[18].mxu1 }
 0x6b9   :  { %v3978_v35 = vpop.f32.mrb[19].mxu1  ;;  %2560 = vmatmul.mubr.f32.vlgmr.msra.gmra.mrb[8].mxu0 %v3542_v1  ;;  %v1007_v55 = vadd.f32 %v3976_v33, %v4009_v38  ;;  %v3327_v33 = vpack.c.bf16 %v1655_v32, %v1654_v11 }
 0x6ba   :  { %3157 = vmatpush3.bf16.msra.mxu0 %v3925_v63  ;;  %2629 = vmatprep.mubr.msk.f32.mxu0 %vm3541_vm0, %v3542_v1  ;;  %v1002_v50 = vadd.f32 %v4009_v38, %v3978_v35 }
 0x6bb   :  { %3158 = vmatprep.subr.bf16.mxu0 %v3540_v0 }
 0x6bc   :  { %v3985_v36 = vpop.f32.mrb[20].mxu1 }
 0x6bd   :  { %v3987_v16 = vpop.f32.mrb[21].mxu1  ;;  %v1017_v5 = vadd.f32 %v3985_v36, %v4009_v38 }
 0x6be   :  { %3160 = vmatpush3.bf16.msra.mxu0 %v3929_v4  ;;  %v1012_v60 = vadd.f32 %v4009_v38, %v3987_v16 }
 0x6bf   :  { %3161 = vmatprep.subr.bf16.mxu0 %v3540_v0 }
 0x6c2   :  { %3163 = vmatpush3.bf16.msra.mxu0 %v3933_v7 }
 0x6c3   :  { %3164 = vmatprep.subr.bf16.mxu0 %v3540_v0 }
 0x6c6   :  { %3166 = vmatpush3.bf16.msra.mxu0 %v3937_v12 }
 0x6c7   :  { %3167 = vmatprep.subr.bf16.mxu0 %v3540_v0 }
 0x6ca   :  { %3169 = vmatpush3.bf16.msra.mxu0 %v3941_v15 }
 0x6cb   :  { %3170 = vmatprep.subr.bf16.mxu0 %v3540_v0 }
 0x6ce   :  { %3172 = vmatpush3.bf16.msra.mxu0 %v3945_v19 }
 0x6cf   :  { %3173 = vmatprep.subr.bf16.mxu0 %v3540_v0 }
 0x6d2   :  { %3175 = vmatpush3.bf16.msra.mxu0 %v3949_v23 }
 0x6d3   :  { %3176 = vmatprep.subr.bf16.mxu0 %v3540_v0 }
 0x6d6   :  { %3178 = vmatpush3.bf16.msra.mxu0 %v3953_v26 }
 0x6d7   :  { %3203 = vmatprep.subr.bf16.mxu0 %v3540_v0 }
 0x76c   :  { %v870_v22 = vpop.f32.mrb[6].mxu0 }
 0x76d   :  { %v874_v28 = vadd.f32 %v870_v22, %v3793_v9  ;;  %v2482_v34 = vpop.f32.mrb[7].mxu0 }
 0x76e   :  { %v1814_v34 = vld [vmem:[%s4193_s8] ss:$0 sm:$0xff]  ;;  %s3543_s8 = smov [#allocation15]  }
 0x76f   :  { %v875_v37 = vmax.f32 %v874_v28, 0.0  ;;  %s1793_s29 = sshll.u32 %s3543_s8, 4  ;;  %s1794_s29 = int_to_ptr.vmem [resolvable:$true] %s1793_s29 }
 0x770   :  { %s3476_s30 = scalar_lea.vmem %s1794_s29, 256  ;;  %p3481_p7 = scmp.lt.s32.totalorder %s1794_s29, %s1794_s29 }
 0x771   :  { %877 = vst [vmem:[#allocation15] sm:$0xff] %v875_v37  ;;  %2525 = vmatmul.mubr.f32.gmra.mrb[22].mxu1 %v875_v37  ;;  %p3477_p6 = scmp.ne.s32.totalorder %s1794_s29, %s3476_s30  ;;  %p3482_p8 = scmp.lt.s32.totalorder %s3476_s30, %s3476_s30 }
 0x772   :  { %2594 = vmatprep.mubr.msk.f32.mxu1 %vm3541_vm0, %v3542_v1 }
 0x773   :  { %p3483_p9 = por %p3482_p8, %p3481_p7 }
 0x775   :  { %p3484_p10 = pnand %p3483_p9, %p3477_p6 }
 0x78c   :  { %v1105_v40 = vpop.f32.mrb[8].mxu0 }
 0x78d   :  { %v4012_v41 = vadd.f32 %v1105_v40, %v992_v39  ;;  %v2561_v42 = vpop.f32.mrb[9].mxu0 }
 0x78f   :  { %v1110_v9 = vmax.f32 %v4012_v41, 0.0 }
 0x791   :  { %2595 = vmatmul.mubr.f32.vlgmr.msra.gmra.mrb[24].mxu1 %v1110_v9 }
 0x792   :  { %3181 = vmatpush3.bf16.msra.mxu1 %v3925_v63  ;;  %2664 = vmatprep.mubr.msk.f32.mxu1 %vm3541_vm0, %v3542_v1 }
 0x793   :  { %3182 = vmatprep.subr.bf16.mxu1 %v3540_v0 }
 0x796   :  { %3184 = vmatpush3.bf16.msra.mxu1 %v3929_v4 }
 0x797   :  { %3185 = vmatprep.subr.bf16.mxu1 %v3540_v0 }
 0x79a   :  { %3187 = vmatpush3.bf16.msra.mxu1 %v3933_v7 }
 0x79b   :  { %3188 = vmatprep.subr.bf16.mxu1 %v3540_v0 }
 0x79e   :  { %3190 = vmatpush3.bf16.msra.mxu1 %v3937_v12 }
 0x79f   :  { %3191 = vmatprep.subr.bf16.mxu1 %v3540_v0 }
 0x7a2   :  { %3193 = vmatpush3.bf16.msra.mxu1 %v3941_v15 }
 0x7a3   :  { %3194 = vmatprep.subr.bf16.mxu1 %v3540_v0 }
 0x7a6   :  { %3196 = vmatpush3.bf16.msra.mxu1 %v3945_v19 }
 0x7a7   :  { %3197 = vmatprep.subr.bf16.mxu1 %v3540_v0 }
 0x7aa   :  { %3199 = vmatpush3.bf16.msra.mxu1 %v3949_v23 }
 0x7ab   :  { %3200 = vmatprep.subr.bf16.mxu1 %v3540_v0 }
 0x7ae   :  { %3202 = vmatpush3.bf16.msra.mxu1 %v3953_v26 }
 0x7af   :  { %3227 = vmatprep.subr.bf16.mxu1 %v3540_v0 }
 0x844   :  { %v4035_v43 = vpop.f32.mrb[22].mxu1 }
 0x845   :  { %v4037_v44 = vpop.f32.mrb[23].mxu1 }
 0x846   :  { %v1022_v35 = vadd.f32 %v4009_v38, %v4037_v44 }
 0x864   :  { %v1179_v46 = vpop.f32.mrb[24].mxu1 }
 0x865   :  { %v4040_v47 = vadd.f32 %v1179_v46, %v997_v45  ;;  %v2596_v48 = vpop.f32.mrb[25].mxu1 }
 0x867   :  { %v1184_v49 = vmax.f32 %v4040_v47, 0.0 }
 0x869   :  { %2630 = vmatmul.mubr.f32.vlgmr.msra.gmra.mrb[10].mxu0 %v1184_v49 }
 0x86a   :  { %3205 = vmatpush3.bf16.msra.mxu0 %v3925_v63  ;;  %2699 = vmatprep.mubr.msk.f32.mxu0 %vm3541_vm0, %v3542_v1 }
 0x86b   :  { %3206 = vmatprep.subr.bf16.mxu0 %v3540_v0 }
 0x86e   :  { %3208 = vmatpush3.bf16.msra.mxu0 %v3929_v4 }
 0x86f   :  { %3209 = vmatprep.subr.bf16.mxu0 %v3540_v0 }
 0x872   :  { %3211 = vmatpush3.bf16.msra.mxu0 %v3933_v7 }
 0x873   :  { %3212 = vmatprep.subr.bf16.mxu0 %v3540_v0 }
 0x876   :  { %3214 = vmatpush3.bf16.msra.mxu0 %v3937_v12 }
 0x877   :  { %3215 = vmatprep.subr.bf16.mxu0 %v3540_v0 }
 0x87a   :  { %3217 = vmatpush3.bf16.msra.mxu0 %v3941_v15 }
 0x87b   :  { %3218 = vmatprep.subr.bf16.mxu0 %v3540_v0 }
 0x87e   :  { %3220 = vmatpush3.bf16.msra.mxu0 %v3945_v19 }
 0x87f   :  { %3221 = vmatprep.subr.bf16.mxu0 %v3540_v0 }
 0x882   :  { %3223 = vmatpush3.bf16.msra.mxu0 %v3949_v23 }
 0x883   :  { %3224 = vmatprep.subr.bf16.mxu0 %v3540_v0 }
 0x886   :  { %3226 = vmatpush3.bf16.msra.mxu0 %v3953_v26 }
 0x887   :  { %3251 = vmatprep.subr.bf16.mxu0 %v3540_v0 }
 0x93c   :  { %v1253_v51 = vpop.f32.mrb[10].mxu0 }
 0x93d   :  { %v4065_v52 = vadd.f32 %v1253_v51, %v1002_v50  ;;  %v2631_v53 = vpop.f32.mrb[11].mxu0  ;;  %v1027_v50 = vadd.f32 %v4035_v43, %v4009_v38 }
 0x93f   :  { %v1258_v54 = vmax.f32 %v4065_v52, 0.0 }
 0x941   :  { %2665 = vmatmul.mubr.f32.vlgmr.msra.gmra.mrb[26].mxu1 %v1258_v54 }
 0x942   :  { %3229 = vmatpush3.bf16.msra.mxu1 %v3925_v63  ;;  %2734 = vmatprep.mubr.msk.f32.mxu1 %vm3541_vm0, %v3542_v1 }
 0x943   :  { %3230 = vmatprep.subr.bf16.mxu1 %v3540_v0 }
 0x946   :  { %3232 = vmatpush3.bf16.msra.mxu1 %v3929_v4 }
 0x947   :  { %3233 = vmatprep.subr.bf16.mxu1 %v3540_v0 }
 0x94a   :  { %3235 = vmatpush3.bf16.msra.mxu1 %v3933_v7 }
 0x94b   :  { %3236 = vmatprep.subr.bf16.mxu1 %v3540_v0 }
 0x94e   :  { %3238 = vmatpush3.bf16.msra.mxu1 %v3937_v12 }
 0x94f   :  { %3239 = vmatprep.subr.bf16.mxu1 %v3540_v0 }
 0x952   :  { %3241 = vmatpush3.bf16.msra.mxu1 %v3941_v15 }
 0x953   :  { %3242 = vmatprep.subr.bf16.mxu1 %v3540_v0 }
 0x956   :  { %3244 = vmatpush3.bf16.msra.mxu1 %v3945_v19 }
 0x957   :  { %3245 = vmatprep.subr.bf16.mxu1 %v3540_v0 }
 0x95a   :  { %3247 = vmatpush3.bf16.msra.mxu1 %v3949_v23 }
 0x95b   :  { %3248 = vmatprep.subr.bf16.mxu1 %v3540_v0 }
 0x95e   :  { %3250 = vmatpush3.bf16.msra.mxu1 %v3953_v26 }
 0x95f   :  { %3275 = vmatprep.subr.bf16.mxu1 %v3540_v0 }
 0xa14   :  { %v1327_v56 = vpop.f32.mrb[26].mxu1 }
 0xa15   :  { %v4090_v57 = vadd.f32 %v1327_v56, %v1007_v55  ;;  %v2666_v58 = vpop.f32.mrb[27].mxu1 }
 0xa17   :  { %v1332_v59 = vmax.f32 %v4090_v57, 0.0 }
 0xa19   :  { %2700 = vmatmul.mubr.f32.vlgmr.msra.gmra.mrb[12].mxu0 %v1332_v59 }
 0xa1a   :  { %3253 = vmatpush3.bf16.msra.mxu0 %v3925_v63  ;;  %2769 = vmatprep.mubr.msk.f32.mxu0 %vm3541_vm0, %v3542_v1 }
 0xa1b   :  { %3254 = vmatprep.subr.bf16.mxu0 %v3540_v0 }
 0xa1e   :  { %3256 = vmatpush3.bf16.msra.mxu0 %v3929_v4 }
 0xa1f   :  { %3257 = vmatprep.subr.bf16.mxu0 %v3540_v0 }
 0xa22   :  { %3259 = vmatpush3.bf16.msra.mxu0 %v3933_v7 }
 0xa23   :  { %3260 = vmatprep.subr.bf16.mxu0 %v3540_v0 }
 0xa26   :  { %3262 = vmatpush3.bf16.msra.mxu0 %v3937_v12 }
 0xa27   :  { %3263 = vmatprep.subr.bf16.mxu0 %v3540_v0 }
 0xa2a   :  { %3265 = vmatpush3.bf16.msra.mxu0 %v3941_v15 }
 0xa2b   :  { %3266 = vmatprep.subr.bf16.mxu0 %v3540_v0 }
 0xa2e   :  { %3268 = vmatpush3.bf16.msra.mxu0 %v3945_v19 }
 0xa2f   :  { %3269 = vmatprep.subr.bf16.mxu0 %v3540_v0 }
 0xa32   :  { %3271 = vmatpush3.bf16.msra.mxu0 %v3949_v23 }
 0xa33   :  { %3272 = vmatprep.subr.bf16.mxu0 %v3540_v0 }
 0xa36   :  { %3274 = vmatpush3.bf16.msra.mxu0 %v3953_v26 }
 0xaec   :  { %v1401_v61 = vpop.f32.mrb[12].mxu0 }
 0xaed   :  { %v4114_v62 = vadd.f32 %v1401_v61, %v1012_v60  ;;  %v2701_v2 = vpop.f32.mrb[13].mxu0 }
 0xaef   :  { %v1406_v3 = vmax.f32 %v4114_v62, 0.0 }
 0xaf1   :  { %2735 = vmatmul.mubr.f32.vlgmr.msra.gmra.mrb[28].mxu1 %v1406_v3 }
 0xaf2   :  { %3277 = vmatpush3.bf16.msra.mxu1 %v3925_v63  ;;  %2804 = vmatprep.mubr.msk.f32.mxu1 %vm3541_vm0, %v3542_v1  ;;  %v1640_v1 = vld [vmem:[#allocation12] sm:$0xff]  ;;  %v1641_v63 = vld [vmem:[#allocation12 + $0x8] sm:$0xff] }
 0xaf3   :  { %3278 = vmatprep.subr.bf16.mxu1 %v3540_v0 }
 0xaf6   :  { %3280 = vmatpush3.bf16.msra.mxu1 %v3929_v4  ;;  %v3299_v4 = vpack.c.bf16 %v1641_v63, %v1640_v1 }
 0xaf7   :  { %3281 = vmatprep.subr.bf16.mxu1 %v3540_v0 }
 0xaf8   :  { %3300 = vmatprep.subr.bf16.mxu0 %v3299_v4 }
 0xafa   :  { %3283 = vmatpush3.bf16.msra.mxu1 %v3933_v7  ;;  %v1642_v7 = vld [vmem:[#allocation12 + $0x10] sm:$0xff] }
 0xafb   :  { %3284 = vmatprep.subr.bf16.mxu1 %v3540_v0  ;;  %v3303_v14 = vpack.c.bf16 %v1643_v8, %v1642_v7 }
 0xafe   :  { %3286 = vmatpush3.bf16.msra.mxu1 %v3937_v12 }
 0xaff   :  { %3287 = vmatprep.subr.bf16.mxu1 %v3540_v0 }
 0xb02   :  { %3289 = vmatpush3.bf16.msra.mxu1 %v3941_v15  ;;  %v1644_v15 = vld [vmem:[#allocation12 + $0x20] sm:$0xff] }
 0xb03   :  { %3290 = vmatprep.subr.bf16.mxu1 %v3540_v0 }
 0xb06   :  { %3292 = vmatpush3.bf16.msra.mxu1 %v3945_v19  ;;  %v1647_v19 = vld [vmem:[#allocation12 + $0x38] sm:$0xff] }
 0xb07   :  { %3293 = vmatprep.subr.bf16.mxu1 %v3540_v0  ;;  %v3311_v20 = vpack.c.bf16 %v1647_v19, %v1646_v18 }
 0xb0a   :  { %3295 = vmatpush3.bf16.msra.mxu1 %v3949_v23  ;;  %v1649_v23 = vld [vmem:[#allocation12 + $0x48] sm:$0xff] }
 0xb0b   :  { %3296 = vmatprep.subr.bf16.mxu1 %v3540_v0  ;;  %v3307_v0 = vpack.c.bf16 %v1645_v17, %v1644_v15  ;;  %v3315_v24 = vpack.c.bf16 %v1649_v23, %v1648_v21 }
 0xb0e   :  { %3298 = vmatpush3.bf16.msra.mxu1 %v3953_v26  ;;  %v1651_v26 = vld [vmem:[#allocation12 + $0x58] sm:$0xff] }
 0xb0f   :  { %v3319_v27 = vpack.c.bf16 %v1651_v26, %v1650_v25 }
 0xbc4   :  { %v1475_v6 = vpop.f32.mrb[28].mxu1 }
 0xbc5   :  { %v1479_v10 = vadd.f32 %v1475_v6, %v1017_v5  ;;  %v2736_v12 = vpop.f32.mrb[29].mxu1 }
 0xbc7   :  { %v1480_v13 = vmax.f32 %v1479_v10, 0.0 }
 0xbc9   :  { %2770 = vmatmul.mubr.f32.vlgmr.msra.gmra.mrb[14].mxu0 %v1480_v13 }
 0xbca   :  { %3302 = vmatpush3.bf16.msra.mxu0 %v3299_v4  ;;  %2839 = vmatprep.mubr.f32.mxu0 %v1110_v9 }
 0xbcb   :  { %3304 = vmatprep.subr.bf16.mxu0 %v3303_v14 }
 0xbce   :  { %3306 = vmatpush3.bf16.msra.mxu0 %v3303_v14 }
 0xbcf   :  { %3308 = vmatprep.subr.bf16.mxu0 %v3307_v0 }
 0xbd2   :  { %3310 = vmatpush3.bf16.msra.mxu0 %v3307_v0 }
 0xbd3   :  { %3312 = vmatprep.subr.bf16.mxu0 %v3311_v20 }
 0xbd6   :  { %3314 = vmatpush3.bf16.msra.mxu0 %v3311_v20 }
 0xbd7   :  { %3316 = vmatprep.subr.bf16.mxu0 %v3315_v24 }
 0xbda   :  { %3318 = vmatpush3.bf16.msra.mxu0 %v3315_v24 }
 0xbdb   :  { %3320 = vmatprep.subr.bf16.mxu0 %v3319_v27 }
 0xbde   :  { %3322 = vmatpush3.bf16.msra.mxu0 %v3319_v27 }
 0xbdf   :  { %3324 = vmatprep.subr.bf16.mxu0 %v3323_v31 }
 0xbe2   :  { %3326 = vmatpush3.bf16.msra.mxu0 %v3323_v31 }
 0xbe3   :  { %3328 = vmatprep.subr.bf16.mxu0 %v3327_v33 }
 0xbe6   :  { %3330 = vmatpush3.bf16.msra.mxu0 %v3327_v33 }
 0xbe9   :  { %2840 = vmatmul.mubr.f32.vlgmr.msra.gmra.mrb[16].mxu0 %v1184_v49 }
 0xbea   :  { %2842 = vmatprep.mubr.f32.mxu0 %v1258_v54 }
 0xbed   :  { %2843 = vmatmul.mubr.f32.gmra.mrb[18].mxu0 %v1332_v59 }
 0xbee   :  { %2845 = vmatprep.mubr.f32.mxu0 %v1406_v3 }
 0xbf1   :  { %2846 = vmatmul.mubr.f32.gmra.mrb[20].mxu0 %v1480_v13 }
 0xc9c   :  { %v1549_v36 = vpop.f32.mrb[14].mxu0 }
 0xc9d   :  { %v1553_v16 = vadd.f32 %v1549_v36, %v1022_v35  ;;  %v2771_v22 = vpop.f32.mrb[15].mxu0 }
 0xc9f   :  { %v1554_v28 = vmax.f32 %v1553_v16, 0.0 }
 0xca1   :  { %2805 = vmatmul.mubr.f32.vlgmr.msra.gmra.mrb[30].mxu1 %v1554_v28  ;;  %2848 = vmatprep.mubr.f32.mxu0 %v1554_v28 }
 0xcbc   :  { %v2841_v37 = vpop.f32.mrb[16].mxu0 }
 0xcbd   :  { %v1735_v39 = vadd.f32 %v2841_v37, %v1814_v34  ;;  %v1729_v40 = vpop.f32.mrb[17].mxu0 }
 0xcbe   :  { %v1730_v41 = vadd.f32 %v1814_v34, %v1729_v40 }
 0xcbf   :  { %1769 = vst [vmem:[#allocation14 + $0x8] sm:$0xff] %v1735_v39 }
 0xcc0   :  { %1768 = vst [vmem:[#allocation14] sm:$0xff] %v1730_v41  ;;  %v2844_v42 = vpop.f32.mrb[18].mxu0 }
 0xcc1   :  { %v1745_v9 = vadd.f32 %v2844_v42, %v1814_v34  ;;  %v1739_v45 = vpop.f32.mrb[19].mxu0 }
 0xcc2   :  { %v1740_v44 = vadd.f32 %v1814_v34, %v1739_v45 }
 0xcc3   :  { %1771 = vst [vmem:[#allocation14 + $0x18] sm:$0xff] %v1745_v9 }
 0xcc4   :  { %1770 = vst [vmem:[#allocation14 + $0x10] sm:$0xff] %v1740_v44  ;;  %v2847_v46 = vpop.f32.mrb[20].mxu0 }
 0xcc5   :  { %v1755_v47 = vadd.f32 %v2847_v46, %v1814_v34  ;;  %v1749_v48 = vpop.f32.mrb[21].mxu0 }
 0xcc6   :  { %v1750_v49 = vadd.f32 %v1814_v34, %v1749_v48 }
 0xcc7   :  { %1773 = vst [vmem:[#allocation14 + $0x28] sm:$0xff] %v1755_v47 }
 0xcc8   :  { %1772 = vst [vmem:[#allocation14 + $0x20] sm:$0xff] %v1750_v49 }
 0xd74   :  { %v1623_v51 = vpop.f32.mrb[30].mxu1 }
 0xd75   :  { %v1627_v52 = vadd.f32 %v1623_v51, %v1027_v50  ;;  %v2806_v53 = vpop.f32.mrb[31].mxu1 }
 0xd77   :  { %v1628_v54 = vmax.f32 %v1627_v52, 0.0 }
 0xd79   :  { %1631 = vst [vmem:[#allocation15 + $0x8] sm:$0xff] %v1628_v54  ;;  %2849 = vmatmul.mubr.f32.gmra.mrb[22].mxu0 %v1628_v54 }
 0xd7a   :  { %3487 = shalt.err (!%p3484_p10)
}
 0xd7b   :  { %s3488_s16 = scalar_lea.hbm %s4195_s10, 256 }
 0xd7c   :  { %p3489_p11 = scmp.ne.s32.totalorder %s4195_s10, %s3488_s16  ;;  %p3492_p12 = scmp.lt.u32.totalorder %s3488_s16, %s4195_s10 }
 0xd7e   :  { %p3494_p13 = pnand %p3492_p12, %p3489_p11 }
 0xd80   :  { %3497 = shalt.err (!%p3494_p13)
}
 0xd81   :  { %1799 = dma.vmem_to_hbm [thread:$0]  %s1794_s29, 256, %s4195_s10, [#allocation16], %s3534_s25, %s3534_s25, %s3535_s26  }
 0xd82   :  { %s3544_s18 = smov [#allocation14]  }
 0xd83   :  { %s1781_s1 = sshll.u32 %s3544_s18, 4  ;;  %s1782_s1 = int_to_ptr.vmem [resolvable:$true] %s1781_s1 }
 0xd84   :  { %s3498_s14 = scalar_lea.vmem %s1782_s1, 1024  ;;  %p3503_p1 = scmp.lt.s32.totalorder %s1782_s1, %s1782_s1 }
 0xd85   :  { %p3499_p0 = scmp.ne.s32.totalorder %s1782_s1, %s3498_s14  ;;  %p3504_p2 = scmp.lt.s32.totalorder %s3498_s14, %s3498_s14 }
 0xd87   :  { %p3505_p3 = por %p3504_p2, %p3503_p1 }
 0xd89   :  { %p3506_p4 = pnand %p3505_p3, %p3499_p0 }
 0xe4c   :  { %v2850_v38 = vpop.f32.mrb[22].mxu0 }
 0xe4d   :  { %v1765_v43 = vadd.f32 %v2850_v38, %v1814_v34  ;;  %v1759_v55 = vpop.f32.mrb[23].mxu0 }
 0xe4e   :  { %v1760_v56 = vadd.f32 %v1814_v34, %v1759_v55 }
 0xe4f   :  { %1775 = vst [vmem:[#allocation14 + $0x38] sm:$0xff] %v1765_v43 }
 0xe50   :  { %1774 = vst [vmem:[#allocation14 + $0x30] sm:$0xff] %v1760_v56 }
 0xe51   :  { %3509 = shalt.err (!%p3506_p4)
}
 0xe52   :  { %s3510_s10 = scalar_lea.hbm %s4194_s9, 1024 }
 0xe53   :  { %p3511_p5 = scmp.ne.s32.totalorder %s4194_s9, %s3510_s10  ;;  %p3514_p6 = scmp.lt.u32.totalorder %s3510_s10, %s4194_s9 }
 0xe55   :  { %p3516_p7 = pnand %p3514_p6, %p3511_p5 }
 0xe57   :  { %3519 = shalt.err (!%p3516_p7)
}
 0xe58   :  { %1787 = dma.vmem_to_hbm [thread:$0]  %s1782_s1, 1024, %s4194_s9, [#allocation5], %s3534_s25, %s3534_s25, %s3535_s26  }
 0xe59   :  { %3528 = dma.done.wait [#allocation5], 1024  }
 0xe5a   :  { %3529 = vsyncadd [#allocation5], 4294966272 }
 0xe5b   :  { %3530 = dma.done.wait [#allocation16], 256  }
 0xe5c   :  { %3531 = vsyncadd [#allocation16], 4294967040 }
 0xe5d   :  { %1806 = vsyncpa [#allocation4], 1 }
 0xe5e   :  { %1807 = vsyncpa [#allocation7], 1 }
 0xe5f   :  { %1808 = vsyncpa [#allocation10], 1 }
 0xe60   :  { %1809 = vsyncpa [#allocation13], 1 }
 0xe61   :  { %1810 = vsyncpa [#allocation5], 1 }
 0xe62   :  { %1811 = vsyncpa [#allocation16], 1 }

// kernel: tpu_custom_call.1
= control target key start
LH: loop header
LB: loop body
LE: loop exit
PB: predicated region body
PF: predicated region fallthrough
CT: control target
= control target key end

     0   :  { %16 = vsyncpa [#allocation4], 0  ;;  %s4185_s0 = inlined_call_operand.hbm [shape: f32[8,8,128], index: 0, kind: input, shape index: {}]   ;;  %s4186_s1 = inlined_call_operand.hbm [shape: f32[128,128], index: 1, kind: input, shape index: {}]   ;;  %s4187_s2 = inlined_call_operand.hbm [shape: f32[128,128], index: 2, kind: input, shape index: {}]   ;;  %s4188_s3 = inlined_call_operand.vmem [shape: f32[1,128], index: 3, kind: input, shape index: {}]   ;;  %s4189_s4 = inlined_call_operand.hbm [shape: f32[128,128], index: 4, kind: input, shape index: {}]   ;;  %s4190_s5 = inlined_call_operand.hbm [shape: f32[128,128], index: 5, kind: input, shape index: {}]   ;;  %s4191_s6 = inlined_call_operand.vmem [shape: f32[1,128], index: 6, kind: input, shape index: {}]   ;;  %s4192_s7 = inlined_call_operand.hbm [shape: f32[128,128], index: 7, kind: input, shape index: {}]   ;;  %s4193_s8 = inlined_call_operand.vmem [shape: f32[1,128], index: 8, kind: input, shape index: {}]   ;;  %s4194_s9 = inlined_call_operand.hbm [shape: f32[8,8,128], index: 9, kind: output, shape index: {0}]   ;;  %s4195_s10 = inlined_call_operand.hbm [shape: f32[2,8,128], index: 10, kind: output, shape index: {1}]  }
   0x1   :  { %17 = vsyncpa [#allocation7], 0 }
   0x2   :  { %18 = vsyncpa [#allocation10], 0 }
   0x3   :  { %19 = vsyncpa [#allocation13], 0 }
   0x4   :  { %20 = vsyncpa [#allocation5], 0 }
   0x5   :  { %21 = vsyncpa [#allocation16], 0  ;;  %s3532_s13 = smov [#allocation6]   ;;  %s3533_s15 = smov [#allocation9]  }
   0x6   :  { %s39_s14 = sshll.u32 %s3532_s13, 4  ;;  %s65_s16 = sshll.u32 %s3533_s15, 4  ;;  %s40_s14 = int_to_ptr.vmem [resolvable:$true] %s39_s14  ;;  %s3600_s16 = int_to_ptr.vmem [resolvable:$true] %s65_s16 }
   0x7   :  { %s3344_s19 = scalar_lea.hbm %s4186_s1, 2048 }
   0x8   :  { %p3345_p0 = scmp.ne.s32.totalorder %s4186_s1, %s3344_s19  ;;  %p3348_p1 = scmp.lt.u32.totalorder %s3344_s19, %s4186_s1 }
   0xa   :  { %p3350_p2 = pnand %p3348_p1, %p3345_p0 }
   0xc   :  { %3353 = shalt.err (!%p3350_p2)
}
   0xd   :  { %s3354_s24 = scalar_lea.vmem %s40_s14, 2048  ;;  %p3359_p4 = scmp.lt.s32.totalorder %s40_s14, %s40_s14 }
   0xe   :  { %p3355_p3 = scmp.ne.s32.totalorder %s40_s14, %s3354_s24  ;;  %p3360_p5 = scmp.lt.s32.totalorder %s3354_s24, %s3354_s24 }
  0x10   :  { %p3361_p6 = por %p3360_p5, %p3359_p4 }
  0x12   :  { %p3362_p7 = pnand %p3361_p6, %p3355_p3 }
  0x14   :  { %3365 = shalt.err (!%p3362_p7)
}
  0x15   :  { %s3534_s25 = smov 128   ;;  %s3535_s26 = smov 8  }
  0x16   :  { %45 = dma.hbm_to_vmem [thread:$0]  %s4186_s1, 2048, %s40_s14, [#allocation7], %s3534_s25, %s3534_s25, %s3535_s26  }
  0x17   :  { %s3366_s11 = scalar_lea.hbm %s4189_s4, 2048 }
  0x18   :  { %p3367_p8 = scmp.ne.s32.totalorder %s4189_s4, %s3366_s11  ;;  %p3370_p9 = scmp.lt.u32.totalorder %s3366_s11, %s4189_s4 }
  0x1a   :  { %p3372_p10 = pnand %p3370_p9, %p3367_p8 }
  0x1c   :  { %3375 = shalt.err (!%p3372_p10)
}
  0x1d   :  { %s3376_s18 = scalar_lea.vmem %s3600_s16, 2048  ;;  %p3381_p12 = scmp.lt.s32.totalorder %s3600_s16, %s3600_s16 }
  0x1e   :  { %p3377_p11 = scmp.ne.s32.totalorder %s3600_s16, %s3376_s18  ;;  %p3382_p13 = scmp.lt.s32.totalorder %s3376_s18, %s3376_s18 }
  0x20   :  { %p3383_p0 = por %p3382_p13, %p3381_p12 }
  0x22   :  { %p3384_p1 = pnand %p3383_p0, %p3377_p11 }
  0x24   :  { %3387 = shalt.err (!%p3384_p1)
}
  0x25   :  { %71 = dma.hbm_to_vmem [thread:$0]  %s4189_s4, 2048, %s3600_s16, [#allocation10], %s3534_s25, %s3534_s25, %s3535_s26  }
  0x26   :  { %s3536_s19 = smov [#allocation3]   ;;  %s3537_s21 = smov [#allocation8]  }
  0x27   :  { %s27_s20 = sshll.u32 %s3536_s19, 4  ;;  %s51_s22 = sshll.u32 %s3537_s21, 4  ;;  %s28_s20 = int_to_ptr.vmem [resolvable:$true] %s27_s20  ;;  %s3637_s22 = int_to_ptr.vmem [resolvable:$true] %s51_s22 }
  0x28   :  { %s3388_s27 = scalar_lea.hbm %s4185_s0, 1024 }
  0x29   :  { %p3389_p2 = scmp.ne.s32.totalorder %s4185_s0, %s3388_s27  ;;  %p3392_p3 = scmp.lt.u32.totalorder %s3388_s27, %s4185_s0 }
  0x2b   :  { %p3394_p4 = pnand %p3392_p3, %p3389_p2 }
  0x2d   :  { %3397 = shalt.err (!%p3394_p4)
}
  0x2e   :  { %s3398_s4 = scalar_lea.vmem %s28_s20, 1024  ;;  %p3403_p6 = scmp.lt.s32.totalorder %s28_s20, %s28_s20 }
  0x2f   :  { %p3399_p5 = scmp.ne.s32.totalorder %s28_s20, %s3398_s4  ;;  %p3404_p7 = scmp.lt.s32.totalorder %s3398_s4, %s3398_s4 }
  0x31   :  { %p3405_p8 = por %p3404_p7, %p3403_p6 }
  0x33   :  { %p3406_p9 = pnand %p3405_p8, %p3399_p5 }
  0x35   :  { %3409 = shalt.err (!%p3406_p9)
}
  0x36   :  { %33 = dma.hbm_to_vmem [thread:$0]  %s4185_s0, 1024, %s28_s20, [#allocation4], %s3534_s25, %s3534_s25, %s3535_s26  }
  0x37   :  { %s3410_s17 = scalar_lea.hbm %s4187_s2, 2048 }
  0x38   :  { %p3411_p10 = scmp.ne.s32.totalorder %s4187_s2, %s3410_s17  ;;  %p3414_p11 = scmp.lt.u32.totalorder %s3410_s17, %s4187_s2 }
  0x3a   :  { %p3416_p12 = pnand %p3414_p11, %p3411_p10 }
  0x3c   :  { %3419 = shalt.err (!%p3416_p12)
}
  0x3d   :  { %s3420_s21 = scalar_lea.vmem %s3637_s22, 2048  ;;  %p3425_p0 = scmp.lt.s32.totalorder %s3637_s22, %s3637_s22 }
  0x3e   :  { %p3421_p13 = scmp.ne.s32.totalorder %s3637_s22, %s3420_s21  ;;  %p3426_p1 = scmp.lt.s32.totalorder %s3420_s21, %s3420_s21 }
  0x40   :  { %p3427_p2 = por %p3426_p1, %p3425_p0 }
  0x42   :  { %p3428_p3 = pnand %p3427_p2, %p3421_p13 }
  0x44   :  { %3431 = shalt.err (!%p3428_p3)
}
  0x45   :  { %57 = dma.hbm_to_vmem [thread:$0]  %s4187_s2, 2048, %s3637_s22, [#allocation7], %s3534_s25, %s3534_s25, %s3535_s26  }
  0x46   :  { %s3538_s23 = smov [#allocation11]   ;;  %s3539_s27 = smov [#allocation12]  }
  0x47   :  { %s77_s24 = sshll.u32 %s3538_s23, 4  ;;  %s91_s28 = sshll.u32 %s3539_s27, 4  ;;  %s78_s24 = int_to_ptr.vmem [resolvable:$true] %s77_s24  ;;  %s3674_s28 = int_to_ptr.vmem [resolvable:$true] %s91_s28 }
  0x48   :  { %s3432_s11 = scalar_lea.hbm %s4190_s5, 2048 }
  0x49   :  { %p3433_p4 = scmp.ne.s32.totalorder %s4190_s5, %s3432_s11  ;;  %p3436_p5 = scmp.lt.u32.totalorder %s3432_s11, %s4190_s5 }
  0x4b   :  { %p3438_p6 = pnand %p3436_p5, %p3433_p4 }
  0x4d   :  { %3441 = shalt.err (!%p3438_p6)
}
  0x4e   :  { %s3442_s2 = scalar_lea.vmem %s78_s24, 2048  ;;  %p3447_p8 = scmp.lt.s32.totalorder %s78_s24, %s78_s24 }
  0x4f   :  { %p3443_p7 = scmp.ne.s32.totalorder %s78_s24, %s3442_s2  ;;  %p3448_p9 = scmp.lt.s32.totalorder %s3442_s2, %s3442_s2 }
  0x51   :  { %p3449_p10 = por %p3448_p9, %p3447_p8 }
  0x53   :  { %p3450_p11 = pnand %p3449_p10, %p3443_p7 }
  0x55   :  { %3453 = shalt.err (!%p3450_p11)
}
  0x56   :  { %83 = dma.hbm_to_vmem [thread:$0]  %s4190_s5, 2048, %s78_s24, [#allocation10], %s3534_s25, %s3534_s25, %s3535_s26  }
  0x57   :  { %s3454_s1 = scalar_lea.hbm %s4192_s7, 2048 }
  0x58   :  { %p3455_p12 = scmp.ne.s32.totalorder %s4192_s7, %s3454_s1  ;;  %p3458_p13 = scmp.lt.u32.totalorder %s3454_s1, %s4192_s7 }
  0x5a   :  { %p3460_p0 = pnand %p3458_p13, %p3455_p12 }
  0x5c   :  { %3463 = shalt.err (!%p3460_p0)
}
  0x5d   :  { %s3464_s20 = scalar_lea.vmem %s3674_s28, 2048  ;;  %p3469_p2 = scmp.lt.s32.totalorder %s3674_s28, %s3674_s28 }
  0x5e   :  { %p3465_p1 = scmp.ne.s32.totalorder %s3674_s28, %s3464_s20  ;;  %p3470_p3 = scmp.lt.s32.totalorder %s3464_s20, %s3464_s20 }
  0x60   :  { %p3471_p4 = por %p3470_p3, %p3469_p2 }
  0x62   :  { %p3472_p5 = pnand %p3471_p4, %p3465_p1 }
  0x64   :  { %3475 = shalt.err (!%p3472_p5)
}
  0x65   :  { %97 = dma.hbm_to_vmem [thread:$0]  %s4192_s7, 2048, %s3674_s28, [#allocation13], %s3534_s25, %s3534_s25, %s3535_s26  }
  0x66   :  { %3520 = dma.done.wait [#allocation4], 1024  }
  0x67   :  { %3521 = vsyncadd [#allocation4], 4294966272 }
  0x68   :  { %3522 = dma.done.wait [#allocation7], 4096  }
  0x69   :  { %3523 = vsyncadd [#allocation7], 4294963200 }
  0x6a   :  { %3524 = dma.done.wait [#allocation10], 4096  }
  0x6b   :  { %3525 = vsyncadd [#allocation10], 4294963200 }
  0x6c   :  { %3526 = dma.done.wait [#allocation13], 2048  }
  0x6d   :  { %3527 = vsyncadd [#allocation13], 4294965248  ;;  %v3540_v0 = vmov 0.0|0.0   ;;  %vm3541_vm0 = vmmov 0   ;;  %v3542_v1 = vmov 0.0   ;;  %v118_v2 = vld [vmem:[#allocation6] sm:$0xff] }
  0x6e   :  { %2907 = vmatprep.subr.bf16.mxu0 %v3540_v0  ;;  %2270 = vmatprep.mubr.msk.f32.mxu0 %vm3541_vm0, %v3542_v1  ;;  %v119_v3 = vld [vmem:[#allocation6 + $0x8] sm:$0xff]  ;;  %v120_v4 = vld [vmem:[#allocation6 + $0x10] sm:$0xff]  ;;  %v121_v6 = vld [vmem:[#allocation6 + $0x18] sm:$0xff] }
  0x6f   :  { %v2851_v5 = vpack.c.bf16 %v119_v3, %v118_v2  ;;  %v2855_v7 = vpack.c.bf16 %v121_v6, %v120_v4  ;;  %v122_v8 = vld [vmem:[#allocation6 + $0x20] sm:$0xff]  ;;  %v123_v9 = vld [vmem:[#allocation6 + $0x28] sm:$0xff]  ;;  %v124_v11 = vld [vmem:[#allocation6 + $0x30] sm:$0xff] }
  0x70   :  { %v2859_v10 = vpack.c.bf16 %v123_v9, %v122_v8  ;;  %v151_v12 = vld [vmem:[#allocation3] sm:$0xff]  ;;  %v125_v13 = vld [vmem:[#allocation6 + $0x38] sm:$0xff]  ;;  %v135_v15 = vld [vmem:[#allocation8 + $0x8] sm:$0xff] }
  0x71   :  { %2852 = vmatprep.subr.bf16.mxu1 %v2851_v5  ;;  %2191 = vmatprep.mubr.f32.mxu1 %v151_v12  ;;  %v134_v14 = vld [vmem:[#allocation8] sm:$0xff]  ;;  %v136_v17 = vld [vmem:[#allocation8 + $0x10] sm:$0xff]  ;;  %v137_v18 = vld [vmem:[#allocation8 + $0x18] sm:$0xff]  ;;  %v2863_v19 = vpack.c.bf16 %v125_v13, %v124_v11 }
  0x72   :  { %2854 = vmatpush3.bf16.msra.mxu1 %v2851_v5  ;;  %v3714_v16 = vpack.c.bf16 %v135_v15, %v134_v14  ;;  %v126_v20 = vld [vmem:[#allocation6 + $0x40] sm:$0xff]  ;;  %v127_v21 = vld [vmem:[#allocation6 + $0x48] sm:$0xff]  ;;  %v3718_v22 = vpack.c.bf16 %v137_v18, %v136_v17  ;;  %v128_v26 = vld [vmem:[#allocation6 + $0x50] sm:$0xff] }
  0x73   :  { %2856 = vmatprep.subr.bf16.mxu1 %v2855_v7  ;;  %v138_v23 = vld [vmem:[#allocation8 + $0x20] sm:$0xff]  ;;  %v139_v24 = vld [vmem:[#allocation8 + $0x28] sm:$0xff]  ;;  %v2867_v25 = vpack.c.bf16 %v127_v21, %v126_v20  ;;  %v129_v27 = vld [vmem:[#allocation6 + $0x58] sm:$0xff] }
  0x74   :  { %2909 = vmatpush3.bf16.msra.mxu0 %v3714_v16  ;;  %v3722_v28 = vpack.c.bf16 %v139_v24, %v138_v23  ;;  %v140_v29 = vld [vmem:[#allocation8 + $0x30] sm:$0xff]  ;;  %v141_v30 = vld [vmem:[#allocation8 + $0x38] sm:$0xff]  ;;  %v2871_v31 = vpack.c.bf16 %v129_v27, %v128_v26  ;;  %v130_v32 = vld [vmem:[#allocation6 + $0x60] sm:$0xff] }
  0x75   :  { %2910 = vmatprep.subr.bf16.mxu0 %v3540_v0  ;;  %v131_v33 = vld [vmem:[#allocation6 + $0x68] sm:$0xff]  ;;  %v3726_v34 = vpack.c.bf16 %v141_v30, %v140_v29  ;;  %v142_v35 = vld [vmem:[#allocation8 + $0x40] sm:$0xff]  ;;  %v132_v38 = vld [vmem:[#allocation6 + $0x70] sm:$0xff] }
  0x76   :  { %2858 = vmatpush3.bf16.msra.mxu1 %v2855_v7  ;;  %v143_v36 = vld [vmem:[#allocation8 + $0x48] sm:$0xff]  ;;  %v2875_v37 = vpack.c.bf16 %v131_v33, %v130_v32  ;;  %v133_v39 = vld [vmem:[#allocation6 + $0x78] sm:$0xff]  ;;  %v144_v41 = vld [vmem:[#allocation8 + $0x50] sm:$0xff] }
  0x77   :  { %2860 = vmatprep.subr.bf16.mxu1 %v2859_v10  ;;  %v3730_v40 = vpack.c.bf16 %v143_v36, %v142_v35  ;;  %v145_v42 = vld [vmem:[#allocation8 + $0x58] sm:$0xff]  ;;  %v2879_v43 = vpack.c.bf16 %v133_v39, %v132_v38  ;;  %v146_v45 = vld [vmem:[#allocation8 + $0x60] sm:$0xff]  ;;  %v147_v46 = vld [vmem:[#allocation8 + $0x68] sm:$0xff] }
  0x78   :  { %2912 = vmatpush3.bf16.msra.mxu0 %v3718_v22  ;;  %v3734_v44 = vpack.c.bf16 %v145_v42, %v144_v41  ;;  %v3738_v47 = vpack.c.bf16 %v147_v46, %v146_v45  ;;  %v152_v48 = vld [vmem:[#allocation3 + $0x8] sm:$0xff]  ;;  %v148_v49 = vld [vmem:[#allocation8 + $0x70] sm:$0xff]  ;;  %v149_v50 = vld [vmem:[#allocation8 + $0x78] sm:$0xff] }
  0x79   :  { %2913 = vmatprep.subr.bf16.mxu0 %v3540_v0  ;;  %v153_v51 = vld [vmem:[#allocation3 + $0x10] sm:$0xff]  ;;  %v3743_v52 = vpack.c.bf16 %v149_v50, %v148_v49  ;;  %v154_v53 = vld [vmem:[#allocation3 + $0x18] sm:$0xff]  ;;  %v155_v54 = vld [vmem:[#allocation3 + $0x20] sm:$0xff] }
  0x7a   :  { %2862 = vmatpush3.bf16.msra.mxu1 %v2859_v10  ;;  %v156_v55 = vld [vmem:[#allocation3 + $0x28] sm:$0xff]  ;;  %v157_v56 = vld [vmem:[#allocation3 + $0x30] sm:$0xff]  ;;  %v158_v57 = vld [vmem:[#allocation3 + $0x38] sm:$0xff] }
  0x7b   :  { %2864 = vmatprep.subr.bf16.mxu1 %v2863_v19  ;;  %v1812_v58 = vld [vmem:[%s4188_s3] ss:$0 sm:$0xff]  ;;  %v881_v38 = vld [vmem:[#allocation9 + $0x18] sm:$0xff]  ;;  %v884_v46 = vld [vmem:[#allocation9 + $0x30] sm:$0xff] }
  0x7c   :  { %2915 = vmatpush3.bf16.msra.mxu0 %v3722_v28  ;;  %v886_v49 = vld [vmem:[#allocation9 + $0x40] sm:$0xff]  ;;  %v887_v50 = vld [vmem:[#allocation9 + $0x48] sm:$0xff] }
  0x7d   :  { %2916 = vmatprep.subr.bf16.mxu0 %v3540_v0 }
  0x7e   :  { %2866 = vmatpush3.bf16.msra.mxu1 %v2863_v19 }
  0x7f   :  { %2868 = vmatprep.subr.bf16.mxu1 %v2867_v25 }
  0x80   :  { %2918 = vmatpush3.bf16.msra.mxu0 %v3726_v34 }
  0x81   :  { %2919 = vmatprep.subr.bf16.mxu0 %v3540_v0 }
  0x82   :  { %2870 = vmatpush3.bf16.msra.mxu1 %v2867_v25 }
  0x83   :  { %2872 = vmatprep.subr.bf16.mxu1 %v2871_v31 }
  0x84   :  { %2921 = vmatpush3.bf16.msra.mxu0 %v3730_v40 }
  0x85   :  { %2922 = vmatprep.subr.bf16.mxu0 %v3540_v0 }
  0x86   :  { %2874 = vmatpush3.bf16.msra.mxu1 %v2871_v31 }
  0x87   :  { %2876 = vmatprep.subr.bf16.mxu1 %v2875_v37 }
  0x88   :  { %2924 = vmatpush3.bf16.msra.mxu0 %v3734_v44 }
  0x89   :  { %2925 = vmatprep.subr.bf16.mxu0 %v3540_v0 }
  0x8a   :  { %2878 = vmatpush3.bf16.msra.mxu1 %v2875_v37  ;;  %v880_v37 = vld [vmem:[#allocation9 + $0x10] sm:$0xff] }
  0x8b   :  { %2880 = vmatprep.subr.bf16.mxu1 %v2879_v43  ;;  %v3079_v42 = vpack.c.bf16 %v881_v38, %v880_v37  ;;  %v4009_v38 = vld [vmem:[%s4191_s6] ss:$0 sm:$0xff] }
  0x8c   :  { %2927 = vmatpush3.bf16.msra.mxu0 %v3738_v47 }
  0x8d   :  { %2928 = vmatprep.subr.bf16.mxu0 %v3540_v0 }
  0x8e   :  { %2882 = vmatpush3.bf16.msra.mxu1 %v2879_v43  ;;  %v882_v43 = vld [vmem:[#allocation9 + $0x20] sm:$0xff] }
  0x8f   :  { %2883 = vmatprep.subr.bf16.mxu1 %v3540_v0 }
  0x90   :  { %2930 = vmatpush3.bf16.msra.mxu0 %v3743_v52 }
  0x91   :  { %2192 = vmatmul.mubr.f32.vlgmr.msra.gmra.mrb[0].mxu1 %v152_v48  ;;  %2955 = vmatprep.subr.bf16.mxu0 %v3540_v0 }
  0x92   :  { %2885 = vmatpush3.bf16.msra.mxu1 %v3714_v16  ;;  %2194 = vmatprep.mubr.f32.mxu1 %v153_v51  ;;  %v3091_v51 = vpack.c.bf16 %v887_v50, %v886_v49 }
  0x93   :  { %2886 = vmatprep.subr.bf16.mxu1 %v3540_v0 }
  0x95   :  { %2195 = vmatmul.mubr.f32.gmra.mrb[2].mxu1 %v154_v53  ;;  %v889_v53 = vld [vmem:[#allocation9 + $0x58] sm:$0xff] }
  0x96   :  { %2888 = vmatpush3.bf16.msra.mxu1 %v3718_v22  ;;  %2197 = vmatprep.mubr.f32.mxu1 %v155_v54 }
  0x97   :  { %2889 = vmatprep.subr.bf16.mxu1 %v3540_v0 }
  0x99   :  { %2198 = vmatmul.mubr.f32.gmra.mrb[4].mxu1 %v156_v55  ;;  %v890_v55 = vld [vmem:[#allocation9 + $0x60] sm:$0xff] }
  0x9a   :  { %2891 = vmatpush3.bf16.msra.mxu1 %v3722_v28  ;;  %2200 = vmatprep.mubr.f32.mxu1 %v157_v56  ;;  %v891_v56 = vld [vmem:[#allocation9 + $0x68] sm:$0xff] }
  0x9b   :  { %2892 = vmatprep.subr.bf16.mxu1 %v3540_v0 }
  0x9d   :  { %2201 = vmatmul.mubr.f32.gmra.mrb[6].mxu1 %v158_v57  ;;  %v3099_v57 = vpack.c.bf16 %v891_v56, %v890_v55 }
  0x9e   :  { %2894 = vmatpush3.bf16.msra.mxu1 %v3726_v34  ;;  %2235 = vmatprep.mubr.msk.f32.mxu1 %vm3541_vm0, %v3542_v1 }
  0x9f   :  { %2895 = vmatprep.subr.bf16.mxu1 %v3540_v0 }
  0xa2   :  { %2897 = vmatpush3.bf16.msra.mxu1 %v3730_v40 }
  0xa3   :  { %2898 = vmatprep.subr.bf16.mxu1 %v3540_v0 }
  0xa6   :  { %2900 = vmatpush3.bf16.msra.mxu1 %v3734_v44 }
  0xa7   :  { %2901 = vmatprep.subr.bf16.mxu1 %v3540_v0 }
  0xaa   :  { %2903 = vmatpush3.bf16.msra.mxu1 %v3738_v47 }
  0xab   :  { %2904 = vmatprep.subr.bf16.mxu1 %v3540_v0 }
  0xae   :  { %2906 = vmatpush3.bf16.msra.mxu1 %v3743_v52 }
  0xaf   :  { %2931 = vmatprep.subr.bf16.mxu1 %v3540_v0 }
  0xb1   :  { %2236 = vmatmul.mubr.f32.vlgmr.msra.gmra.mrb[8].mxu1 %v3542_v1 }
  0xb2   :  { %2933 = vmatpush3.bf16.msra.mxu1 %v3714_v16  ;;  %2305 = vmatprep.mubr.msk.f32.mxu1 %vm3541_vm0, %v3542_v1 }
  0xb3   :  { %2934 = vmatprep.subr.bf16.mxu1 %v3540_v0 }
  0xb6   :  { %2936 = vmatpush3.bf16.msra.mxu1 %v3718_v22 }
  0xb7   :  { %2937 = vmatprep.subr.bf16.mxu1 %v3540_v0 }
  0xba   :  { %2939 = vmatpush3.bf16.msra.mxu1 %v3722_v28 }
  0xbb   :  { %2940 = vmatprep.subr.bf16.mxu1 %v3540_v0 }
  0xbe   :  { %2942 = vmatpush3.bf16.msra.mxu1 %v3726_v34 }
  0xbf   :  { %2943 = vmatprep.subr.bf16.mxu1 %v3540_v0 }
  0xc2   :  { %2945 = vmatpush3.bf16.msra.mxu1 %v3730_v40 }
  0xc3   :  { %2946 = vmatprep.subr.bf16.mxu1 %v3540_v0 }
  0xc6   :  { %2948 = vmatpush3.bf16.msra.mxu1 %v3734_v44 }
  0xc7   :  { %2949 = vmatprep.subr.bf16.mxu1 %v3540_v0 }
  0xca   :  { %2951 = vmatpush3.bf16.msra.mxu1 %v3738_v47 }
  0xcb   :  { %2952 = vmatprep.subr.bf16.mxu1 %v3540_v0 }
  0xce   :  { %2954 = vmatpush3.bf16.msra.mxu1 %v3743_v52 }
  0xcf   :  { %2979 = vmatprep.subr.bf16.mxu1 %v3540_v0 }
 0x164   :  { %v2193_v59 = vpop.f32.mrb[0].mxu1 }
 0x165   :  { %v237_v60 = vadd.f32 %v2193_v59, %v1812_v58  ;;  %v231_v61 = vpop.f32.mrb[1].mxu1  ;;  %v893_v59 = vld [vmem:[#allocation9 + $0x78] sm:$0xff] }
 0x166   :  { %v232_v12 = vadd.f32 %v1812_v58, %v231_v61  ;;  %v894_v61 = vld [vmem:[#allocation11] sm:$0xff] }
 0x168   :  { %v2196_v62 = vpop.f32.mrb[2].mxu1 }
 0x169   :  { %v3787_v63 = vadd.f32 %v2196_v62, %v1812_v58  ;;  %v241_v2 = vpop.f32.mrb[3].mxu1  ;;  %v895_v62 = vld [vmem:[#allocation11 + $0x8] sm:$0xff] }
 0x16a   :  { %v242_v3 = vadd.f32 %v1812_v58, %v241_v2  ;;  %v896_v2 = vld [vmem:[#allocation11 + $0x10] sm:$0xff] }
 0x16c   :  { %v2199_v4 = vpop.f32.mrb[4].mxu1 }
 0x16d   :  { %v3789_v5 = vadd.f32 %v2199_v4, %v1812_v58  ;;  %v251_v6 = vpop.f32.mrb[5].mxu1 }
 0x16e   :  { %v3791_v7 = vadd.f32 %v1812_v58, %v251_v6  ;;  %v899_v6 = vld [vmem:[#allocation11 + $0x28] sm:$0xff] }
 0x170   :  { %v2202_v8 = vpop.f32.mrb[6].mxu1 }
 0x171   :  { %v3793_v9 = vadd.f32 %v2202_v8, %v1812_v58  ;;  %v261_v10 = vpop.f32.mrb[7].mxu1  ;;  %v900_v8 = vld [vmem:[#allocation11 + $0x30] sm:$0xff] }
 0x172   :  { %v3795_v11 = vadd.f32 %v1812_v58, %v261_v10  ;;  %v892_v58 = vld [vmem:[#allocation9 + $0x70] sm:$0xff]  ;;  %v901_v10 = vld [vmem:[#allocation11 + $0x38] sm:$0xff] }
 0x184   :  { %v345_v13 = vpop.f32.mrb[8].mxu1 }
 0x185   :  { %v3797_v14 = vadd.f32 %v345_v13, %v232_v12  ;;  %v2237_v15 = vpop.f32.mrb[9].mxu1  ;;  %v3937_v12 = vpack.c.bf16 %v901_v10, %v900_v8  ;;  %v902_v13 = vld [vmem:[#allocation11 + $0x40] sm:$0xff]  ;;  %v1643_v8 = vld [vmem:[#allocation12 + $0x18] sm:$0xff] }
 0x187   :  { %v350_v17 = vmax.f32 %v3797_v14, 0.0  ;;  %v903_v14 = vld [vmem:[#allocation11 + $0x48] sm:$0xff] }
 0x188   :  { %v3941_v15 = vpack.c.bf16 %v903_v14, %v902_v13 }
 0x189   :  { %2271 = vmatmul.mubr.f32.vlgmr.msra.gmra.mrb[0].mxu0 %v350_v17 }
 0x18a   :  { %2957 = vmatpush3.bf16.msra.mxu0 %v3714_v16  ;;  %2340 = vmatprep.mubr.msk.f32.mxu0 %vm3541_vm0, %v3542_v1 }
 0x18b   :  { %2958 = vmatprep.subr.bf16.mxu0 %v3540_v0 }
 0x18e   :  { %2960 = vmatpush3.bf16.msra.mxu0 %v3718_v22 }
 0x18f   :  { %2961 = vmatprep.subr.bf16.mxu0 %v3540_v0 }
 0x192   :  { %2963 = vmatpush3.bf16.msra.mxu0 %v3722_v28 }
 0x193   :  { %2964 = vmatprep.subr.bf16.mxu0 %v3540_v0 }
 0x196   :  { %2966 = vmatpush3.bf16.msra.mxu0 %v3726_v34 }
 0x197   :  { %2967 = vmatprep.subr.bf16.mxu0 %v3540_v0 }
 0x19a   :  { %2969 = vmatpush3.bf16.msra.mxu0 %v3730_v40 }
 0x19b   :  { %2970 = vmatprep.subr.bf16.mxu0 %v3540_v0 }
 0x19e   :  { %2972 = vmatpush3.bf16.msra.mxu0 %v3734_v44 }
 0x19f   :  { %2973 = vmatprep.subr.bf16.mxu0 %v3540_v0 }
 0x1a2   :  { %2975 = vmatpush3.bf16.msra.mxu0 %v3738_v47 }
 0x1a3   :  { %2976 = vmatprep.subr.bf16.mxu0 %v3540_v0 }
 0x1a6   :  { %2978 = vmatpush3.bf16.msra.mxu0 %v3743_v52 }
 0x1a7   :  { %3003 = vmatprep.subr.bf16.mxu0 %v3540_v0 }
 0x25c   :  { %v420_v18 = vpop.f32.mrb[0].mxu0 }
 0x25d   :  { %v3820_v19 = vadd.f32 %v420_v18, %v237_v60  ;;  %v2272_v20 = vpop.f32.mrb[1].mxu0  ;;  %v3103_v60 = vpack.c.bf16 %v893_v59, %v892_v58  ;;  %v905_v18 = vld [vmem:[#allocation11 + $0x58] sm:$0xff] }
 0x25e   :  { %v906_v20 = vld [vmem:[#allocation11 + $0x60] sm:$0xff] }
 0x25f   :  { %v425_v21 = vmax.f32 %v3820_v19, 0.0 }
 0x261   :  { %2306 = vmatmul.mubr.f32.vlgmr.msra.gmra.mrb[10].mxu1 %v425_v21 }
 0x262   :  { %2981 = vmatpush3.bf16.msra.mxu1 %v3714_v16  ;;  %2375 = vmatprep.mubr.msk.f32.mxu1 %vm3541_vm0, %v3542_v1 }
 0x263   :  { %2982 = vmatprep.subr.bf16.mxu1 %v3540_v0 }
 0x266   :  { %2984 = vmatpush3.bf16.msra.mxu1 %v3718_v22 }
 0x267   :  { %2985 = vmatprep.subr.bf16.mxu1 %v3540_v0 }
 0x26a   :  { %2987 = vmatpush3.bf16.msra.mxu1 %v3722_v28 }
 0x26b   :  { %2988 = vmatprep.subr.bf16.mxu1 %v3540_v0 }
 0x26e   :  { %2990 = vmatpush3.bf16.msra.mxu1 %v3726_v34 }
 0x26f   :  { %2991 = vmatprep.subr.bf16.mxu1 %v3540_v0 }
 0x272   :  { %2993 = vmatpush3.bf16.msra.mxu1 %v3730_v40 }
 0x273   :  { %2994 = vmatprep.subr.bf16.mxu1 %v3540_v0 }
 0x276   :  { %2996 = vmatpush3.bf16.msra.mxu1 %v3734_v44 }
 0x277   :  { %2997 = vmatprep.subr.bf16.mxu1 %v3540_v0 }
 0x27a   :  { %2999 = vmatpush3.bf16.msra.mxu1 %v3738_v47 }
 0x27b   :  { %3000 = vmatprep.subr.bf16.mxu1 %v3540_v0 }
 0x27e   :  { %3002 = vmatpush3.bf16.msra.mxu1 %v3743_v52 }
 0x27f   :  { %3027 = vmatprep.subr.bf16.mxu1 %v3540_v0 }
 0x334   :  { %v495_v23 = vpop.f32.mrb[10].mxu1 }
 0x335   :  { %v3843_v24 = vadd.f32 %v495_v23, %v242_v3  ;;  %v2307_v25 = vpop.f32.mrb[11].mxu1  ;;  %v897_v3 = vld [vmem:[#allocation11 + $0x18] sm:$0xff] }
 0x336   :  { %v3929_v4 = vpack.c.bf16 %v897_v3, %v896_v2  ;;  %v909_v25 = vld [vmem:[#allocation11 + $0x78] sm:$0xff] }
 0x337   :  { %v500_v26 = vmax.f32 %v3843_v24, 0.0  ;;  %v908_v24 = vld [vmem:[#allocation11 + $0x70] sm:$0xff] }
 0x339   :  { %2341 = vmatmul.mubr.f32.vlgmr.msra.gmra.mrb[2].mxu0 %v500_v26 }
 0x33a   :  { %3005 = vmatpush3.bf16.msra.mxu0 %v3714_v16  ;;  %2410 = vmatprep.mubr.msk.f32.mxu0 %vm3541_vm0, %v3542_v1 }
 0x33b   :  { %3006 = vmatprep.subr.bf16.mxu0 %v3540_v0 }
 0x33e   :  { %3008 = vmatpush3.bf16.msra.mxu0 %v3718_v22 }
 0x33f   :  { %3009 = vmatprep.subr.bf16.mxu0 %v3540_v0 }
 0x342   :  { %3011 = vmatpush3.bf16.msra.mxu0 %v3722_v28 }
 0x343   :  { %3012 = vmatprep.subr.bf16.mxu0 %v3540_v0 }
 0x346   :  { %3014 = vmatpush3.bf16.msra.mxu0 %v3726_v34 }
 0x347   :  { %3015 = vmatprep.subr.bf16.mxu0 %v3540_v0 }
 0x34a   :  { %3017 = vmatpush3.bf16.msra.mxu0 %v3730_v40 }
 0x34b   :  { %3018 = vmatprep.subr.bf16.mxu0 %v3540_v0 }
 0x34e   :  { %3020 = vmatpush3.bf16.msra.mxu0 %v3734_v44 }
 0x34f   :  { %3021 = vmatprep.subr.bf16.mxu0 %v3540_v0 }
 0x352   :  { %3023 = vmatpush3.bf16.msra.mxu0 %v3738_v47 }
 0x353   :  { %3024 = vmatprep.subr.bf16.mxu0 %v3540_v0 }
 0x356   :  { %3026 = vmatpush3.bf16.msra.mxu0 %v3743_v52 }
 0x357   :  { %3051 = vmatprep.subr.bf16.mxu0 %v3540_v0 }
 0x40c   :  { %v570_v27 = vpop.f32.mrb[2].mxu0 }
 0x40d   :  { %v3867_v29 = vadd.f32 %v570_v27, %v3787_v63  ;;  %v2342_v30 = vpop.f32.mrb[3].mxu0  ;;  %v3925_v63 = vpack.c.bf16 %v895_v62, %v894_v61 }
 0x40f   :  { %v575_v31 = vmax.f32 %v3867_v29, 0.0 }
 0x411   :  { %2376 = vmatmul.mubr.f32.vlgmr.msra.gmra.mrb[12].mxu1 %v575_v31 }
 0x412   :  { %3029 = vmatpush3.bf16.msra.mxu1 %v3714_v16  ;;  %2445 = vmatprep.mubr.msk.f32.mxu1 %vm3541_vm0, %v3542_v1 }
 0x413   :  { %3030 = vmatprep.subr.bf16.mxu1 %v3540_v0 }
 0x416   :  { %3032 = vmatpush3.bf16.msra.mxu1 %v3718_v22 }
 0x417   :  { %3033 = vmatprep.subr.bf16.mxu1 %v3540_v0 }
 0x41a   :  { %3035 = vmatpush3.bf16.msra.mxu1 %v3722_v28 }
 0x41b   :  { %3036 = vmatprep.subr.bf16.mxu1 %v3540_v0 }
 0x41e   :  { %3038 = vmatpush3.bf16.msra.mxu1 %v3726_v34 }
 0x41f   :  { %3039 = vmatprep.subr.bf16.mxu1 %v3540_v0 }
 0x422   :  { %3041 = vmatpush3.bf16.msra.mxu1 %v3730_v40 }
 0x423   :  { %3042 = vmatprep.subr.bf16.mxu1 %v3540_v0 }
 0x426   :  { %3044 = vmatpush3.bf16.msra.mxu1 %v3734_v44 }
 0x427   :  { %3045 = vmatprep.subr.bf16.mxu1 %v3540_v0 }
 0x42a   :  { %3047 = vmatpush3.bf16.msra.mxu1 %v3738_v47 }
 0x42b   :  { %3048 = vmatprep.subr.bf16.mxu1 %v3540_v0 }
 0x42e   :  { %3050 = vmatpush3.bf16.msra.mxu1 %v3743_v52 }
 0x4e4   :  { %v645_v32 = vpop.f32.mrb[12].mxu1 }
 0x4e5   :  { %v3890_v33 = vadd.f32 %v645_v32, %v3791_v7  ;;  %v2377_v35 = vpop.f32.mrb[13].mxu1 }
 0x4e7   :  { %v650_v36 = vmax.f32 %v3890_v33, 0.0 }
 0x4e9   :  { %2411 = vmatmul.mubr.f32.vlgmr.msra.gmra.mrb[4].mxu0 %v650_v36 }
 0x4ea   :  { %3053 = vmatpush3.bf16.msra.mxu0 %v3714_v16  ;;  %2480 = vmatprep.mubr.msk.f32.mxu0 %vm3541_vm0, %v3542_v1  ;;  %v878_v16 = vld [vmem:[#allocation9] sm:$0xff] }
 0x4eb   :  { %3054 = vmatprep.subr.bf16.mxu0 %v3540_v0 }
 0x4ee   :  { %3056 = vmatpush3.bf16.msra.mxu0 %v3718_v22  ;;  %v879_v22 = vld [vmem:[#allocation9 + $0x8] sm:$0xff] }
 0x4ef   :  { %3057 = vmatprep.subr.bf16.mxu0 %v3540_v0 }
 0x4f2   :  { %3059 = vmatpush3.bf16.msra.mxu0 %v3722_v28  ;;  %v3075_v28 = vpack.c.bf16 %v879_v22, %v878_v16 }
 0x4f3   :  { %3060 = vmatprep.subr.bf16.mxu0 %v3540_v0 }
 0x4f4   :  { %3076 = vmatprep.subr.bf16.mxu1 %v3075_v28 }
 0x4f6   :  { %3062 = vmatpush3.bf16.msra.mxu0 %v3726_v34 }
 0x4f7   :  { %3063 = vmatprep.subr.bf16.mxu0 %v3540_v0 }
 0x4fa   :  { %3065 = vmatpush3.bf16.msra.mxu0 %v3730_v40 }
 0x4fb   :  { %3066 = vmatprep.subr.bf16.mxu0 %v3540_v0 }
 0x4fe   :  { %3068 = vmatpush3.bf16.msra.mxu0 %v3734_v44  ;;  %v883_v44 = vld [vmem:[#allocation9 + $0x28] sm:$0xff] }
 0x4ff   :  { %3069 = vmatprep.subr.bf16.mxu0 %v3540_v0  ;;  %v3083_v45 = vpack.c.bf16 %v883_v44, %v882_v43 }
 0x502   :  { %3071 = vmatpush3.bf16.msra.mxu0 %v3738_v47  ;;  %v885_v47 = vld [vmem:[#allocation9 + $0x38] sm:$0xff] }
 0x503   :  { %3072 = vmatprep.subr.bf16.mxu0 %v3540_v0  ;;  %v3087_v48 = vpack.c.bf16 %v885_v47, %v884_v46 }
 0x506   :  { %3074 = vmatpush3.bf16.msra.mxu0 %v3743_v52  ;;  %v888_v52 = vld [vmem:[#allocation9 + $0x50] sm:$0xff] }
 0x507   :  { %3107 = vmatprep.subr.bf16.mxu0 %v3540_v0  ;;  %v3095_v54 = vpack.c.bf16 %v889_v53, %v888_v52 }
 0x5bc   :  { %v720_v34 = vpop.f32.mrb[4].mxu0 }
 0x5bd   :  { %v724_v39 = vadd.f32 %v720_v34, %v3789_v5  ;;  %v2412_v40 = vpop.f32.mrb[5].mxu0  ;;  %v898_v5 = vld [vmem:[#allocation11 + $0x20] sm:$0xff] }
 0x5be   :  { %v3933_v7 = vpack.c.bf16 %v899_v6, %v898_v5 }
 0x5bf   :  { %v725_v41 = vmax.f32 %v724_v39, 0.0 }
 0x5c1   :  { %2446 = vmatmul.mubr.f32.vlgmr.msra.gmra.mrb[14].mxu1 %v725_v41 }
 0x5c2   :  { %3078 = vmatpush3.bf16.msra.mxu1 %v3075_v28  ;;  %2515 = vmatprep.mubr.f32.mxu1 %v350_v17  ;;  %v904_v17 = vld [vmem:[#allocation11 + $0x50] sm:$0xff] }
 0x5c3   :  { %3080 = vmatprep.subr.bf16.mxu1 %v3079_v42  ;;  %v3945_v19 = vpack.c.bf16 %v905_v18, %v904_v17  ;;  %v1645_v17 = vld [vmem:[#allocation12 + $0x28] sm:$0xff]  ;;  %v1646_v18 = vld [vmem:[#allocation12 + $0x30] sm:$0xff] }
 0x5c6   :  { %3082 = vmatpush3.bf16.msra.mxu1 %v3079_v42 }
 0x5c7   :  { %3084 = vmatprep.subr.bf16.mxu1 %v3083_v45 }
 0x5ca   :  { %3086 = vmatpush3.bf16.msra.mxu1 %v3083_v45 }
 0x5cb   :  { %3088 = vmatprep.subr.bf16.mxu1 %v3087_v48 }
 0x5ce   :  { %3090 = vmatpush3.bf16.msra.mxu1 %v3087_v48 }
 0x5cf   :  { %3092 = vmatprep.subr.bf16.mxu1 %v3091_v51 }
 0x5d2   :  { %3094 = vmatpush3.bf16.msra.mxu1 %v3091_v51 }
 0x5d3   :  { %3096 = vmatprep.subr.bf16.mxu1 %v3095_v54 }
 0x5d6   :  { %3098 = vmatpush3.bf16.msra.mxu1 %v3095_v54 }
 0x5d7   :  { %3100 = vmatprep.subr.bf16.mxu1 %v3099_v57 }
 0x5da   :  { %3102 = vmatpush3.bf16.msra.mxu1 %v3099_v57 }
 0x5db   :  { %3104 = vmatprep.subr.bf16.mxu1 %v3103_v60 }
 0x5de   :  { %3106 = vmatpush3.bf16.msra.mxu1 %v3103_v60 }
 0x5df   :  { %3131 = vmatprep.subr.bf16.mxu1 %v3540_v0 }
 0x5e1   :  { %2516 = vmatmul.mubr.f32.vlgmr.msra.gmra.mrb[16].mxu1 %v425_v21  ;;  %v907_v21 = vld [vmem:[#allocation11 + $0x68] sm:$0xff] }
 0x5e2   :  { %2518 = vmatprep.mubr.f32.mxu1 %v500_v26  ;;  %3133 = vmatpush3.bf16.msra.mxu1 %v3925_v63  ;;  %v3949_v23 = vpack.c.bf16 %v907_v21, %v906_v20  ;;  %v3953_v26 = vpack.c.bf16 %v909_v25, %v908_v24  ;;  %v1648_v21 = vld [vmem:[#allocation12 + $0x40] sm:$0xff]  ;;  %v1650_v25 = vld [vmem:[#allocation12 + $0x50] sm:$0xff] }
 0x5e3   :  { %3134 = vmatprep.subr.bf16.mxu1 %v3540_v0 }
 0x5e5   :  { %2519 = vmatmul.mubr.f32.gmra.mrb[18].mxu1 %v575_v31 }
 0x5e6   :  { %2521 = vmatprep.mubr.f32.mxu1 %v650_v36  ;;  %3136 = vmatpush3.bf16.msra.mxu1 %v3929_v4 }
 0x5e7   :  { %3137 = vmatprep.subr.bf16.mxu1 %v3540_v0 }
 0x5e9   :  { %2522 = vmatmul.mubr.f32.gmra.mrb[20].mxu1 %v725_v41 }
 0x5ea   :  { %3139 = vmatpush3.bf16.msra.mxu1 %v3933_v7 }
 0x5eb   :  { %3140 = vmatprep.subr.bf16.mxu1 %v3540_v0 }
 0x5ee   :  { %3142 = vmatpush3.bf16.msra.mxu1 %v3937_v12 }
 0x5ef   :  { %3143 = vmatprep.subr.bf16.mxu1 %v3540_v0 }
 0x5f2   :  { %3145 = vmatpush3.bf16.msra.mxu1 %v3941_v15 }
 0x5f3   :  { %3146 = vmatprep.subr.bf16.mxu1 %v3540_v0 }
 0x5f6   :  { %3148 = vmatpush3.bf16.msra.mxu1 %v3945_v19 }
 0x5f7   :  { %3149 = vmatprep.subr.bf16.mxu1 %v3540_v0 }
 0x5fa   :  { %3151 = vmatpush3.bf16.msra.mxu1 %v3949_v23 }
 0x5fb   :  { %3152 = vmatprep.subr.bf16.mxu1 %v3540_v0 }
 0x5fe   :  { %3154 = vmatpush3.bf16.msra.mxu1 %v3953_v26 }
 0x5ff   :  { %3179 = vmatprep.subr.bf16.mxu1 %v3540_v0 }
 0x694   :  { %v795_v27 = vpop.f32.mrb[14].mxu1 }
 0x695   :  { %v799_v29 = vadd.f32 %v795_v27, %v3795_v11  ;;  %v2447_v30 = vpop.f32.mrb[15].mxu1 }
 0x696   :  { %v1653_v30 = vld [vmem:[#allocation12 + $0x68] sm:$0xff] }
 0x697   :  { %v800_v31 = vmax.f32 %v799_v29, 0.0  ;;  %v1652_v29 = vld [vmem:[#allocation12 + $0x60] sm:$0xff] }
 0x699   :  { %2481 = vmatmul.mubr.f32.vlgmr.msra.gmra.mrb[6].mxu0 %v800_v31  ;;  %2524 = vmatprep.mubr.f32.mxu1 %v800_v31  ;;  %v3323_v31 = vpack.c.bf16 %v1653_v30, %v1652_v29 }
 0x69a   :  { %3109 = vmatpush3.bf16.msra.mxu0 %v3925_v63  ;;  %2559 = vmatprep.mubr.msk.f32.mxu0 %vm3541_vm0, %v3542_v1 }
 0x69b   :  { %3110 = vmatprep.subr.bf16.mxu0 %v3540_v0 }
 0x69e   :  { %3112 = vmatpush3.bf16.msra.mxu0 %v3929_v4 }
 0x69f   :  { %3113 = vmatprep.subr.bf16.mxu0 %v3540_v0 }
 0x6a2   :  { %3115 = vmatpush3.bf16.msra.mxu0 %v3933_v7 }
 0x6a3   :  { %3116 = vmatprep.subr.bf16.mxu0 %v3540_v0 }
 0x6a6   :  { %3118 = vmatpush3.bf16.msra.mxu0 %v3937_v12 }
 0x6a7   :  { %3119 = vmatprep.subr.bf16.mxu0 %v3540_v0 }
 0x6aa   :  { %3121 = vmatpush3.bf16.msra.mxu0 %v3941_v15 }
 0x6ab   :  { %3122 = vmatprep.subr.bf16.mxu0 %v3540_v0 }
 0x6ae   :  { %3124 = vmatpush3.bf16.msra.mxu0 %v3945_v19 }
 0x6af   :  { %3125 = vmatprep.subr.bf16.mxu0 %v3540_v0 }
 0x6b2   :  { %3127 = vmatpush3.bf16.msra.mxu0 %v3949_v23 }
 0x6b3   :  { %3128 = vmatprep.subr.bf16.mxu0 %v3540_v0 }
 0x6b4   :  { %v2517_v11 = vpop.f32.mrb[16].mxu1 }
 0x6b5   :  { %v991_v32 = vpop.f32.mrb[17].mxu1  ;;  %v997_v45 = vadd.f32 %v2517_v11, %v4009_v38  ;;  %v1654_v11 = vld [vmem:[#allocation12 + $0x70] sm:$0xff] }
 0x6b6   :  { %3130 = vmatpush3.bf16.msra.mxu0 %v3953_v26  ;;  %v992_v39 = vadd.f32 %v4009_v38, %v991_v32  ;;  %v1655_v32 = vld [vmem:[#allocation12 + $0x78] sm:$0xff] }
 0x6b7   :  { %3155 = vmatprep.subr.bf16.mxu0 %v3540_v0 }
 0x6b8   :  { %v3976_v33 = vpop.f32.mrb[18].mxu1 }
 0x6b9   :  { %v3978_v35 = vpop.f32.mrb[19].mxu1  ;;  %2560 = vmatmul.mubr.f32.vlgmr.msra.gmra.mrb[8].mxu0 %v3542_v1  ;;  %v1007_v55 = vadd.f32 %v3976_v33, %v4009_v38  ;;  %v3327_v33 = vpack.c.bf16 %v1655_v32, %v1654_v11 }
 0x6ba   :  { %3157 = vmatpush3.bf16.msra.mxu0 %v3925_v63  ;;  %2629 = vmatprep.mubr.msk.f32.mxu0 %vm3541_vm0, %v3542_v1  ;;  %v1002_v50 = vadd.f32 %v4009_v38, %v3978_v35 }
 0x6bb   :  { %3158 = vmatprep.subr.bf16.mxu0 %v3540_v0 }
 0x6bc   :  { %v3985_v36 = vpop.f32.mrb[20].mxu1 }
 0x6bd   :  { %v3987_v16 = vpop.f32.mrb[21].mxu1  ;;  %v1017_v5 = vadd.f32 %v3985_v36, %v4009_v38 }
 0x6be   :  { %3160 = vmatpush3.bf16.msra.mxu0 %v3929_v4  ;;  %v1012_v60 = vadd.f32 %v4009_v38, %v3987_v16 }
 0x6bf   :  { %3161 = vmatprep.subr.bf16.mxu0 %v3540_v0 }
 0x6c2   :  { %3163 = vmatpush3.bf16.msra.mxu0 %v3933_v7 }
 0x6c3   :  { %3164 = vmatprep.subr.bf16.mxu0 %v3540_v0 }
 0x6c6   :  { %3166 = vmatpush3.bf16.msra.mxu0 %v3937_v12 }
 0x6c7   :  { %3167 = vmatprep.subr.bf16.mxu0 %v3540_v0 }
 0x6ca   :  { %3169 = vmatpush3.bf16.msra.mxu0 %v3941_v15 }
 0x6cb   :  { %3170 = vmatprep.subr.bf16.mxu0 %v3540_v0 }
 0x6ce   :  { %3172 = vmatpush3.bf16.msra.mxu0 %v3945_v19 }
 0x6cf   :  { %3173 = vmatprep.subr.bf16.mxu0 %v3540_v0 }
 0x6d2   :  { %3175 = vmatpush3.bf16.msra.mxu0 %v3949_v23 }
 0x6d3   :  { %3176 = vmatprep.subr.bf16.mxu0 %v3540_v0 }
 0x6d6   :  { %3178 = vmatpush3.bf16.msra.mxu0 %v3953_v26 }
 0x6d7   :  { %3203 = vmatprep.subr.bf16.mxu0 %v3540_v0 }
 0x76c   :  { %v870_v22 = vpop.f32.mrb[6].mxu0 }
 0x76d   :  { %v874_v28 = vadd.f32 %v870_v22, %v3793_v9  ;;  %v2482_v34 = vpop.f32.mrb[7].mxu0 }
 0x76e   :  { %v1814_v34 = vld [vmem:[%s4193_s8] ss:$0 sm:$0xff]  ;;  %s3543_s8 = smov [#allocation15]  }
 0x76f   :  { %v875_v37 = vmax.f32 %v874_v28, 0.0  ;;  %s1793_s29 = sshll.u32 %s3543_s8, 4  ;;  %s1794_s29 = int_to_ptr.vmem [resolvable:$true] %s1793_s29 }
 0x770   :  { %s3476_s30 = scalar_lea.vmem %s1794_s29, 256  ;;  %p3481_p7 = scmp.lt.s32.totalorder %s1794_s29, %s1794_s29 }
 0x771   :  { %877 = vst [vmem:[#allocation15] sm:$0xff] %v875_v37  ;;  %2525 = vmatmul.mubr.f32.gmra.mrb[22].mxu1 %v875_v37  ;;  %p3477_p6 = scmp.ne.s32.totalorder %s1794_s29, %s3476_s30  ;;  %p3482_p8 = scmp.lt.s32.totalorder %s3476_s30, %s3476_s30 }
 0x772   :  { %2594 = vmatprep.mubr.msk.f32.mxu1 %vm3541_vm0, %v3542_v1 }
 0x773   :  { %p3483_p9 = por %p3482_p8, %p3481_p7 }
 0x775   :  { %p3484_p10 = pnand %p3483_p9, %p3477_p6 }
 0x78c   :  { %v1105_v40 = vpop.f32.mrb[8].mxu0 }
 0x78d   :  { %v4012_v41 = vadd.f32 %v1105_v40, %v992_v39  ;;  %v2561_v42 = vpop.f32.mrb[9].mxu0 }
 0x78f   :  { %v1110_v9 = vmax.f32 %v4012_v41, 0.0 }
 0x791   :  { %2595 = vmatmul.mubr.f32.vlgmr.msra.gmra.mrb[24].mxu1 %v1110_v9 }
 0x792   :  { %3181 = vmatpush3.bf16.msra.mxu1 %v3925_v63  ;;  %2664 = vmatprep.mubr.msk.f32.mxu1 %vm3541_vm0, %v3542_v1 }
 0x793   :  { %3182 = vmatprep.subr.bf16.mxu1 %v3540_v0 }
 0x796   :  { %3184 = vmatpush3.bf16.msra.mxu1 %v3929_v4 }
 0x797   :  { %3185 = vmatprep.subr.bf16.mxu1 %v3540_v0 }
 0x79a   :  { %3187 = vmatpush3.bf16.msra.mxu1 %v3933_v7 }
 0x79b   :  { %3188 = vmatprep.subr.bf16.mxu1 %v3540_v0 }
 0x79e   :  { %3190 = vmatpush3.bf16.msra.mxu1 %v3937_v12 }
 0x79f   :  { %3191 = vmatprep.subr.bf16.mxu1 %v3540_v0 }
 0x7a2   :  { %3193 = vmatpush3.bf16.msra.mxu1 %v3941_v15 }
 0x7a3   :  { %3194 = vmatprep.subr.bf16.mxu1 %v3540_v0 }
 0x7a6   :  { %3196 = vmatpush3.bf16.msra.mxu1 %v3945_v19 }
 0x7a7   :  { %3197 = vmatprep.subr.bf16.mxu1 %v3540_v0 }
 0x7aa   :  { %3199 = vmatpush3.bf16.msra.mxu1 %v3949_v23 }
 0x7ab   :  { %3200 = vmatprep.subr.bf16.mxu1 %v3540_v0 }
 0x7ae   :  { %3202 = vmatpush3.bf16.msra.mxu1 %v3953_v26 }
 0x7af   :  { %3227 = vmatprep.subr.bf16.mxu1 %v3540_v0 }
 0x844   :  { %v4035_v43 = vpop.f32.mrb[22].mxu1 }
 0x845   :  { %v4037_v44 = vpop.f32.mrb[23].mxu1 }
 0x846   :  { %v1022_v35 = vadd.f32 %v4009_v38, %v4037_v44 }
 0x864   :  { %v1179_v46 = vpop.f32.mrb[24].mxu1 }
 0x865   :  { %v4040_v47 = vadd.f32 %v1179_v46, %v997_v45  ;;  %v2596_v48 = vpop.f32.mrb[25].mxu1 }
 0x867   :  { %v1184_v49 = vmax.f32 %v4040_v47, 0.0 }
 0x869   :  { %2630 = vmatmul.mubr.f32.vlgmr.msra.gmra.mrb[10].mxu0 %v1184_v49 }
 0x86a   :  { %3205 = vmatpush3.bf16.msra.mxu0 %v3925_v63  ;;  %2699 = vmatprep.mubr.msk.f32.mxu0 %vm3541_vm0, %v3542_v1 }
 0x86b   :  { %3206 = vmatprep.subr.bf16.mxu0 %v3540_v0 }
 0x86e   :  { %3208 = vmatpush3.bf16.msra.mxu0 %v3929_v4 }
 0x86f   :  { %3209 = vmatprep.subr.bf16.mxu0 %v3540_v0 }
 0x872   :  { %3211 = vmatpush3.bf16.msra.mxu0 %v3933_v7 }
 0x873   :  { %3212 = vmatprep.subr.bf16.mxu0 %v3540_v0 }
 0x876   :  { %3214 = vmatpush3.bf16.msra.mxu0 %v3937_v12 }
 0x877   :  { %3215 = vmatprep.subr.bf16.mxu0 %v3540_v0 }
 0x87a   :  { %3217 = vmatpush3.bf16.msra.mxu0 %v3941_v15 }
 0x87b   :  { %3218 = vmatprep.subr.bf16.mxu0 %v3540_v0 }
 0x87e   :  { %3220 = vmatpush3.bf16.msra.mxu0 %v3945_v19 }
 0x87f   :  { %3221 = vmatprep.subr.bf16.mxu0 %v3540_v0 }
 0x882   :  { %3223 = vmatpush3.bf16.msra.mxu0 %v3949_v23 }
 0x883   :  { %3224 = vmatprep.subr.bf16.mxu0 %v3540_v0 }
 0x886   :  { %3226 = vmatpush3.bf16.msra.mxu0 %v3953_v26 }
 0x887   :  { %3251 = vmatprep.subr.bf16.mxu0 %v3540_v0 }
 0x93c   :  { %v1253_v51 = vpop.f32.mrb[10].mxu0 }
 0x93d   :  { %v4065_v52 = vadd.f32 %v1253_v51, %v1002_v50  ;;  %v2631_v53 = vpop.f32.mrb[11].mxu0  ;;  %v1027_v50 = vadd.f32 %v4035_v43, %v4009_v38 }
 0x93f   :  { %v1258_v54 = vmax.f32 %v4065_v52, 0.0 }
 0x941   :  { %2665 = vmatmul.mubr.f32.vlgmr.msra.gmra.mrb[26].mxu1 %v1258_v54 }
 0x942   :  { %3229 = vmatpush3.bf16.msra.mxu1 %v3925_v63  ;;  %2734 = vmatprep.mubr.msk.f32.mxu1 %vm3541_vm0, %v3542_v1 }
 0x943   :  { %3230 = vmatprep.subr.bf16.mxu1 %v3540_v0 }
 0x946   :  { %3232 = vmatpush3.bf16.msra.mxu1 %v3929_v4 }
 0x947   :  { %3233 = vmatprep.subr.bf16.mxu1 %v3540_v0 }
 0x94a   :  { %3235 = vmatpush3.bf16.msra.mxu1 %v3933_v7 }
 0x94b   :  { %3236 = vmatprep.subr.bf16.mxu1 %v3540_v0 }
 0x94e   :  { %3238 = vmatpush3.bf16.msra.mxu1 %v3937_v12 }
 0x94f   :  { %3239 = vmatprep.subr.bf16.mxu1 %v3540_v0 }
 0x952   :  { %3241 = vmatpush3.bf16.msra.mxu1 %v3941_v15 }
 0x953   :  { %3242 = vmatprep.subr.bf16.mxu1 %v3540_v0 }
 0x956   :  { %3244 = vmatpush3.bf16.msra.mxu1 %v3945_v19 }
 0x957   :  { %3245 = vmatprep.subr.bf16.mxu1 %v3540_v0 }
 0x95a   :  { %3247 = vmatpush3.bf16.msra.mxu1 %v3949_v23 }
 0x95b   :  { %3248 = vmatprep.subr.bf16.mxu1 %v3540_v0 }
 0x95e   :  { %3250 = vmatpush3.bf16.msra.mxu1 %v3953_v26 }
 0x95f   :  { %3275 = vmatprep.subr.bf16.mxu1 %v3540_v0 }
 0xa14   :  { %v1327_v56 = vpop.f32.mrb[26].mxu1 }
 0xa15   :  { %v4090_v57 = vadd.f32 %v1327_v56, %v1007_v55  ;;  %v2666_v58 = vpop.f32.mrb[27].mxu1 }
 0xa17   :  { %v1332_v59 = vmax.f32 %v4090_v57, 0.0 }
 0xa19   :  { %2700 = vmatmul.mubr.f32.vlgmr.msra.gmra.mrb[12].mxu0 %v1332_v59 }
 0xa1a   :  { %3253 = vmatpush3.bf16.msra.mxu0 %v3925_v63  ;;  %2769 = vmatprep.mubr.msk.f32.mxu0 %vm3541_vm0, %v3542_v1 }
 0xa1b   :  { %3254 = vmatprep.subr.bf16.mxu0 %v3540_v0 }
 0xa1e   :  { %3256 = vmatpush3.bf16.msra.mxu0 %v3929_v4 }
 0xa1f   :  { %3257 = vmatprep.subr.bf16.mxu0 %v3540_v0 }
 0xa22   :  { %3259 = vmatpush3.bf16.msra.mxu0 %v3933_v7 }
 0xa23   :  { %3260 = vmatprep.subr.bf16.mxu0 %v3540_v0 }
 0xa26   :  { %3262 = vmatpush3.bf16.msra.mxu0 %v3937_v12 }
 0xa27   :  { %3263 = vmatprep.subr.bf16.mxu0 %v3540_v0 }
 0xa2a   :  { %3265 = vmatpush3.bf16.msra.mxu0 %v3941_v15 }
 0xa2b   :  { %3266 = vmatprep.subr.bf16.mxu0 %v3540_v0 }
 0xa2e   :  { %3268 = vmatpush3.bf16.msra.mxu0 %v3945_v19 }
 0xa2f   :  { %3269 = vmatprep.subr.bf16.mxu0 %v3540_v0 }
 0xa32   :  { %3271 = vmatpush3.bf16.msra.mxu0 %v3949_v23 }
 0xa33   :  { %3272 = vmatprep.subr.bf16.mxu0 %v3540_v0 }
 0xa36   :  { %3274 = vmatpush3.bf16.msra.mxu0 %v3953_v26 }
 0xaec   :  { %v1401_v61 = vpop.f32.mrb[12].mxu0 }
 0xaed   :  { %v4114_v62 = vadd.f32 %v1401_v61, %v1012_v60  ;;  %v2701_v2 = vpop.f32.mrb[13].mxu0 }
 0xaef   :  { %v1406_v3 = vmax.f32 %v4114_v62, 0.0 }
 0xaf1   :  { %2735 = vmatmul.mubr.f32.vlgmr.msra.gmra.mrb[28].mxu1 %v1406_v3 }
 0xaf2   :  { %3277 = vmatpush3.bf16.msra.mxu1 %v3925_v63  ;;  %2804 = vmatprep.mubr.msk.f32.mxu1 %vm3541_vm0, %v3542_v1  ;;  %v1640_v1 = vld [vmem:[#allocation12] sm:$0xff]  ;;  %v1641_v63 = vld [vmem:[#allocation12 + $0x8] sm:$0xff] }
 0xaf3   :  { %3278 = vmatprep.subr.bf16.mxu1 %v3540_v0 }
 0xaf6   :  { %3280 = vmatpush3.bf16.msra.mxu1 %v3929_v4  ;;  %v3299_v4 = vpack.c.bf16 %v1641_v63, %v1640_v1 }
 0xaf7   :  { %3281 = vmatprep.subr.bf16.mxu1 %v3540_v0 }
 0xaf8   :  { %3300 = vmatprep.subr.bf16.mxu0 %v3299_v4 }
 0xafa   :  { %3283 = vmatpush3.bf16.msra.mxu1 %v3933_v7  ;;  %v1642_v7 = vld [vmem:[#allocation12 + $0x10] sm:$0xff] }
 0xafb   :  { %3284 = vmatprep.subr.bf16.mxu1 %v3540_v0  ;;  %v3303_v14 = vpack.c.bf16 %v1643_v8, %v1642_v7 }
 0xafe   :  { %3286 = vmatpush3.bf16.msra.mxu1 %v3937_v12 }
 0xaff   :  { %3287 = vmatprep.subr.bf16.mxu1 %v3540_v0 }
 0xb02   :  { %3289 = vmatpush3.bf16.msra.mxu1 %v3941_v15  ;;  %v1644_v15 = vld [vmem:[#allocation12 + $0x20] sm:$0xff] }
 0xb03   :  { %3290 = vmatprep.subr.bf16.mxu1 %v3540_v0 }
 0xb06   :  { %3292 = vmatpush3.bf16.msra.mxu1 %v3945_v19  ;;  %v1647_v19 = vld [vmem:[#allocation12 + $0x38] sm:$0xff] }
 0xb07   :  { %3293 = vmatprep.subr.bf16.mxu1 %v3540_v0  ;;  %v3311_v20 = vpack.c.bf16 %v1647_v19, %v1646_v18 }
 0xb0a   :  { %3295 = vmatpush3.bf16.msra.mxu1 %v3949_v23  ;;  %v1649_v23 = vld [vmem:[#allocation12 + $0x48] sm:$0xff] }
 0xb0b   :  { %3296 = vmatprep.subr.bf16.mxu1 %v3540_v0  ;;  %v3307_v0 = vpack.c.bf16 %v1645_v17, %v1644_v15  ;;  %v3315_v24 = vpack.c.bf16 %v1649_v23, %v1648_v21 }
 0xb0e   :  { %3298 = vmatpush3.bf16.msra.mxu1 %v3953_v26  ;;  %v1651_v26 = vld [vmem:[#allocation12 + $0x58] sm:$0xff] }
 0xb0f   :  { %v3319_v27 = vpack.c.bf16 %v1651_v26, %v1650_v25 }
 0xbc4   :  { %v1475_v6 = vpop.f32.mrb[28].mxu1 }
 0xbc5   :  { %v1479_v10 = vadd.f32 %v1475_v6, %v1017_v5  ;;  %v2736_v12 = vpop.f32.mrb[29].mxu1 }
 0xbc7   :  { %v1480_v13 = vmax.f32 %v1479_v10, 0.0 }
 0xbc9   :  { %2770 = vmatmul.mubr.f32.vlgmr.msra.gmra.mrb[14].mxu0 %v1480_v13 }
 0xbca   :  { %3302 = vmatpush3.bf16.msra.mxu0 %v3299_v4  ;;  %2839 = vmatprep.mubr.f32.mxu0 %v1110_v9 }
 0xbcb   :  { %3304 = vmatprep.subr.bf16.mxu0 %v3303_v14 }
 0xbce   :  { %3306 = vmatpush3.bf16.msra.mxu0 %v3303_v14 }
 0xbcf   :  { %3308 = vmatprep.subr.bf16.mxu0 %v3307_v0 }
 0xbd2   :  { %3310 = vmatpush3.bf16.msra.mxu0 %v3307_v0 }
 0xbd3   :  { %3312 = vmatprep.subr.bf16.mxu0 %v3311_v20 }
 0xbd6   :  { %3314 = vmatpush3.bf16.msra.mxu0 %v3311_v20 }
 0xbd7   :  { %3316 = vmatprep.subr.bf16.mxu0 %v3315_v24 }
 0xbda   :  { %3318 = vmatpush3.bf16.msra.mxu0 %v3315_v24 }
 0xbdb   :  { %3320 = vmatprep.subr.bf16.mxu0 %v3319_v27 }
 0xbde   :  { %3322 = vmatpush3.bf16.msra.mxu0 %v3319_v27 }
 0xbdf   :  { %3324 = vmatprep.subr.bf16.mxu0 %v3323_v31 }
 0xbe2   :  { %3326 = vmatpush3.bf16.msra.mxu0 %v3323_v31 }
 0xbe3   :  { %3328 = vmatprep.subr.bf16.mxu0 %v3327_v33 }
 0xbe6   :  { %3330 = vmatpush3.bf16.msra.mxu0 %v3327_v33 }
 0xbe9   :  { %2840 = vmatmul.mubr.f32.vlgmr.msra.gmra.mrb[16].mxu0 %v1184_v49 }
 0xbea   :  { %2842 = vmatprep.mubr.f32.mxu0 %v1258_v54 }
 0xbed   :  { %2843 = vmatmul.mubr.f32.gmra.mrb[18].mxu0 %v1332_v59 }
 0xbee   :  { %2845 = vmatprep.mubr.f32.mxu0 %v1406_v3 }
 0xbf1   :  { %2846 = vmatmul.mubr.f32.gmra.mrb[20].mxu0 %v1480_v13 }
 0xc9c   :  { %v1549_v36 = vpop.f32.mrb[14].mxu0 }
 0xc9d   :  { %v1553_v16 = vadd.f32 %v1549_v36, %v1022_v35  ;;  %v2771_v22 = vpop.f32.mrb[15].mxu0 }
 0xc9f   :  { %v1554_v28 = vmax.f32 %v1553_v16, 0.0 }
 0xca1   :  { %2805 = vmatmul.mubr.f32.vlgmr.msra.gmra.mrb[30].mxu1 %v1554_v28  ;;  %2848 = vmatprep.mubr.f32.mxu0 %v1554_v28 }
 0xcbc   :  { %v2841_v37 = vpop.f32.mrb[16].mxu0 }
 0xcbd   :  { %v1735_v39 = vadd.f32 %v2841_v37, %v1814_v34  ;;  %v1729_v40 = vpop.f32.mrb[17].mxu0 }
 0xcbe   :  { %v1730_v41 = vadd.f32 %v1814_v34, %v1729_v40 }
 0xcbf   :  { %1769 = vst [vmem:[#allocation14 + $0x8] sm:$0xff] %v1735_v39 }
 0xcc0   :  { %1768 = vst [vmem:[#allocation14] sm:$0xff] %v1730_v41  ;;  %v2844_v42 = vpop.f32.mrb[18].mxu0 }
 0xcc1   :  { %v1745_v9 = vadd.f32 %v2844_v42, %v1814_v34  ;;  %v1739_v45 = vpop.f32.mrb[19].mxu0 }
 0xcc2   :  { %v1740_v44 = vadd.f32 %v1814_v34, %v1739_v45 }
 0xcc3   :  { %1771 = vst [vmem:[#allocation14 + $0x18] sm:$0xff] %v1745_v9 }
 0xcc4   :  { %1770 = vst [vmem:[#allocation14 + $0x10] sm:$0xff] %v1740_v44  ;;  %v2847_v46 = vpop.f32.mrb[20].mxu0 }
 0xcc5   :  { %v1755_v47 = vadd.f32 %v2847_v46, %v1814_v34  ;;  %v1749_v48 = vpop.f32.mrb[21].mxu0 }
 0xcc6   :  { %v1750_v49 = vadd.f32 %v1814_v34, %v1749_v48 }
 0xcc7   :  { %1773 = vst [vmem:[#allocation14 + $0x28] sm:$0xff] %v1755_v47 }
 0xcc8   :  { %1772 = vst [vmem:[#allocation14 + $0x20] sm:$0xff] %v1750_v49 }
 0xd74   :  { %v1623_v51 = vpop.f32.mrb[30].mxu1 }
 0xd75   :  { %v1627_v52 = vadd.f32 %v1623_v51, %v1027_v50  ;;  %v2806_v53 = vpop.f32.mrb[31].mxu1 }
 0xd77   :  { %v1628_v54 = vmax.f32 %v1627_v52, 0.0 }
 0xd79   :  { %1631 = vst [vmem:[#allocation15 + $0x8] sm:$0xff] %v1628_v54  ;;  %2849 = vmatmul.mubr.f32.gmra.mrb[22].mxu0 %v1628_v54 }
 0xd7a   :  { %3487 = shalt.err (!%p3484_p10)
}
 0xd7b   :  { %s3488_s16 = scalar_lea.hbm %s4195_s10, 256 }
 0xd7c   :  { %p3489_p11 = scmp.ne.s32.totalorder %s4195_s10, %s3488_s16  ;;  %p3492_p12 = scmp.lt.u32.totalorder %s3488_s16, %s4195_s10 }
 0xd7e   :  { %p3494_p13 = pnand %p3492_p12, %p3489_p11 }
 0xd80   :  { %3497 = shalt.err (!%p3494_p13)
}
 0xd81   :  { %1799 = dma.vmem_to_hbm [thread:$0]  %s1794_s29, 256, %s4195_s10, [#allocation16], %s3534_s25, %s3534_s25, %s3535_s26  }
 0xd82   :  { %s3544_s18 = smov [#allocation14]  }
 0xd83   :  { %s1781_s1 = sshll.u32 %s3544_s18, 4  ;;  %s1782_s1 = int_to_ptr.vmem [resolvable:$true] %s1781_s1 }
 0xd84   :  { %s3498_s14 = scalar_lea.vmem %s1782_s1, 1024  ;;  %p3503_p1 = scmp.lt.s32.totalorder %s1782_s1, %s1782_s1 }
 0xd85   :  { %p3499_p0 = scmp.ne.s32.totalorder %s1782_s1, %s3498_s14  ;;  %p3504_p2 = scmp.lt.s32.totalorder %s3498_s14, %s3498_s14 }
 0xd87   :  { %p3505_p3 = por %p3504_p2, %p3503_p1 }
 0xd89   :  { %p3506_p4 = pnand %p3505_p3, %p3499_p0 }
 0xe4c   :  { %v2850_v38 = vpop.f32.mrb[22].mxu0 }
 0xe4d   :  { %v1765_v43 = vadd.f32 %v2850_v38, %v1814_v34  ;;  %v1759_v55 = vpop.f32.mrb[23].mxu0 }
 0xe4e   :  { %v1760_v56 = vadd.f32 %v1814_v34, %v1759_v55 }
 0xe4f   :  { %1775 = vst [vmem:[#allocation14 + $0x38] sm:$0xff] %v1765_v43 }
 0xe50   :  { %1774 = vst [vmem:[#allocation14 + $0x30] sm:$0xff] %v1760_v56 }
 0xe51   :  { %3509 = shalt.err (!%p3506_p4)
}
 0xe52   :  { %s3510_s10 = scalar_lea.hbm %s4194_s9, 1024 }
 0xe53   :  { %p3511_p5 = scmp.ne.s32.totalorder %s4194_s9, %s3510_s10  ;;  %p3514_p6 = scmp.lt.u32.totalorder %s3510_s10, %s4194_s9 }
 0xe55   :  { %p3516_p7 = pnand %p3514_p6, %p3511_p5 }
 0xe57   :  { %3519 = shalt.err (!%p3516_p7)
}
 0xe58   :  { %1787 = dma.vmem_to_hbm [thread:$0]  %s1782_s1, 1024, %s4194_s9, [#allocation5], %s3534_s25, %s3534_s25, %s3535_s26  }
 0xe59   :  { %3528 = dma.done.wait [#allocation5], 1024  }
 0xe5a   :  { %3529 = vsyncadd [#allocation5], 4294966272 }
 0xe5b   :  { %3530 = dma.done.wait [#allocation16], 256  }
 0xe5c   :  { %3531 = vsyncadd [#allocation16], 4294967040 }
 0xe5d   :  { %1806 = vsyncpa [#allocation4], 1 }
 0xe5e   :  { %1807 = vsyncpa [#allocation7], 1 }
 0xe5f   :  { %1808 = vsyncpa [#allocation10], 1 }
 0xe60   :  { %1809 = vsyncpa [#allocation13], 1 }
 0xe61   :  { %1810 = vsyncpa [#allocation5], 1 }
 0xe62   :  { %1811 = vsyncpa [#allocation16], 1 }

</bundles_post_ra>
